<compile_context>
chip_gen: v5e
topology: v5e:2x2
jax: 0.10.0
libtpu: 0.0.40
codegen_flags: <defaults>
</compile_context>

<pallas_src>
import jax
import jax.numpy as jnp
from jax.experimental import pallas as pl
from jax.experimental.pallas import tpu as pltpu


def weightslib2d_kernel(coeff_ref, texp_ref, mi_ref, mj_ref, base_ref, out_ref):
    """Fully fused forward for a block of `bm` output matrices.

       coeff_ref: VMEM (bm, C)    bf16  raw per-matrix coefficients
       texp_ref : VMEM (C,  C*R)  f32   (I + asymmetry*u@v) repeated over R
       mi_ref   : VMEM (H,  C*R)  bf16  mod_i transposed to (H, C, R), flattened
       mj_ref   : VMEM (C*R, W)   bf16  mod_j flattened
       base_ref : VMEM (H,  W)    bf16
       out_ref  : VMEM (bm, H, W) bf16
    """
    bm = out_ref.shape[0]
    H, CR = mi_ref.shape
    W = mj_ref.shape[1]

    # Tiny coefficient transform folded into the kernel: (bm, C) @ (C, C*R), f32.
    coeff_cr = jnp.dot(
        coeff_ref[...].astype(jnp.float32),
        texp_ref[...],
        preferred_element_type=jnp.float32,
    )
    coeff_bf16 = coeff_cr.astype(jnp.bfloat16)                      # (bm, CR)

    # Scaled LHS build in bf16 (bf16 VALU on v6e/v7x; v5e upconverts in-vreg,
    # but the materialized intermediate stays bf16 either way).
    a = coeff_bf16[:, None, :] * mi_ref[...][None, :, :]            # (bm, H, CR)
    a2 = a.reshape(bm * H, CR)

    # One MXU matmul: K = C*R = 128, f32 accumulation, M = bm*H amortizes the
    # RHS weight push and pipeline fill.  K and N are fixed by the problem.
    acc = jnp.dot(a2, mj_ref[...], preferred_element_type=jnp.float32)  # (bm*H, W)
    acc = acc.reshape(bm, H, W) + base_ref[...].astype(jnp.float32)[None]
    out_ref[...] = acc.astype(out_ref.dtype)


def _tensorcores_per_chip() -> int:
    """Best-effort TensorCore count per chip: 2 on v7x, 1 on v5e/v6e."""
    try:
        dev = jax.devices()[0]
        n = getattr(dev, "num_cores", None)
        if isinstance(n, int) and n in (1, 2):
            return n
        kind = str(getattr(dev, "device_kind", "")).lower()
        if "v7" in kind:
            return 2
    except Exception:
        pass
    return 1


def _pick_block_m(mat_count: int, H: int, W: int, out_bytes: int, num_cores: int) -> int:
    """Largest bm dividing mat_count with ~one block per TensorCore, capped so
    the double-buffered (bm, H, W) output block stays well inside VMEM."""
    target = max(1, mat_count // max(1, num_cores))
    # Cap: keep a single output buffer <= 8 MiB (x2 for double buffering).
    vmem_cap = max(1, (8 * 1024 * 1024) // max(1, H * W * out_bytes))
    bm = max(1, min(target, vmem_cap, mat_count))
    while mat_count % bm != 0:
        bm -= 1
    return bm


def prepare_weightslib2d_params(mod_i, mod_j, base, trans_u, trans_v, asymmetry):
    """One-time parameter layout prep (hoisted out of the per-call path)."""
    components_count, H, mod_rank = mod_i.shape
    W = mod_j.shape[2]
    CR = components_count * mod_rank

    t_mat = jnp.eye(components_count, dtype=jnp.float32) + asymmetry * (
        trans_u.astype(jnp.float32) @ trans_v.astype(jnp.float32)
    )
    # T_exp[c', c*R + r] = t_mat[c', c]  =>  coeff_cr = coefficients @ T_exp.
    texp = jnp.repeat(t_mat, mod_rank, axis=1)                    # (C, C*R) f32
    mi_flat = jnp.transpose(mod_i, (1, 0, 2)).reshape(H, CR)      # (H, C*R) bf16
    mj_flat = mod_j.reshape(CR, W)                                # (C*R, W) bf16
    return texp, mi_flat, mj_flat, base


def weightslib2d_forward(coefficients, texp, mi_flat, mj_flat, base):
    mat_count, components_count = coefficients.shape
    H, CR = mi_flat.shape
    W = mj_flat.shape[1]
    out_dtype = base.dtype
    out_bytes = jnp.dtype(out_dtype).itemsize

    num_cores = _tensorcores_per_chip()
    bm = _pick_block_m(mat_count, H, W, out_bytes, num_cores)
    grid = (mat_count // bm,)

    flops = 2 * mat_count * H * CR * W + 2 * mat_count * components_count * CR
    bytes_accessed = (
        coefficients.size * coefficients.dtype.itemsize
        + texp.size * texp.dtype.itemsize
        + mi_flat.size * mi_flat.dtype.itemsize
        + mj_flat.size * mj_flat.dtype.itemsize
        + base.size * base.dtype.itemsize
        + mat_count * H * W * out_bytes
    )

    # NOTE: mi/mj/base/texp have constant index_maps so they are fetched once;
    # their second pipeline buffer (<100 KiB total here) is left at the default.
    out = pl.pallas_call(
        weightslib2d_kernel,
        out_shape=jax.ShapeDtypeStruct((mat_count, H, W), out_dtype),
        grid_spec=pltpu.PrefetchScalarGridSpec(
            num_scalar_prefetch=0,
            grid=grid,
            in_specs=[
                pl.BlockSpec((bm, components_count), lambda i: (i, 0)),  # coefficients
                pl.BlockSpec((components_count, CR), lambda i: (0, 0)),  # T_exp (resident)
                pl.BlockSpec((H, CR), lambda i: (0, 0)),                 # mod_i (resident)
                pl.BlockSpec((CR, W), lambda i: (0, 0)),                 # mod_j (resident)
                pl.BlockSpec((H, W), lambda i: (0, 0)),                  # base  (resident)
            ],
            out_specs=pl.BlockSpec((bm, H, W), lambda i: (i, 0, 0)),
        ),
        compiler_params=pltpu.CompilerParams(
            dimension_semantics=("parallel",),  # shard M-blocks across TCs (v7x)
        ),
        cost_estimate=pl.CostEstimate(
            flops=flops, transcendentals=0, bytes_accessed=bytes_accessed
        ),
    )(coefficients, texp, mi_flat, mj_flat, base)
    return out


if __name__ == "__main__":
    # Module hyper-parameters (defaults of Model.__init__).
    output_shape = (128, 128)
    mat_count = 16
    components_count = 16
    mod_rank = 8
    t_rank = 1
    asymmetry = 1e-3
    dtype_w = jnp.bfloat16

    H, W = output_shape
    key = jax.random.PRNGKey(0)
    k1, k2, k3, k4, k5, k6 = jax.random.split(key, 6)

    # Deterministic parameter init (synthetic; shapes implied by __init__).
    coefficients = jax.random.uniform(
        k1, (mat_count, components_count), minval=-1.0, maxval=1.0
    ).astype(dtype_w)
    mod_i = (
        jax.random.normal(k2, (components_count, H, mod_rank)) / jnp.sqrt(mod_rank)
    ).astype(dtype_w)
    mod_j = jax.random.normal(k3, (components_count, mod_rank, W)).astype(dtype_w)
    base = (asymmetry * jax.random.normal(k4, (H, W))).astype(dtype_w)
    trans_u = jax.random.normal(k5, (components_count, t_rank)).astype(dtype_w)
    trans_v = jax.random.normal(k6, (t_rank, components_count)).astype(dtype_w)

    # One-time parameter prep, then a single fused custom call.
    texp, mi_flat, mj_flat, base_p = prepare_weightslib2d_params(
        mod_i, mod_j, base, trans_u, trans_v, asymmetry
    )
    out = weightslib2d_forward(coefficients, texp, mi_flat, mj_flat, base_p)
    out = jax.block_until_ready(out)
    assert out.shape == (mat_count, H, W) and out.dtype == dtype_w

    # Pure-JAX reference check (same assumed WeightsLib2D math).
    c32 = coefficients.astype(jnp.float32)
    t_mat = jnp.eye(components_count, dtype=jnp.float32) + asymmetry * (
        trans_u.astype(jnp.float32) @ trans_v.astype(jnp.float32)
    )
    coeff_eff = c32 @ t_mat
    comp = jnp.einsum(
        "chr,crw->chw", mod_i.astype(jnp.float32), mod_j.astype(jnp.float32)
    )
    ref = (
        base.astype(jnp.float32)[None] + jnp.einsum("mc,chw->mhw", coeff_eff, comp)
    ).astype(dtype_w)
    assert jnp.allclose(
        out.astype(jnp.float32), ref.astype(jnp.float32), rtol=5e-2, atol=5e-2
    ), "kernel output does not match reference"

    print("KERNEL_OK")
</pallas_src>

<mosaic_0001>
module attributes {stable_mosaic.version = 11 : i64} {
  func.func @weightslib2d_kernel(%arg0: i32, %arg1: memref<16x16xbf16, #tpu.memory_space<vmem>>, %arg2: memref<16x128xf32, #tpu.memory_space<vmem>>, %arg3: memref<128x128xbf16, #tpu.memory_space<vmem>>, %arg4: memref<128x128xbf16, #tpu.memory_space<vmem>>, %arg5: memref<128x128xbf16, #tpu.memory_space<vmem>>, %arg6: memref<16x128x128xbf16, #tpu.memory_space<vmem>>) attributes {dimension_semantics = [#tpu.dimension_semantics<parallel>], iteration_bounds = array<i64: 1>, scalar_prefetch = 0 : i64, scratch_operands = 0 : i64, tpu.core_type = #tpu.core_type<tc>, window_params = [{transform_indices = @transform_0, window_bounds = array<i64: 16, 16>}, {pipeline_mode = #tpu.pipeline_mode<synchronous>, transform_indices = @transform_1, window_bounds = array<i64: 16, 128>}, {pipeline_mode = #tpu.pipeline_mode<synchronous>, transform_indices = @transform_2, window_bounds = array<i64: 128, 128>}, {pipeline_mode = #tpu.pipeline_mode<synchronous>, transform_indices = @transform_3, window_bounds = array<i64: 128, 128>}, {pipeline_mode = #tpu.pipeline_mode<synchronous>, transform_indices = @transform_4, window_bounds = array<i64: 128, 128>}, {transform_indices = @transform_5, window_bounds = array<i64: 16, 128, 128>}]} {
    %c0 = arith.constant 0 : index
    %c0_0 = arith.constant 0 : index
    %0 = vector.load %arg1[%c0, %c0_0] : memref<16x16xbf16, #tpu.memory_space<vmem>>, vector<16x16xbf16>
    %1 = arith.extf %0 : vector<16x16xbf16> to vector<16x16xf32>
    %c0_1 = arith.constant 0 : index
    %c0_2 = arith.constant 0 : index
    %2 = vector.load %arg2[%c0_1, %c0_2] : memref<16x128xf32, #tpu.memory_space<vmem>>, vector<16x128xf32>
    %cst = arith.constant dense<0.000000e+00> : vector<16x128xf32>
    %3 = tpu.matmul %1, %2, %cst {dimension_numbers = #tpu.dot_dimension_numbers<[1], [0], [0], [1], [0, 0, 1, 1], [], []>} : vector<16x16xf32>, vector<16x128xf32>, vector<16x128xf32> -> vector<16x128xf32>
    %4 = arith.truncf %3 : vector<16x128xf32> to vector<16x128xbf16>
    %5 = vector.shape_cast %4 : vector<16x128xbf16> to vector<16x1x128xbf16>
    %c0_3 = arith.constant 0 : index
    %c0_4 = arith.constant 0 : index
    %6 = vector.load %arg3[%c0_3, %c0_4] : memref<128x128xbf16, #tpu.memory_space<vmem>>, vector<128x128xbf16>
    %7 = vector.shape_cast %6 : vector<128x128xbf16> to vector<1x128x128xbf16>
    %8 = vector.broadcast %5 : vector<16x1x128xbf16> to vector<16x128x128xbf16>
    %9 = vector.broadcast %7 : vector<1x128x128xbf16> to vector<16x128x128xbf16>
    %10 = arith.mulf %8, %9 : vector<16x128x128xbf16>
    %11 = vector.shape_cast %10 : vector<16x128x128xbf16> to vector<2048x128xbf16>
    %c0_5 = arith.constant 0 : index
    %c0_6 = arith.constant 0 : index
    %12 = vector.load %arg4[%c0_5, %c0_6] : memref<128x128xbf16, #tpu.memory_space<vmem>>, vector<128x128xbf16>
    %cst_7 = arith.constant dense<0.000000e+00> : vector<2048x128xf32>
    %13 = tpu.matmul %11, %12, %cst_7 {dimension_numbers = #tpu.dot_dimension_numbers<[1], [0], [0], [1], [0, 0, 1, 1], [], []>} : vector<2048x128xbf16>, vector<128x128xbf16>, vector<2048x128xf32> -> vector<2048x128xf32>
    %14 = vector.shape_cast %13 : vector<2048x128xf32> to vector<16x128x128xf32>
    %c0_8 = arith.constant 0 : index
    %c0_9 = arith.constant 0 : index
    %15 = vector.load %arg5[%c0_8, %c0_9] : memref<128x128xbf16, #tpu.memory_space<vmem>>, vector<128x128xbf16>
    %16 = arith.extf %15 : vector<128x128xbf16> to vector<128x128xf32>
    %17 = vector.shape_cast %16 : vector<128x128xf32> to vector<1x128x128xf32>
    %18 = vector.broadcast %17 : vector<1x128x128xf32> to vector<16x128x128xf32>
    %19 = arith.addf %14, %18 : vector<16x128x128xf32>
    %20 = arith.truncf %19 : vector<16x128x128xf32> to vector<16x128x128xbf16>
    %c0_10 = arith.constant 0 : index
    %c0_11 = arith.constant 0 : index
    %c0_12 = arith.constant 0 : index
    %21 = vector.load %arg6[%c0_10, %c0_11, %c0_12] : memref<16x128x128xbf16, #tpu.memory_space<vmem>>, vector<16x128x128xbf16>
    tpu.vector_store %arg6[%c0_10, %c0_11, %c0_12], %20 {strides = array<i32>} : memref<16x128x128xbf16, #tpu.memory_space<vmem>>, vector<16x128x128xbf16>,
    return
  }
  func.func @transform_0(%arg0: i32) -> (i32, i32) {
    %c0_i32 = arith.constant 0 : i32
    %c0_i32_0 = arith.constant 0 : i32
    return %arg0, %c0_i32 : i32, i32
  }
  func.func @transform_1(%arg0: i32) -> (i32, i32) {
    %c0_i32 = arith.constant 0 : i32
    %c0_i32_0 = arith.constant 0 : i32
    %c0_i32_1 = arith.constant 0 : i32
    return %c0_i32, %c0_i32_0 : i32, i32
  }
  func.func @transform_2(%arg0: i32) -> (i32, i32) {
    %c0_i32 = arith.constant 0 : i32
    %c0_i32_0 = arith.constant 0 : i32
    %c0_i32_1 = arith.constant 0 : i32
    return %c0_i32, %c0_i32_0 : i32, i32
  }
  func.func @transform_3(%arg0: i32) -> (i32, i32) {
    %c0_i32 = arith.constant 0 : i32
    %c0_i32_0 = arith.constant 0 : i32
    %c0_i32_1 = arith.constant 0 : i32
    return %c0_i32, %c0_i32_0 : i32, i32
  }
  func.func @transform_4(%arg0: i32) -> (i32, i32) {
    %c0_i32 = arith.constant 0 : i32
    %c0_i32_0 = arith.constant 0 : i32
    %c0_i32_1 = arith.constant 0 : i32
    return %c0_i32, %c0_i32_0 : i32, i32
  }
  func.func @transform_5(%arg0: i32) -> (i32, i32, i32) {
    %c0_i32 = arith.constant 0 : i32
    %c0_i32_0 = arith.constant 0 : i32
    %c0_i32_1 = arith.constant 0 : i32
    return %arg0, %c0_i32, %c0_i32_0 : i32, i32, i32
  }
}

</mosaic_0001>

<bundles_post_ra>
// kernel: tpu_custom_call.1
= control target key start
LH: loop header
LB: loop body
LE: loop exit
PB: predicated region body
PF: predicated region fallthrough
CT: control target
= control target key end

     0   :  { %10 = vsyncpa [#allocation3], 0  ;;  %s5218_s0 = inlined_call_operand.hbm [shape: bf16[16,16], index: 0, kind: input, shape index: {}]   ;;  %s5219_s1 = inlined_call_operand.hbm [shape: f32[16,128], index: 1, kind: input, shape index: {}]   ;;  %s5220_s2 = inlined_call_operand.hbm [shape: bf16[128,128], index: 2, kind: input, shape index: {}]   ;;  %s5221_s3 = inlined_call_operand.hbm [shape: bf16[128,128], index: 3, kind: input, shape index: {}]   ;;  %s5222_s4 = inlined_call_operand.hbm [shape: bf16[128,128], index: 4, kind: input, shape index: {}]   ;;  %s5223_s5 = inlined_call_operand.hbm [shape: bf16[16,128,128], index: 5, kind: output, shape index: {}]  }
   0x1   :  { %11 = vsyncpa [#allocation6], 0 }
   0x2   :  { %12 = vsyncpa [#allocation9], 0  ;;  %s31_s20 = sshll.u32 %s5219_s1, 4  ;;  %s32_s20 = int_to_ptr.hbm [resolvable:$true] %s31_s20 }
   0x3   :  { %13 = vsyncpa [#allocation4], 0  ;;  %s4230_s21 = smov [#allocation5]   ;;  %s4231_s23 = smov 128  }
   0x4   :  { %s33_s22 = sshll.u32 %s4230_s21, 4  ;;  %s4232_s24 = smov 8   ;;  %s34_s22 = int_to_ptr.vmem [resolvable:$true] %s33_s22 }
   0x5   :  { %39 = dma.hbm_to_vmem [thread:$0]  %s32_s20, 256, %s34_s22, [#allocation6], %s4231_s23, %s4231_s23, %s4232_s24  }
   0x6   :  { %s57_s27 = sshll.u32 %s5221_s3, 4  ;;  %s4233_s28 = smov [#allocation8]   ;;  %s58_s27 = int_to_ptr.hbm [resolvable:$true] %s57_s27 }
   0x7   :  { %s59_s29 = sshll.u32 %s4233_s28, 4  ;;  %s18_s7 = sshll.u32 %s5218_s0, 4  ;;  %s60_s29 = int_to_ptr.vmem [resolvable:$true] %s59_s29  ;;  %s19_s7 = int_to_ptr.hbm [resolvable:$true] %s18_s7 }
   0x8   :  { %s4234_s1 = smov 64   ;;  %s4235_s8 = smov 4  }
   0x9   :  { %65 = dma.hbm_to_vmem [thread:$0]  %s58_s27, 1024, %s60_s29, [#allocation9], %s4234_s1, %s4234_s1, %s4235_s8  }
   0xa   :  { %s44_s11 = sshll.u32 %s5220_s2, 4  ;;  %s4236_s3 = smov [#allocation2]   ;;  %s45_s11 = int_to_ptr.hbm [resolvable:$true] %s44_s11 }
   0xb   :  { %s20_s12 = sshll.u32 %s4236_s3, 4  ;;  %s4237_s0 = smov [#allocation7]   ;;  %s21_s12 = int_to_ptr.vmem [resolvable:$true] %s20_s12 }
   0xc   :  { %26 = dma.hbm_to_vmem [thread:$0]  %s19_s7, 128, %s21_s12, [#allocation3], %s4234_s1, %s4234_s1, %s4235_s8  }
   0xd   :  { %s46_s13 = sshll.u32 %s4237_s0, 4  ;;  %s70_s16 = sshll.u32 %s5222_s4, 4  ;;  %s47_s13 = int_to_ptr.vmem [resolvable:$true] %s46_s13  ;;  %s71_s16 = int_to_ptr.hbm [resolvable:$true] %s70_s16 }
   0xe   :  { %52 = dma.hbm_to_vmem [thread:$0]  %s45_s11, 1024, %s47_s13, [#allocation6], %s4234_s1, %s4234_s1, %s4235_s8  }
   0xf   :  { %s4238_s2 = smov [#allocation10]  }
  0x10   :  { %s72_s17 = sshll.u32 %s4238_s2, 4  ;;  %s73_s17 = int_to_ptr.vmem [resolvable:$true] %s72_s17 }
  0x11   :  { %78 = dma.hbm_to_vmem [thread:$0]  %s71_s16, 1024, %s73_s17, [#allocation9], %s4234_s1, %s4234_s1, %s4235_s8  }
  0x12   :  { %4222 = dma.done.wait [#allocation3], 128  }
  0x13   :  { %4223 = vsyncadd [#allocation3], 4294967168 }
  0x14   :  { %4224 = dma.done.wait [#allocation6], 1280  }
  0x15   :  { %4225 = vsyncadd [#allocation6], 4294966016 }
  0x16   :  { %4226 = dma.done.wait [#allocation9], 2048  }
  0x17   :  { %4227 = vsyncadd [#allocation9], 4294965248  ;;  %v104_v0 = vld [vmem:[#allocation5 + $0x8] sm:$0xff]  ;;  %v103_v1 = vld [vmem:[#allocation5] sm:$0xff]  ;;  %vm105_vm0 = vcmask 130048   ;;  %vm141_vm1 = vcmask 1040384  }
  0x18   :  { %v3196_v2 = vld [vmem:[#allocation2] sm:$0xff]   ;;  %126 = vmatpush.msra.mxu0 %v104_v0  ;;  %v3194_v4 = vld [vmem:[#allocation8 + $0x38] sm:$0xff]  ;;  %v3193_v5 = vld [vmem:[#allocation8 + $0x30] sm:$0xff]  ;;  %vm146_vm2 = vcmask 1041409   ;;  %vm154_vm3 = vcmask 1043459   ;;  %vm150_vm4 = vcmask 1042434  }
  0x19   :  { %v3197_v3 = vunpack.c.l.bf16 %v3196_v2  ;;  %4044 = vmatpush.bf16.msra.mxu1 %v3194_v4  ;;  %4045 = vmatpush.bf16.msra.mxu2 %v3194_v4  ;;  %v3198_v6 = vunpack.c.h.bf16 %v3196_v2  ;;  %v3192_v7 = vld [vmem:[#allocation8 + $0x28] sm:$0xff]  ;;  %v3191_v8 = vld [vmem:[#allocation8 + $0x20] sm:$0xff]  ;;  %v3190_v9 = vld [vmem:[#allocation8 + $0x18] sm:$0xff]  ;;  %s4239_s4 = smov [#allocation11]   ;;  %s3130_s21 = sshll.u32 %s5223_s5, 4  ;;  %s3131_s21 = int_to_ptr.hbm [resolvable:$true] %s3130_s21 }
  0x1a   :  { %127 = vmatpush.msra.mxu0 %v103_v1  ;;  %4046 = vmatpush.bf16.msra.mxu3 %v3194_v4  ;;  %v3189_v10 = vld [vmem:[#allocation8 + $0x10] sm:$0xff]  ;;  %v3188_v11 = vld [vmem:[#allocation8 + $0x8] sm:$0xff]  ;;  %v3187_v12 = vld [vmem:[#allocation8] sm:$0xff]  ;;  %s3128_s18 = sshll.u32 %s4239_s4, 4  ;;  %s3129_s18 = int_to_ptr.vmem [resolvable:$true] %s3128_s18 }
  0x1b   :  { %3145 = vmatmul.msk.f32.vlgmr.msra.gmra.mxu0 %vm105_vm0, %v3197_v3  ;;  %v3200_v34 = vld [vmem:[#allocation7] sm:$0xff]   ;;  %v3909_v50 = vld [vmem:[#allocation7 + $0x38] sm:$0xff]  }
  0x1c   :  { %1675 = vmatpush.bf16.msrb.mxu0 %v3194_v4  ;;  %v4313_v37 = vunpack.c.l.bf16 %v3200_v34  ;;  %v4317_v42 = vunpack.c.h.bf16 %v3200_v34  ;;  %v4342_v58 = vunpack.c.l.bf16 %v3909_v50  ;;  %v4350_v1 = vunpack.c.h.bf16 %v3909_v50 }
  0x1d   :  { %4047 = vmatpush.bf16.msra.mxu1 %v3193_v5  ;;  %4048 = vmatpush.bf16.msra.mxu2 %v3193_v5 }
  0x1e   :  { %4049 = vmatpush.bf16.msra.mxu3 %v3193_v5  ;;  %5240 = vst [vmem:[#allocation16_spill] sm:$0xff] %v4317_v42 }
  0x20   :  { %1676 = vmatpush.bf16.msrb.mxu0 %v3193_v5 }
  0x21   :  { %4050 = vmatpush.bf16.msra.mxu1 %v3192_v7  ;;  %4051 = vmatpush.bf16.msra.mxu2 %v3192_v7 }
  0x22   :  { %4052 = vmatpush.bf16.msra.mxu3 %v3192_v7 }
  0x23   :  { %3146 = vmatmul.msk.f32.gmra.mxu0 %vm105_vm0, %v3198_v6 }
  0x24   :  { %1677 = vmatpush.bf16.msrb.mxu0 %v3192_v7 }
  0x25   :  { %4053 = vmatpush.bf16.msra.mxu1 %v3191_v8  ;;  %4054 = vmatpush.bf16.msra.mxu2 %v3191_v8 }
  0x26   :  { %4055 = vmatpush.bf16.msra.mxu3 %v3191_v8 }
  0x28   :  { %1678 = vmatpush.bf16.msrb.mxu0 %v3191_v8  ;;  %v3903_v8 = vld [vmem:[#allocation7 + $0x8] sm:$0xff]  }
  0x29   :  { %4056 = vmatpush.bf16.msra.mxu1 %v3190_v9  ;;  %4057 = vmatpush.bf16.msra.mxu2 %v3190_v9 }
  0x2a   :  { %4058 = vmatpush.bf16.msra.mxu3 %v3190_v9 }
  0x2c   :  { %1679 = vmatpush.bf16.msrb.mxu0 %v3190_v9 }
  0x2d   :  { %4059 = vmatpush.bf16.msra.mxu1 %v3189_v10  ;;  %4060 = vmatpush.bf16.msra.mxu2 %v3189_v10 }
  0x2e   :  { %4061 = vmatpush.bf16.msra.mxu3 %v3189_v10 }
  0x30   :  { %1680 = vmatpush.bf16.msrb.mxu0 %v3189_v10 }
  0x31   :  { %4062 = vmatpush.bf16.msra.mxu1 %v3188_v11  ;;  %4063 = vmatpush.bf16.msra.mxu2 %v3188_v11 }
  0x32   :  { %4064 = vmatpush.bf16.msra.mxu3 %v3188_v11 }
  0x34   :  { %1681 = vmatpush.bf16.msrb.mxu0 %v3188_v11 }
  0x35   :  { %4065 = vmatpush.bf16.msra.mxu1 %v3187_v12  ;;  %4066 = vmatpush.bf16.msra.mxu2 %v3187_v12 }
  0x36   :  { %4067 = vmatpush.bf16.msra.mxu3 %v3187_v12 }
  0x38   :  { %1682 = vmatpush.bf16.msrb.mxu0 %v3187_v12 }
  0x98   :  { %v129_v13 = vpop.f32.mrf.mxu0 }
  0x99   :  { %v135_v14 = vpack.c.bf16 %v129_v13, %v129_v13 }
  0x9b   :  { %v139_v15 = vrot.slane %v135_v14, 3 }
  0x9d   :  { %v4298_v16 = vsel %vm141_vm1, %v135_v14, %v139_v15  ;;  %v147_v17 = vsel %vm146_vm2, %v135_v14, %v139_v15  ;;  %v155_v18 = vsel %vm154_vm3, %v135_v14, %v139_v15  ;;  %v151_v29 = vsel %vm150_vm4, %v135_v14, %v139_v15 }
  0x9e   :  { %v4302_v19 = vrot.slane %v147_v17, 1  ;;  %v4304_v20 = vrot.slane %v155_v18, 3  ;;  %v3147_v21 = vpack.i.b16 %v4298_v16, %v4298_v16  ;;  %v4311_v35 = vrot.slane %v151_v29, 2 }
  0x9f   :  { %v4356_v17 = vunpack.c.l.bf16 %v3903_v8 }
  0xa0   :  { %v174_v22 = vunpack.i.h.s16 %v4302_v19  ;;  %v178_v23 = vunpack.i.h.s16 %v4304_v20  ;;  %v219_v24 = vperm.slane %v3147_v21, 0  ;;  %v132_v30 = vpop.f32.mrf.mxu0  ;;  %v3149_v43 = vpack.i.b16 %v4311_v35, %v4311_v35 }
  0xa1   :  { %v136_v36 = vpack.c.bf16 %v132_v30, %v132_v30 }
  0xa2   :  { %v206_v25 = vpack.i.b16 %v174_v22, %v174_v22  ;;  %v210_v26 = vpack.i.b16 %v178_v23, %v178_v23  ;;  %v236_v27 = vpack.i.b16 %v219_v24, %v219_v24  ;;  %v223_v55 = vperm.slane %v3149_v43, 0 }
  0xa3   :  { %v140_v41 = vrot.slane %v136_v36, 3  ;;  %v4360_v23 = vunpack.c.h.bf16 %v3903_v8  ;;  %v3904_v8 = vld [vmem:[#allocation7 + $0x10] sm:$0xff]  }
  0xa4   :  { %v222_v28 = vperm.slane %v206_v25, 0  ;;  %v226_v31 = vperm.slane %v210_v26, 0  ;;  %v238_v32 = vperm.slane %v236_v27, 0  ;;  %v252_v2 = vpack.i.b16 %v223_v55, %v223_v55 }
  0xa5   :  { %v162_v44 = vsel %vm146_vm2, %v136_v36, %v140_v41  ;;  %v165_v45 = vsel %vm150_vm4, %v136_v36, %v140_v41  ;;  %v4324_v46 = vsel %vm154_vm3, %v136_v36, %v140_v41  ;;  %v4327_v47 = vsel %vm141_vm1, %v136_v36, %v140_v41 }
  0xa6   :  { %v248_v33 = vpack.i.b16 %v222_v28, %v222_v28  ;;  %v264_v39 = vpack.i.b16 %v226_v31, %v226_v31  ;;  %v4315_v40 = vunpack.c.l.bf16 %v238_v32  ;;  %v4329_v48 = vrot.slane %v162_v44, 1 }
  0xa7   :  { %v4331_v49 = vrot.slane %v165_v45, 2  ;;  %v3151_v56 = vpack.i.b16 %v4327_v47, %v4327_v47  ;;  %v254_v13 = vperm.slane %v252_v2, 0 }
  0xa8   :  { %v250_v38 = vperm.slane %v248_v33, 0  ;;  %v266_v51 = vperm.slane %v264_v39, 0  ;;  %v331_v53 = vmul.f32 %v4313_v37, %v4315_v40  ;;  %v182_v54 = vunpack.i.h.s16 %v4329_v48 }
  0xa9   :  { %v332_v57 = vmul.f32 %v4317_v42, %v4315_v40  ;;  %v3153_v60 = vpack.i.b16 %v4331_v49, %v4331_v49  ;;  %v227_v3 = vperm.slane %v3151_v56, 0  ;;  %v4368_v31 = vunpack.c.l.bf16 %v254_v13 }
  0xaa   :  { %v4333_v52 = vunpack.c.l.bf16 %v250_v38  ;;  %v214_v59 = vpack.i.b16 %v182_v54, %v182_v54  ;;  %v4346_v61 = vunpack.c.l.bf16 %v266_v51  ;;  %v587_v62 = vpack.c.bf16 %v331_v53, %v331_v53 }
  0xab   :  { %v588_v4 = vpack.c.bf16 %v332_v57, %v332_v57  ;;  %v231_v5 = vperm.slane %v3153_v60, 0  ;;  %v268_v14 = vpack.i.b16 %v227_v3, %v227_v3  ;;  %v333_v44 = vmul.f32 %v4356_v17, %v4315_v40 }
  0xac   :  { %5241 = vst [vmem:[#allocation17_spill] sm:$0xff] %v4333_v52  ;;  %v393_v63 = vmul.f32 %v4342_v58, %v4333_v52  ;;  %v230_v0 = vperm.slane %v214_v59, 0  ;;  %v394_v7 = vmul.f32 %v4350_v1, %v4333_v52  ;;  %v1115_v9 = vunpack.c.l.b16 %v587_v62 }
  0xad   :  { %5242 = vst [vmem:[#allocation18_spill] sm:$0xff] %v4346_v61  ;;  %v457_v11 = vmul.f32 %v4342_v58, %v4346_v61  ;;  %v1116_v15 = vunpack.c.l.b16 %v588_v4  ;;  %v284_v18 = vpack.i.b16 %v231_v5, %v231_v5  ;;  %v458_v26 = vmul.f32 %v4350_v1, %v4346_v61 }
  0xae   :  { %v280_v6 = vpack.i.b16 %v230_v0, %v230_v0  ;;  %v649_v10 = vpack.c.bf16 %v393_v63, %v393_v63  ;;  %v650_v22 = vpack.c.bf16 %v394_v7, %v394_v7  ;;  %v270_v32 = vperm.slane %v268_v14, 0 }
  0xaf   :  { %v1371_v24 = vpack.c.b16 %v1116_v15, %v1115_v9  ;;  %v713_v27 = vpack.c.bf16 %v457_v11, %v457_v11  ;;  %v714_v33 = vpack.c.bf16 %v458_v26, %v458_v26  ;;  %v286_v36 = vperm.slane %v284_v18, 0 }
  0xb0   :  { %v282_v12 = vperm.slane %v280_v6, 0  ;;  %v1177_v25 = vunpack.c.l.b16 %v649_v10  ;;  %v1178_v28 = vunpack.c.l.b16 %v650_v22  ;;  %v334_v45 = vmul.f32 %v4360_v23, %v4315_v40 }
  0xb1   :  { %1683 = vmatmul.bf16.vlgmr.msrb.gmra.mxu0 %v1371_v24  ;;  %v1241_v34 = vunpack.c.l.b16 %v713_v27  ;;  %v1242_v43 = vunpack.c.l.b16 %v714_v33  ;;  %v4374_v53 = vunpack.c.l.bf16 %v270_v32  ;;  %v4376_v55 = vunpack.c.l.bf16 %v286_v36 }
  0xb2   :  { %v4358_v21 = vunpack.c.l.bf16 %v282_v12  ;;  %v1402_v38 = vpack.c.b16 %v1178_v28, %v1177_v25  ;;  %v395_v57 = vmul.f32 %v4313_v37, %v4368_v31  ;;  %v396_v59 = vmul.f32 %v4317_v42, %v4368_v31 }
  0xb3   :  { %v1434_v54 = vpack.c.b16 %v1242_v43, %v1241_v34  ;;  %v589_v60 = vpack.c.bf16 %v333_v44, %v333_v44  ;;  %v590_v62 = vpack.c.bf16 %v334_v45, %v334_v45  ;;  %v459_v63 = vmul.f32 %v4313_v37, %v4374_v53 }
  0xb4   :  { %5243 = vst [vmem:[#allocation19_spill] sm:$0xff] %v4358_v21  ;;  %v521_v29 = vmul.f32 %v4342_v58, %v4358_v21  ;;  %v522_v30 = vmul.f32 %v4350_v1, %v4358_v21  ;;  %1838 = vmatmul.bf16.vlgmr.msra.gmra.mxu1 %v1402_v38  ;;  %v460_v0 = vmul.f32 %v4317_v42, %v4374_v53  ;;  %v4390_v18 = vunpack.c.l.bf16 %v3904_v8 }
  0xb5   :  { %1998 = vmatmul.bf16.vlgmr.msra.gmra.mxu2 %v1434_v54  ;;  %v651_v2 = vpack.c.bf16 %v395_v57, %v395_v57  ;;  %v652_v3 = vpack.c.bf16 %v396_v59, %v396_v59  ;;  %v523_v4 = vmul.f32 %v4313_v37, %v4376_v55  ;;  %v524_v5 = vmul.f32 %v4317_v42, %v4376_v55  ;;  %v3905_v57 = vld [vmem:[#allocation7 + $0x18] sm:$0xff]  }
  0xb6   :  { %v777_v39 = vpack.c.bf16 %v521_v29, %v521_v29  ;;  %v778_v41 = vpack.c.bf16 %v522_v30, %v522_v30  ;;  %v1117_v6 = vunpack.c.l.b16 %v589_v60  ;;  %v1118_v7 = vunpack.c.l.b16 %v590_v62 }
  0xb7   :  { %v715_v9 = vpack.c.bf16 %v459_v63, %v459_v63  ;;  %v716_v10 = vpack.c.bf16 %v460_v0, %v460_v0  ;;  %v1179_v11 = vunpack.c.l.b16 %v651_v2  ;;  %v1180_v12 = vunpack.c.l.b16 %v652_v3 }
  0xb8   :  { %v1305_v50 = vunpack.c.l.b16 %v777_v39  ;;  %v1306_v51 = vunpack.c.l.b16 %v778_v41  ;;  %v779_v13 = vpack.c.bf16 %v523_v4, %v523_v4  ;;  %v780_v14 = vpack.c.bf16 %v524_v5, %v524_v5 }
  0xb9   :  { %v1372_v15 = vpack.c.b16 %v1118_v7, %v1117_v6  ;;  %v4392_v22 = vunpack.c.h.bf16 %v3904_v8  ;;  %v1243_v24 = vunpack.c.l.b16 %v715_v9  ;;  %v1244_v25 = vunpack.c.l.b16 %v716_v10 }
  0xba   :  { %v1466_v56 = vpack.c.b16 %v1306_v51, %v1305_v50  ;;  %v1403_v26 = vpack.c.b16 %v1180_v12, %v1179_v11  ;;  %v1307_v27 = vunpack.c.l.b16 %v779_v13  ;;  %v1308_v28 = vunpack.c.l.b16 %v780_v14 }
  0xbb   :  { %v335_v29 = vmul.f32 %v4390_v18, %v4315_v40  ;;  %v336_v30 = vmul.f32 %v4392_v22, %v4315_v40  ;;  %v1435_v32 = vpack.c.b16 %v1244_v25, %v1243_v24  ;;  %v397_v34 = vmul.f32 %v4356_v17, %v4368_v31 }
  0xbc   :  { %2158 = vmatmul.bf16.vlgmr.msra.gmra.mxu3 %v1466_v56  ;;  %v1467_v33 = vpack.c.b16 %v1308_v28, %v1307_v27  ;;  %v398_v36 = vmul.f32 %v4360_v23, %v4368_v31  ;;  %v461_v41 = vmul.f32 %v4356_v17, %v4374_v53  ;;  %v462_v43 = vmul.f32 %v4360_v23, %v4374_v53 }
  0xbd   :  { %v591_v38 = vpack.c.bf16 %v335_v29, %v335_v29  ;;  %v592_v39 = vpack.c.bf16 %v336_v30, %v336_v30  ;;  %v653_v44 = vpack.c.bf16 %v397_v34, %v397_v34  ;;  %v525_v50 = vmul.f32 %v4356_v17, %v4376_v55 }
  0xbe   :  { %v654_v45 = vpack.c.bf16 %v398_v36, %v398_v36  ;;  %v526_v51 = vmul.f32 %v4360_v23, %v4376_v55  ;;  %v717_v59 = vpack.c.bf16 %v461_v41, %v461_v41  ;;  %v718_v60 = vpack.c.bf16 %v462_v43, %v462_v43 }
  0xbf   :  { %v1119_v54 = vunpack.c.l.b16 %v591_v38  ;;  %v1120_v56 = vunpack.c.l.b16 %v592_v39  ;;  %v1181_v62 = vunpack.c.l.b16 %v653_v44  ;;  %v781_v0 = vpack.c.bf16 %v525_v50, %v525_v50  ;;  %v3906_v38 = vld [vmem:[#allocation7 + $0x20] sm:$0xff]  }
  0xc0   :  { %v1182_v63 = vunpack.c.l.b16 %v654_v45  ;;  %v782_v2 = vpack.c.bf16 %v526_v51, %v526_v51  ;;  %v4410_v4 = vunpack.c.l.bf16 %v3905_v57  ;;  %v4412_v5 = vunpack.c.h.bf16 %v3905_v57 }
  0xc1   :  { %1688 = vmatmul.bf16.gmra.mxu0 %v1372_v15  ;;  %v1373_v3 = vpack.c.b16 %v1120_v56, %v1119_v54  ;;  %v1245_v6 = vunpack.c.l.b16 %v717_v59  ;;  %v1246_v7 = vunpack.c.l.b16 %v718_v60  ;;  %v1309_v9 = vunpack.c.l.b16 %v781_v0 }
  0xc2   :  { %v1404_v8 = vpack.c.b16 %v1182_v63, %v1181_v62  ;;  %v1310_v10 = vunpack.c.l.b16 %v782_v2  ;;  %v337_v11 = vmul.f32 %v4410_v4, %v4315_v40  ;;  %v338_v12 = vmul.f32 %v4412_v5, %v4315_v40 }
  0xc3   :  { %v1436_v13 = vpack.c.b16 %v1246_v7, %v1245_v6  ;;  %v399_v15 = vmul.f32 %v4390_v18, %v4368_v31  ;;  %v400_v24 = vmul.f32 %v4392_v22, %v4368_v31  ;;  %v463_v27 = vmul.f32 %v4390_v18, %v4374_v53 }
  0xc4   :  { %1843 = vmatmul.bf16.gmra.mxu1 %v1403_v26  ;;  %v1468_v14 = vpack.c.b16 %v1310_v10, %v1309_v9  ;;  %v593_v25 = vpack.c.bf16 %v337_v11, %v337_v11  ;;  %v594_v26 = vpack.c.bf16 %v338_v12, %v338_v12  ;;  %v464_v28 = vmul.f32 %v4392_v22, %v4374_v53 }
  0xc5   :  { %2003 = vmatmul.bf16.gmra.mxu2 %v1435_v32  ;;  %v655_v29 = vpack.c.bf16 %v399_v15, %v399_v15  ;;  %v656_v30 = vpack.c.bf16 %v400_v24, %v400_v24  ;;  %v527_v32 = vmul.f32 %v4390_v18, %v4376_v55  ;;  %v719_v39 = vpack.c.bf16 %v463_v27, %v463_v27  ;;  %v3907_v27 = vld [vmem:[#allocation7 + $0x28] sm:$0xff]  }
  0xc6   :  { %v1121_v34 = vunpack.c.l.b16 %v593_v25  ;;  %v1122_v36 = vunpack.c.l.b16 %v594_v26  ;;  %v720_v41 = vpack.c.bf16 %v464_v28, %v464_v28  ;;  %v4430_v54 = vunpack.c.l.bf16 %v3906_v38 }
  0xc7   :  { %v1183_v43 = vunpack.c.l.b16 %v655_v29  ;;  %v1184_v44 = vunpack.c.l.b16 %v656_v30  ;;  %v783_v45 = vpack.c.bf16 %v527_v32, %v527_v32  ;;  %v4432_v56 = vunpack.c.h.bf16 %v3906_v38 }
  0xc8   :  { %v1374_v51 = vpack.c.b16 %v1122_v36, %v1121_v34  ;;  %5244 = vst [vmem:[#allocation20_spill] sm:$0xff] %v4430_v54  ;;  %v1247_v57 = vunpack.c.l.b16 %v719_v39  ;;  %v1248_v59 = vunpack.c.l.b16 %v720_v41  ;;  %v339_v0 = vmul.f32 %v4430_v54, %v4315_v40 }
  0xc9   :  { %5245 = vst [vmem:[#allocation21_spill] sm:$0xff] %v4432_v56  ;;  %v1405_v60 = vpack.c.b16 %v1184_v44, %v1183_v43  ;;  %v1311_v62 = vunpack.c.l.b16 %v783_v45  ;;  %v340_v2 = vmul.f32 %v4432_v56, %v4315_v40  ;;  %v401_v7 = vmul.f32 %v4410_v4, %v4368_v31 }
  0xca   :  { %v595_v9 = vpack.c.bf16 %v339_v0, %v339_v0  ;;  %v465_v11 = vmul.f32 %v4410_v4, %v4374_v53  ;;  %v466_v12 = vmul.f32 %v4412_v5, %v4374_v53  ;;  %v529_v15 = vmul.f32 %v4410_v4, %v4376_v55 }
  0xcb   :  { %v596_v10 = vpack.c.bf16 %v340_v2, %v340_v2  ;;  %v530_v24 = vmul.f32 %v4412_v5, %v4376_v55  ;;  %v4450_v38 = vunpack.c.l.bf16 %v3907_v27  ;;  %v4452_v39 = vunpack.c.h.bf16 %v3907_v27 }
  0xcc   :  { %2163 = vmatmul.bf16.gmra.mxu3 %v1467_v33  ;;  %v528_v33 = vmul.f32 %v4392_v22, %v4376_v55  ;;  %v1123_v25 = vunpack.c.l.b16 %v595_v9  ;;  %v721_v28 = vpack.c.bf16 %v465_v11, %v465_v11  ;;  %v722_v29 = vpack.c.bf16 %v466_v12, %v466_v12 }
  0xcd   :  { %v1124_v26 = vunpack.c.l.b16 %v596_v10  ;;  %v786_v34 = vpack.c.bf16 %v530_v24, %v530_v24  ;;  %5246 = vst [vmem:[#allocation22_spill] sm:$0xff] %v4450_v38  ;;  %v531_v9 = vmul.f32 %v4430_v54, %v4376_v55  ;;  %v532_v10 = vmul.f32 %v4432_v56, %v4376_v55 }
  0xce   :  { %v784_v50 = vpack.c.bf16 %v528_v33, %v528_v33  ;;  %v785_v33 = vpack.c.bf16 %v529_v15, %v529_v15  ;;  %5247 = vst [vmem:[#allocation23_spill] sm:$0xff] %v4452_v39  ;;  %v1249_v41 = vunpack.c.l.b16 %v721_v28  ;;  %v1250_v43 = vunpack.c.l.b16 %v722_v29 }
  0xcf   :  { %v1375_v36 = vpack.c.b16 %v1124_v26, %v1123_v25  ;;  %v787_v26 = vpack.c.bf16 %v531_v9, %v531_v9  ;;  %v788_v27 = vpack.c.bf16 %v532_v10, %v532_v10 }
  0xd0   :  { %v1312_v63 = vunpack.c.l.b16 %v784_v50  ;;  %v1313_v45 = vunpack.c.l.b16 %v785_v33  ;;  %v1314_v50 = vunpack.c.l.b16 %v786_v34 }
  0xd1   :  { %1693 = vmatmul.bf16.gmra.mxu0 %v1373_v3  ;;  %v1437_v3 = vpack.c.b16 %v1248_v59, %v1247_v57  ;;  %v342_v57 = vmul.f32 %v4452_v39, %v4315_v40  ;;  %v1438_v59 = vpack.c.b16 %v1250_v43, %v1249_v41  ;;  %v1316_v41 = vunpack.c.l.b16 %v788_v27 }
  0xd2   :  { %v1469_v6 = vpack.c.b16 %v1312_v63, %v1311_v62  ;;  %v403_v62 = vmul.f32 %v4430_v54, %v4368_v31  ;;  %v404_v63 = vmul.f32 %v4432_v56, %v4368_v31 }
  0xd3   :  { %v598_v2 = vpack.c.bf16 %v342_v57, %v342_v57  ;;  %v406_v57 = vmul.f32 %v4452_v39, %v4368_v31 }
  0xd4   :  { %1848 = vmatmul.bf16.gmra.mxu1 %v1404_v8  ;;  %v402_v8 = vmul.f32 %v4412_v5, %v4368_v31 }
  0xd5   :  { %2008 = vmatmul.bf16.gmra.mxu2 %v1436_v13  ;;  %v657_v13 = vpack.c.bf16 %v401_v7, %v401_v7  ;;  %v659_v7 = vpack.c.bf16 %v403_v62, %v403_v62  ;;  %v1126_v12 = vunpack.c.l.b16 %v598_v2  ;;  %v469_v62 = vmul.f32 %v4450_v38, %v4374_v53 }
  0xd6   :  { %v662_v2 = vpack.c.bf16 %v406_v57, %v406_v57 }
  0xd7   :  { %v1185_v30 = vunpack.c.l.b16 %v657_v13  ;;  %v3908_v13 = vld [vmem:[#allocation7 + $0x30] sm:$0xff]   ;;  %v1187_v24 = vunpack.c.l.b16 %v659_v7  ;;  %v172_v7 = vunpack.i.h.s16 %v4298_v16  ;;  %v725_v10 = vpack.c.bf16 %v469_v62, %v469_v62 }
  0xd8   :  { %v4470_v29 = vunpack.c.l.bf16 %v3908_v13  ;;  %v345_v16 = vmul.f32 %v4342_v58, %v4315_v40 }
  0xda   :  { %v343_v43 = vmul.f32 %v4470_v29, %v4315_v40 }
  0xdc   :  { %2168 = vmatmul.bf16.gmra.mxu3 %v1468_v14  ;;  %v658_v14 = vpack.c.bf16 %v402_v8, %v402_v8  ;;  %v660_v8 = vpack.c.bf16 %v404_v63, %v404_v63  ;;  %v470_v63 = vmul.f32 %v4452_v39, %v4374_v53 }
  0xde   :  { %v1186_v32 = vunpack.c.l.b16 %v658_v14  ;;  %v1188_v25 = vunpack.c.l.b16 %v660_v8 }
  0xe0   :  { %v1406_v44 = vpack.c.b16 %v1186_v32, %v1185_v30  ;;  %v4472_v30 = vunpack.c.h.bf16 %v3908_v13  ;;  %v1407_v34 = vpack.c.b16 %v1188_v25, %v1187_v24  ;;  %v1190_v13 = vunpack.c.l.b16 %v662_v2 }
  0xe1   :  { %1698 = vmatmul.bf16.gmra.mxu0 %v1374_v51  ;;  %v341_v51 = vmul.f32 %v4450_v38, %v4315_v40  ;;  %v204_v24 = vpack.i.b16 %v172_v7, %v172_v7  ;;  %v176_v7 = vunpack.i.h.s16 %v4311_v35 }
  0xe3   :  { %v597_v0 = vpack.c.bf16 %v341_v51, %v341_v51  ;;  %v405_v51 = vmul.f32 %v4450_v38, %v4368_v31 }
  0xe4   :  { %1853 = vmatmul.bf16.gmra.mxu1 %v1405_v60  ;;  %v1470_v60 = vpack.c.b16 %v1314_v50, %v1313_v45 }
  0xe5   :  { %2013 = vmatmul.bf16.gmra.mxu2 %v1437_v3  ;;  %v467_v3 = vmul.f32 %v4430_v54, %v4374_v53  ;;  %v1125_v11 = vunpack.c.l.b16 %v597_v0  ;;  %v661_v0 = vpack.c.bf16 %v405_v51, %v405_v51  ;;  %v601_v51 = vpack.c.bf16 %v345_v16, %v345_v16 }
  0xe7   :  { %v723_v14 = vpack.c.bf16 %v467_v3, %v467_v3  ;;  %v1376_v28 = vpack.c.b16 %v1126_v12, %v1125_v11  ;;  %v533_v3 = vmul.f32 %v4450_v38, %v4376_v55  ;;  %v726_v11 = vpack.c.bf16 %v470_v63, %v470_v63 }
  0xe8   :  { %v1189_v12 = vunpack.c.l.b16 %v661_v0  ;;  %v535_v63 = vmul.f32 %v4470_v29, %v4376_v55  ;;  %v536_v0 = vmul.f32 %v4472_v30, %v4376_v55 }
  0xe9   :  { %v1251_v32 = vunpack.c.l.b16 %v723_v14  ;;  %v789_v14 = vpack.c.bf16 %v533_v3, %v533_v3  ;;  %v1254_v27 = vunpack.c.l.b16 %v726_v11  ;;  %v1129_v3 = vunpack.c.l.b16 %v601_v51 }
  0xec   :  { %2173 = vmatmul.bf16.gmra.mxu3 %v1469_v6  ;;  %v468_v6 = vmul.f32 %v4432_v56, %v4374_v53 }
  0xee   :  { %v724_v15 = vpack.c.bf16 %v468_v6, %v468_v6  ;;  %v534_v6 = vmul.f32 %v4452_v39, %v4376_v55 }
  0xf0   :  { %v1252_v33 = vunpack.c.l.b16 %v724_v15  ;;  %v790_v15 = vpack.c.bf16 %v534_v6, %v534_v6 }
  0xf1   :  { %1703 = vmatmul.bf16.gmra.mxu0 %v1375_v36  ;;  %v1315_v36 = vunpack.c.l.b16 %v787_v26  ;;  %v1253_v26 = vunpack.c.l.b16 %v725_v10 }
  0xf2   :  { %v1439_v45 = vpack.c.b16 %v1252_v33, %v1251_v32  ;;  %v1317_v32 = vunpack.c.l.b16 %v789_v14  ;;  %v1318_v33 = vunpack.c.l.b16 %v790_v15 }
  0xf3   :  { %v1471_v50 = vpack.c.b16 %v1316_v41, %v1315_v36  ;;  %v346_v36 = vmul.f32 %v4350_v1, %v4315_v40  ;;  %v1440_v41 = vpack.c.b16 %v1254_v27, %v1253_v26  ;;  %v184_v26 = vunpack.i.h.s16 %v4331_v49 }
  0xf4   :  { %1858 = vmatmul.bf16.gmra.mxu1 %v1406_v44  ;;  %v344_v44 = vmul.f32 %v4472_v30, %v4315_v40  ;;  %v472_v40 = vmul.f32 %v4472_v30, %v4374_v53  ;;  %v409_v49 = vmul.f32 %v4342_v58, %v4368_v31 }
  0xf5   :  { %2018 = vmatmul.bf16.gmra.mxu2 %v1438_v59  ;;  %v599_v59 = vpack.c.bf16 %v343_v43, %v343_v43  ;;  %v1472_v43 = vpack.c.b16 %v1318_v33, %v1317_v32  ;;  %v602_v57 = vpack.c.bf16 %v346_v36, %v346_v36 }
  0xf7   :  { %v1127_v8 = vunpack.c.l.b16 %v599_v59  ;;  %v471_v59 = vmul.f32 %v4470_v29, %v4374_v53  ;;  %v1130_v6 = vunpack.c.l.b16 %v602_v57 }
  0xf9   :  { %v1378_v15 = vpack.c.b16 %v1130_v6, %v1129_v3 }
  0xfc   :  { %2178 = vmatmul.bf16.gmra.mxu3 %v1470_v60  ;;  %v600_v60 = vpack.c.bf16 %v344_v44, %v344_v44  ;;  %v407_v44 = vmul.f32 %v4470_v29, %v4368_v31 }
  0xfe   :  { %v1128_v9 = vunpack.c.l.b16 %v600_v60  ;;  %v663_v60 = vpack.c.bf16 %v407_v44, %v407_v44 }
 0x100   :  { %v1377_v25 = vpack.c.b16 %v1128_v9, %v1127_v8  ;;  %v727_v8 = vpack.c.bf16 %v471_v59, %v471_v59  ;;  %v728_v9 = vpack.c.bf16 %v472_v40, %v472_v40  ;;  %v1191_v10 = vunpack.c.l.b16 %v663_v60 }
 0x101   :  { %1708 = vmatmul.bf16.gmra.mxu0 %v1376_v28  ;;  %v1408_v28 = vpack.c.b16 %v1190_v13, %v1189_v12  ;;  %v791_v12 = vpack.c.bf16 %v535_v63, %v535_v63  ;;  %v792_v13 = vpack.c.bf16 %v536_v0, %v536_v0  ;;  %v473_v60 = vmul.f32 %v4342_v58, %v4374_v53 }
 0x102   :  { %v1255_v27 = vunpack.c.l.b16 %v727_v8  ;;  %v665_v63 = vpack.c.bf16 %v409_v49, %v409_v49 }
 0x103   :  { %v1319_v33 = vunpack.c.l.b16 %v791_v12  ;;  %v1320_v35 = vunpack.c.l.b16 %v792_v13 }
 0x104   :  { %1863 = vmatmul.bf16.gmra.mxu1 %v1407_v34  ;;  %v220_v34 = vperm.slane %v204_v24, 0  ;;  %v208_v24 = vpack.i.b16 %v176_v7, %v176_v7  ;;  %v1193_v13 = vunpack.c.l.b16 %v665_v63 }
 0x105   :  { %2023 = vmatmul.bf16.gmra.mxu2 %v1439_v45  ;;  %v408_v45 = vmul.f32 %v4472_v30, %v4368_v31 }
 0x106   :  { %v224_v36 = vperm.slane %v208_v24, 0 }
 0x107   :  { %v664_v62 = vpack.c.bf16 %v408_v45, %v408_v45  ;;  %v410_v45 = vmul.f32 %v4350_v1, %v4368_v31  ;;  %v538_v31 = vmul.f32 %v4350_v1, %v4376_v55 }
 0x108   :  { %v256_v57 = vpack.i.b16 %v224_v36, %v224_v36 }
 0x109   :  { %v1192_v11 = vunpack.c.l.b16 %v664_v62  ;;  %v474_v62 = vmul.f32 %v4350_v1, %v4374_v53  ;;  %v666_v0 = vpack.c.bf16 %v410_v45, %v410_v45  ;;  %v794_v53 = vpack.c.bf16 %v538_v31, %v538_v31 }
 0x10a   :  { %v258_v7 = vperm.slane %v256_v57, 0 }
 0x10b   :  { %v1409_v32 = vpack.c.b16 %v1192_v11, %v1191_v10  ;;  %v729_v10 = vpack.c.bf16 %v473_v60, %v473_v60  ;;  %v730_v11 = vpack.c.bf16 %v474_v62, %v474_v62  ;;  %v1322_v36 = vunpack.c.l.b16 %v794_v53 }
 0x10c   :  { %2183 = vmatmul.bf16.gmra.mxu3 %v1471_v50  ;;  %v240_v50 = vpack.i.b16 %v220_v34, %v220_v34 }
 0x10e   :  { %v242_v2 = vperm.slane %v240_v50, 0 }
 0x110   :  { %v4508_v14 = vunpack.c.l.bf16 %v242_v2  ;;  %v537_v2 = vmul.f32 %v4342_v58, %v4376_v55  ;;  %v1257_v55 = vunpack.c.l.b16 %v729_v10 }
 0x111   :  { %1713 = vmatmul.bf16.gmra.mxu0 %v1377_v25  ;;  %v180_v25 = vunpack.i.h.s16 %v4327_v47  ;;  %v1473_v47 = vpack.c.b16 %v1320_v35, %v1319_v33  ;;  %v1258_v33 = vunpack.c.l.b16 %v730_v11 }
 0x112   :  { %v347_v34 = vmul.f32 %v4313_v37, %v4508_v14  ;;  %v348_v16 = vmul.f32 %v4317_v42, %v4508_v14  ;;  %v793_v24 = vpack.c.bf16 %v537_v2, %v537_v2  ;;  %v350_v49 = vmul.f32 %v4360_v23, %v4508_v14 }
 0x114   :  { %1868 = vmatmul.bf16.gmra.mxu1 %v1408_v28  ;;  %v1256_v28 = vunpack.c.l.b16 %v728_v9  ;;  %v603_v50 = vpack.c.bf16 %v347_v34, %v347_v34  ;;  %v604_v51 = vpack.c.bf16 %v348_v16, %v348_v16  ;;  %v1321_v16 = vunpack.c.l.b16 %v793_v24 }
 0x115   :  { %2028 = vmatmul.bf16.gmra.mxu2 %v1440_v41  ;;  %v212_v41 = vpack.i.b16 %v180_v25, %v180_v25 }
 0x116   :  { %v1441_v44 = vpack.c.b16 %v1256_v28, %v1255_v27  ;;  %v1131_v3 = vunpack.c.l.b16 %v603_v50  ;;  %v1132_v6 = vunpack.c.l.b16 %v604_v51  ;;  %v3232_v27 = vld [vmem:[#allocation10] sm:$0xff]   ;;  %v1442_v51 = vpack.c.b16 %v1258_v33, %v1257_v55 }
 0x117   :  { %v228_v59 = vperm.slane %v212_v41, 0  ;;  %v4530_v41 = vunpack.c.l.bf16 %v3232_v27  ;;  %v1474_v63 = vpack.c.b16 %v1322_v36, %v1321_v16 }
 0x118   :  { %v1379_v25 = vpack.c.b16 %v1132_v6, %v1131_v3  ;;  %v606_v3 = vpack.c.bf16 %v350_v49, %v350_v49  ;;  %v3910_v49 = vld [vmem:[#allocation10 + $0x8] sm:$0xff]  }
 0x119   :  { %v272_v8 = vpack.i.b16 %v228_v59, %v228_v59 }
 0x11b   :  { %v274_v28 = vperm.slane %v272_v8, 0 }
 0x11c   :  { %2188 = vmatmul.bf16.gmra.mxu3 %v1472_v43  ;;  %v216_v43 = vpack.i.b16 %v184_v26, %v184_v26  ;;  %v4528_v26 = vunpack.c.l.bf16 %v258_v7 }
 0x11d   :  { %v4540_v50 = vunpack.c.l.bf16 %v274_v28  ;;  %v1134_v28 = vunpack.c.l.b16 %v606_v3  ;;  %v352_v3 = vmul.f32 %v4392_v22, %v4508_v14 }
 0x11e   :  { %v232_v40 = vperm.slane %v216_v43, 0  ;;  %v3916_v43 = vld [vmem:[#allocation10 + $0x38] sm:$0xff]   ;;  %v411_v45 = vmul.f32 %v4313_v37, %v4528_v26  ;;  %v412_v57 = vmul.f32 %v4317_v42, %v4528_v26 }
 0x11f   :  { %v4548_v62 = vunpack.c.h.bf16 %v3916_v43  ;;  %v475_v10 = vmul.f32 %v4313_v37, %v4540_v50  ;;  %v476_v11 = vmul.f32 %v4317_v42, %v4540_v50 }
 0x120   :  { %v288_v9 = vpack.i.b16 %v232_v40, %v232_v40  ;;  %v4546_v40 = vunpack.c.l.bf16 %v3916_v43  ;;  %v667_v6 = vpack.c.bf16 %v411_v45, %v411_v45 }
 0x121   :  { %1718 = vmatmul.bf16.gmra.mxu0 %v1378_v15  ;;  %v1194_v15 = vunpack.c.l.b16 %v666_v0  ;;  %v731_v33 = vpack.c.bf16 %v475_v10, %v475_v10 }
 0x122   :  { %v290_v35 = vperm.slane %v288_v9, 0  ;;  %v668_v9 = vpack.c.bf16 %v412_v57, %v412_v57  ;;  %v1195_v16 = vunpack.c.l.b16 %v667_v6 }
 0x123   :  { %v1410_v34 = vpack.c.b16 %v1194_v15, %v1193_v13 }
 0x124   :  { %1873 = vmatmul.bf16.gmra.mxu1 %v1409_v32  ;;  %v4544_v59 = vunpack.c.l.bf16 %v290_v35  ;;  %v732_v35 = vpack.c.bf16 %v476_v11, %v476_v11 }
 0x125   :  { %2033 = vmatmul.bf16.gmra.mxu2 %v1441_v44  ;;  %v4532_v44 = vunpack.c.h.bf16 %v3232_v27 }
 0x126   :  { %v539_v24 = vmul.f32 %v4313_v37, %v4544_v59  ;;  %v540_v53 = vmul.f32 %v4317_v42, %v4544_v59  ;;  %v1260_v57 = vunpack.c.l.b16 %v732_v35 }
 0x128   :  { %v795_v36 = vpack.c.bf16 %v539_v24, %v539_v24  ;;  %v796_v43 = vpack.c.bf16 %v540_v53, %v540_v53 }
 0x12c   :  { %2193 = vmatmul.bf16.gmra.mxu3 %v1473_v47  ;;  %v349_v47 = vmul.f32 %v4356_v17, %v4508_v14 }
 0x12e   :  { %v1684_v12 = vpop.f32.mrf.mxu0  ;;  %v605_v31 = vpack.c.bf16 %v349_v47, %v349_v47 }
 0x12f   :  { %v2356_v0 = vadd.f32 %v4530_v41, %v1684_v12 }
 0x130   :  { %v1133_v27 = vunpack.c.l.b16 %v605_v31  ;;  %v1324_v31 = vunpack.c.l.b16 %v796_v43 }
 0x131   :  { %1723 = vmatmul.bf16.gmra.mxu0 %v1379_v25  ;;  %v1839_v32 = vpop.f32.mrf.mxu1 }
 0x132   :  { %v2418_v13 = vadd.f32 %v4546_v40, %v1839_v32  ;;  %v1196_v32 = vunpack.c.l.b16 %v668_v9  ;;  %v1380_v47 = vpack.c.b16 %v1134_v28, %v1133_v27  ;;  %v4570_v9 = vunpack.c.h.bf16 %v3910_v49 }
 0x134   :  { %1878 = vmatmul.bf16.gmra.mxu1 %v1410_v34 }
 0x135   :  { %2038 = vmatmul.bf16.gmra.mxu2 %v1442_v51  ;;  %v1259_v51 = vunpack.c.l.b16 %v731_v33 }
 0x136   :  { %v1686_v60 = vpop.f32.mrf.mxu0 }
 0x137   :  { %v2357_v2 = vadd.f32 %v4532_v44, %v1686_v60  ;;  %v351_v60 = vmul.f32 %v4390_v18, %v4508_v14  ;;  %v1443_v53 = vpack.c.b16 %v1260_v57, %v1259_v51  ;;  %v478_v51 = vmul.f32 %v4360_v23, %v4540_v50 }
 0x138   :  { %v1999_v15 = vpop.f32.mrf.mxu2 }
 0x139   :  { %v3266_v7 = vpack.c.bf16 %v2357_v2, %v2356_v0  ;;  %v1841_v8 = vpop.f32.mrf.mxu1  ;;  %v1411_v0 = vpack.c.b16 %v1196_v32, %v1195_v16  ;;  %v1323_v2 = vunpack.c.l.b16 %v795_v36  ;;  %v2482_v6 = vadd.f32 %v4546_v40, %v1999_v15 }
 0x13a   :  { %v2419_v12 = vadd.f32 %v4548_v62, %v1841_v8  ;;  %v414_v15 = vmul.f32 %v4360_v23, %v4528_v26  ;;  %v607_v33 = vpack.c.bf16 %v351_v60, %v351_v60  ;;  %v608_v16 = vpack.c.bf16 %v352_v3, %v352_v3 }
 0x13b   :  { %3267 = vst [vmem:[#allocation11] sm:$0xff] %v3266_v7   ;;  %v4567_v7 = vunpack.c.l.bf16 %v3910_v49  ;;  %v477_v49 = vmul.f32 %v4356_v17, %v4540_v50 }
 0x13c   :  { %2198 = vmatmul.bf16.gmra.mxu3 %v1474_v63  ;;  %v3421_v55 = vpack.c.bf16 %v2419_v12, %v2418_v13  ;;  %v413_v12 = vmul.f32 %v4356_v17, %v4528_v26  ;;  %v1136_v3 = vunpack.c.l.b16 %v608_v16 }
 0x13e   :  { %3947 = vst [vmem:[#allocation11 + $0xf8] sm:$0xff] %v3421_v55   ;;  %v1689_v34 = vpop.f32.mrf.mxu0  ;;  %v1475_v55 = vpack.c.b16 %v1324_v31, %v1323_v2  ;;  %v669_v32 = vpack.c.bf16 %v413_v12, %v413_v12  ;;  %v1135_v31 = vunpack.c.l.b16 %v607_v33 }
 0x13f   :  { %v2159_v25 = vpop.f32.mrf.mxu3  ;;  %v2358_v35 = vadd.f32 %v4567_v7, %v1689_v34 }
 0x140   :  { %v2001_v63 = vpop.f32.mrf.mxu2  ;;  %v2546_v11 = vadd.f32 %v4546_v40, %v2159_v25 }
 0x141   :  { %1728 = vmatmul.bf16.gmra.mxu0 %v1380_v47  ;;  %v1844_v45 = vpop.f32.mrf.mxu1  ;;  %v2483_v8 = vadd.f32 %v4548_v62, %v2001_v63  ;;  %v670_v47 = vpack.c.bf16 %v414_v15, %v414_v15  ;;  %v541_v63 = vmul.f32 %v4356_v17, %v4544_v59  ;;  %v3911_v15 = vld [vmem:[#allocation10 + $0x10] sm:$0xff]  }
 0x142   :  { %v2420_v57 = vadd.f32 %v4530_v41, %v1844_v45 }
 0x143   :  { %v3581_v24 = vpack.c.bf16 %v2483_v8, %v2482_v6  ;;  %v733_v8 = vpack.c.bf16 %v477_v49, %v477_v49  ;;  %v1198_v45 = vunpack.c.l.b16 %v670_v47  ;;  %v797_v12 = vpack.c.bf16 %v541_v63, %v541_v63 }
 0x144   :  { %1883 = vmatmul.bf16.gmra.mxu1 %v1411_v0  ;;  %v542_v0 = vmul.f32 %v4360_v23, %v4544_v59  ;;  %v4595_v47 = vunpack.c.l.bf16 %v3911_v15 }
 0x145   :  { %3979 = vst [vmem:[#allocation11 + $0x1f8] sm:$0xff] %v3581_v24   ;;  %2043 = vmatmul.bf16.gmra.mxu2 %v1443_v53  ;;  %v1381_v53 = vpack.c.b16 %v1136_v3, %v1135_v31  ;;  %v1325_v16 = vunpack.c.l.b16 %v797_v12 }
 0x146   :  { %v1691_v27 = vpop.f32.mrf.mxu0  ;;  %v798_v24 = vpack.c.bf16 %v542_v0, %v542_v0  ;;  %v415_v0 = vmul.f32 %v4390_v18, %v4528_v26 }
 0x147   :  { %v2161_v10 = vpop.f32.mrf.mxu3  ;;  %v2359_v25 = vadd.f32 %v4570_v9, %v1691_v27 }
 0x148   :  { %v2547_v13 = vadd.f32 %v4548_v62, %v2161_v10  ;;  %v2004_v34 = vpop.f32.mrf.mxu2  ;;  %v734_v10 = vpack.c.bf16 %v478_v51, %v478_v51  ;;  %v4598_v51 = vunpack.c.h.bf16 %v3911_v15 }
 0x149   :  { %v3271_v36 = vpack.c.bf16 %v2359_v25, %v2358_v35  ;;  %v1846_v43 = vpop.f32.mrf.mxu1  ;;  %v353_v35 = vmul.f32 %v4410_v4, %v4508_v14 }
 0x14a   :  { %v3741_v28 = vpack.c.bf16 %v2547_v13, %v2546_v11  ;;  %v2421_v60 = vadd.f32 %v4532_v44, %v1846_v43  ;;  %v1197_v13 = vunpack.c.l.b16 %v669_v32  ;;  %v354_v43 = vmul.f32 %v4412_v5, %v4508_v14 }
 0x14b   :  { %3917 = vst [vmem:[#allocation11 + $0x8] sm:$0xff] %v3271_v36   ;;  %v1326_v36 = vunpack.c.l.b16 %v798_v24  ;;  %v2484_v32 = vadd.f32 %v4530_v41, %v2004_v34  ;;  %v416_v34 = vmul.f32 %v4392_v22, %v4528_v26  ;;  %v671_v24 = vpack.c.bf16 %v415_v0, %v415_v0 }
 0x14c   :  { %4011 = vst [vmem:[#allocation11 + $0x2f8] sm:$0xff] %v3741_v28   ;;  %2203 = vmatmul.bf16.gmra.mxu3 %v1475_v55  ;;  %v3426_v6 = vpack.c.bf16 %v2421_v60, %v2420_v57  ;;  %v1261_v28 = vunpack.c.l.b16 %v733_v8  ;;  %v1262_v55 = vunpack.c.l.b16 %v734_v10  ;;  %v1412_v25 = vpack.c.b16 %v1198_v45, %v1197_v13 }
 0x14d   :  { %v1476_v10 = vpack.c.b16 %v1326_v36, %v1325_v16  ;;  %v609_v13 = vpack.c.bf16 %v353_v35, %v353_v35  ;;  %v610_v12 = vpack.c.bf16 %v354_v43, %v354_v43  ;;  %v543_v16 = vmul.f32 %v4390_v18, %v4544_v59 }
 0x14e   :  { %3948 = vst [vmem:[#allocation11 + $0x100] sm:$0xff] %v3426_v6   ;;  %v1694_v11 = vpop.f32.mrf.mxu0  ;;  %v1444_v3 = vpack.c.b16 %v1262_v55, %v1261_v28  ;;  %v672_v28 = vpack.c.bf16 %v416_v34, %v416_v34  ;;  %v479_v55 = vmul.f32 %v4390_v18, %v4540_v50  ;;  %v544_v36 = vmul.f32 %v4392_v22, %v4544_v59 }
 0x14f   :  { %v2164_v2 = vpop.f32.mrf.mxu3  ;;  %v2360_v45 = vadd.f32 %v4595_v47, %v1694_v11 }
 0x150   :  { %v2006_v33 = vpop.f32.mrf.mxu2  ;;  %v2548_v60 = vadd.f32 %v4530_v41, %v2164_v2  ;;  %v800_v34 = vpack.c.bf16 %v544_v36, %v544_v36 }
 0x151   :  { %1733 = vmatmul.bf16.gmra.mxu0 %v1381_v53  ;;  %v1849_v27 = vpop.f32.mrf.mxu1  ;;  %v2485_v49 = vadd.f32 %v4532_v44, %v2006_v33  ;;  %v480_v33 = vmul.f32 %v4392_v22, %v4540_v50 }
 0x152   :  { %v2422_v35 = vadd.f32 %v4567_v7, %v1849_v27  ;;  %v1200_v27 = vunpack.c.l.b16 %v672_v28 }
 0x153   :  { %v3586_v31 = vpack.c.bf16 %v2485_v49, %v2484_v32  ;;  %v1137_v32 = vunpack.c.l.b16 %v609_v13  ;;  %v1138_v49 = vunpack.c.l.b16 %v610_v12 }
 0x154   :  { %1888 = vmatmul.bf16.gmra.mxu1 %v1412_v25 }
 0x155   :  { %3980 = vst [vmem:[#allocation11 + $0x200] sm:$0xff] %v3586_v31   ;;  %2048 = vmatmul.bf16.gmra.mxu2 %v1444_v3  ;;  %v1199_v31 = vunpack.c.l.b16 %v671_v24  ;;  %v799_v3 = vpack.c.bf16 %v543_v16, %v543_v16 }
 0x156   :  { %v1696_v6 = vpop.f32.mrf.mxu0 }
 0x157   :  { %v2166_v57 = vpop.f32.mrf.mxu3  ;;  %v2361_v2 = vadd.f32 %v4598_v51, %v1696_v6  ;;  %v1382_v6 = vpack.c.b16 %v1138_v49, %v1137_v32  ;;  %v1413_v12 = vpack.c.b16 %v1200_v27, %v1199_v31  ;;  %v417_v49 = vmul.f32 %v4410_v4, %v4528_v26 }
 0x158   :  { %v2549_v63 = vadd.f32 %v4532_v44, %v2166_v57  ;;  %v2009_v11 = vpop.f32.mrf.mxu2 }
 0x159   :  { %v3276_v53 = vpack.c.bf16 %v2361_v2, %v2360_v45  ;;  %v1851_v15 = vpop.f32.mrf.mxu1  ;;  %v2486_v24 = vadd.f32 %v4567_v7, %v2009_v11  ;;  %v418_v11 = vmul.f32 %v4412_v5, %v4528_v26 }
 0x15a   :  { %v3746_v8 = vpack.c.bf16 %v2549_v63, %v2548_v60  ;;  %v2423_v25 = vadd.f32 %v4570_v9, %v1851_v15  ;;  %v735_v60 = vpack.c.bf16 %v479_v55, %v479_v55  ;;  %v736_v63 = vpack.c.bf16 %v480_v33, %v480_v33 }
 0x15b   :  { %3918 = vst [vmem:[#allocation11 + $0x10] sm:$0xff] %v3276_v53   ;;  %v355_v53 = vmul.f32 %v4430_v54, %v4508_v14  ;;  %v1327_v15 = vunpack.c.l.b16 %v799_v3  ;;  %v1328_v55 = vunpack.c.l.b16 %v800_v34  ;;  %v356_v33 = vmul.f32 %v4432_v56, %v4508_v14 }
 0x15c   :  { %4012 = vst [vmem:[#allocation11 + $0x300] sm:$0xff] %v3746_v8   ;;  %2208 = vmatmul.bf16.gmra.mxu3 %v1476_v10  ;;  %v3431_v57 = vpack.c.bf16 %v2423_v25, %v2422_v35  ;;  %v3912_v8 = vld [vmem:[#allocation10 + $0x18] sm:$0xff]   ;;  %v1263_v45 = vunpack.c.l.b16 %v735_v60  ;;  %v1264_v2 = vunpack.c.l.b16 %v736_v63 }
 0x15d   :  { %v4623_v28 = vunpack.c.l.bf16 %v3912_v8  ;;  %v4626_v25 = vunpack.c.h.bf16 %v3912_v8  ;;  %v1477_v27 = vpack.c.b16 %v1328_v55, %v1327_v15  ;;  %v611_v3 = vpack.c.bf16 %v355_v53, %v355_v53 }
 0x15e   :  { %3949 = vst [vmem:[#allocation11 + $0x108] sm:$0xff] %v3431_v57   ;;  %v1699_v0 = vpop.f32.mrf.mxu0  ;;  %v1445_v60 = vpack.c.b16 %v1264_v2, %v1263_v45  ;;  %v673_v8 = vpack.c.bf16 %v417_v49, %v417_v49  ;;  %v674_v45 = vpack.c.bf16 %v418_v11, %v418_v11  ;;  %v481_v2 = vmul.f32 %v4410_v4, %v4540_v50 }
 0x15f   :  { %v2169_v43 = vpop.f32.mrf.mxu3  ;;  %v2362_v34 = vadd.f32 %v4623_v28, %v1699_v0  ;;  %v482_v15 = vmul.f32 %v4412_v5, %v4540_v50 }
 0x160   :  { %v2011_v13 = vpop.f32.mrf.mxu2  ;;  %v2550_v36 = vadd.f32 %v4567_v7, %v2169_v43  ;;  %v737_v49 = vpack.c.bf16 %v481_v2, %v481_v2  ;;  %v1201_v11 = vunpack.c.l.b16 %v673_v8 }
 0x161   :  { %1738 = vmatmul.bf16.gmra.mxu0 %v1382_v6  ;;  %v1854_v10 = vpop.f32.mrf.mxu1  ;;  %v2487_v35 = vadd.f32 %v4570_v9, %v2011_v13  ;;  %v612_v6 = vpack.c.bf16 %v356_v33, %v356_v33  ;;  %v545_v33 = vmul.f32 %v4410_v4, %v4544_v59 }
 0x162   :  { %v2424_v53 = vadd.f32 %v4595_v47, %v1854_v10  ;;  %v1202_v10 = vunpack.c.l.b16 %v674_v45 }
 0x163   :  { %v3591_v57 = vpack.c.bf16 %v2487_v35, %v2486_v24  ;;  %v546_v24 = vmul.f32 %v4412_v5, %v4544_v59 }
 0x164   :  { %1893 = vmatmul.bf16.gmra.mxu1 %v1413_v12 }
 0x165   :  { %3981 = vst [vmem:[#allocation11 + $0x208] sm:$0xff] %v3591_v57   ;;  %2053 = vmatmul.bf16.gmra.mxu2 %v1445_v60  ;;  %v738_v57 = vpack.c.bf16 %v482_v15, %v482_v15  ;;  %v358_v15 = vmul.f32 %v4452_v39, %v4508_v14 }
 0x166   :  { %v1701_v63 = vpop.f32.mrf.mxu0 }
 0x167   :  { %v2171_v16 = vpop.f32.mrf.mxu3  ;;  %v2363_v43 = vadd.f32 %v4626_v25, %v1701_v63  ;;  %v801_v63 = vpack.c.bf16 %v545_v33, %v545_v33  ;;  %v1266_v21 = vunpack.c.l.b16 %v738_v57 }
 0x168   :  { %v2551_v32 = vadd.f32 %v4570_v9, %v2171_v16  ;;  %v2014_v0 = vpop.f32.mrf.mxu2  ;;  %v1139_v16 = vunpack.c.l.b16 %v611_v3 }
 0x169   :  { %v3281_v13 = vpack.c.bf16 %v2363_v43, %v2362_v34  ;;  %v1856_v12 = vpop.f32.mrf.mxu1  ;;  %v3913_v34 = vld [vmem:[#allocation10 + $0x20] sm:$0xff]   ;;  %v2488_v8 = vadd.f32 %v4595_v47, %v2014_v0  ;;  %v420_v0 = vmul.f32 %v4432_v56, %v4528_v26 }
 0x16a   :  { %v3751_v31 = vpack.c.bf16 %v2551_v32, %v2550_v36  ;;  %v2425_v55 = vadd.f32 %v4598_v51, %v1856_v12  ;;  %v1140_v36 = vunpack.c.l.b16 %v612_v6  ;;  %v1265_v12 = vunpack.c.l.b16 %v737_v49 }
 0x16b   :  { %3919 = vst [vmem:[#allocation11 + $0x18] sm:$0xff] %v3281_v13   ;;  %v357_v13 = vmul.f32 %v4450_v38, %v4508_v14  ;;  %v1414_v6 = vpack.c.b16 %v1202_v10, %v1201_v11  ;;  %v4651_v45 = vunpack.c.l.bf16 %v3913_v34  ;;  %v4654_v33 = vunpack.c.h.bf16 %v3913_v34 }
 0x16c   :  { %4013 = vst [vmem:[#allocation11 + $0x308] sm:$0xff] %v3751_v31   ;;  %2213 = vmatmul.bf16.gmra.mxu3 %v1477_v27  ;;  %v3436_v32 = vpack.c.bf16 %v2425_v55, %v2424_v53  ;;  %v802_v31 = vpack.c.bf16 %v546_v24, %v546_v24  ;;  %v1383_v27 = vpack.c.b16 %v1140_v36, %v1139_v16  ;;  %v1329_v53 = vunpack.c.l.b16 %v801_v63 }
 0x16d   :  { %v1446_v57 = vpack.c.b16 %v1266_v21, %v1265_v12  ;;  %v614_v34 = vpack.c.bf16 %v358_v15, %v358_v15  ;;  %v676_v21 = vpack.c.bf16 %v420_v0, %v420_v0  ;;  %v483_v12 = vmul.f32 %v4430_v54, %v4540_v50 }
 0x16e   :  { %3950 = vst [vmem:[#allocation11 + $0x110] sm:$0xff] %v3436_v32   ;;  %v1704_v60 = vpop.f32.mrf.mxu0  ;;  %v1330_v2 = vunpack.c.l.b16 %v802_v31  ;;  %v419_v32 = vmul.f32 %v4430_v54, %v4528_v26  ;;  %v613_v31 = vpack.c.bf16 %v357_v13, %v357_v13  ;;  %v547_v15 = vmul.f32 %v4430_v54, %v4544_v59 }
 0x16f   :  { %v2174_v35 = vpop.f32.mrf.mxu3 }
 0x170   :  { %v2016_v3 = vpop.f32.mrf.mxu2  ;;  %v2552_v16 = vadd.f32 %v4595_v47, %v2174_v35  ;;  %v1478_v63 = vpack.c.b16 %v1330_v2, %v1329_v53  ;;  %v484_v53 = vmul.f32 %v4432_v56, %v4540_v50 }
 0x171   :  { %1743 = vmatmul.bf16.gmra.mxu0 %v1383_v27  ;;  %v1859_v43 = vpop.f32.mrf.mxu1  ;;  %v2489_v55 = vadd.f32 %v4598_v51, %v2016_v3  ;;  %v2364_v27 = vadd.f32 %v4651_v45, %v1704_v60  ;;  %v675_v3 = vpack.c.bf16 %v419_v32, %v419_v32 }
 0x172   :  { %v2426_v13 = vadd.f32 %v4623_v28, %v1859_v43  ;;  %v1204_v43 = vunpack.c.l.b16 %v676_v21 }
 0x173   :  { %v3596_v49 = vpack.c.bf16 %v2489_v55, %v2488_v8  ;;  %v548_v55 = vmul.f32 %v4432_v56, %v4544_v59 }
 0x174   :  { %1898 = vmatmul.bf16.gmra.mxu1 %v1414_v6 }
 0x175   :  { %3982 = vst [vmem:[#allocation11 + $0x210] sm:$0xff] %v3596_v49   ;;  %2058 = vmatmul.bf16.gmra.mxu2 %v1446_v57  ;;  %v739_v49 = vpack.c.bf16 %v483_v12, %v483_v12  ;;  %v740_v57 = vpack.c.bf16 %v484_v53, %v484_v53  ;;  %v360_v53 = vmul.f32 %v4472_v30, %v4508_v14 }
 0x176   :  { %v1706_v11 = vpop.f32.mrf.mxu0 }
 0x177   :  { %v2176_v24 = vpop.f32.mrf.mxu3  ;;  %v2365_v35 = vadd.f32 %v4654_v33, %v1706_v11  ;;  %v1203_v11 = vunpack.c.l.b16 %v675_v3  ;;  %v1267_v61 = vunpack.c.l.b16 %v739_v49  ;;  %v1268_v52 = vunpack.c.l.b16 %v740_v57 }
 0x178   :  { %v2553_v36 = vadd.f32 %v4598_v51, %v2176_v24  ;;  %v2019_v60 = vpop.f32.mrf.mxu2  ;;  %v421_v57 = vmul.f32 %v4450_v38, %v4528_v26 }
 0x179   :  { %v3286_v6 = vpack.c.bf16 %v2365_v35, %v2364_v27  ;;  %v1861_v8 = vpop.f32.mrf.mxu1  ;;  %v3914_v35 = vld [vmem:[#allocation10 + $0x28] sm:$0xff]   ;;  %v2490_v3 = vadd.f32 %v4623_v28, %v2019_v60  ;;  %v1447_v49 = vpack.c.b16 %v1268_v52, %v1267_v61  ;;  %v422_v60 = vmul.f32 %v4452_v39, %v4528_v26 }
 0x17a   :  { %v3756_v10 = vpack.c.bf16 %v2553_v36, %v2552_v16  ;;  %v2427_v2 = vadd.f32 %v4626_v25, %v1861_v8  ;;  %v1141_v16 = vunpack.c.l.b16 %v613_v31  ;;  %v1142_v36 = vunpack.c.l.b16 %v614_v34 }
 0x17b   :  { %3920 = vst [vmem:[#allocation11 + $0x20] sm:$0xff] %v3286_v6   ;;  %v359_v6 = vmul.f32 %v4470_v29, %v4508_v14  ;;  %v1415_v34 = vpack.c.b16 %v1204_v43, %v1203_v11  ;;  %v4679_v21 = vunpack.c.l.bf16 %v3914_v35  ;;  %v485_v52 = vmul.f32 %v4450_v38, %v4540_v50 }
 0x17c   :  { %4014 = vst [vmem:[#allocation11 + $0x310] sm:$0xff] %v3756_v10   ;;  %2218 = vmatmul.bf16.gmra.mxu3 %v1478_v63  ;;  %v3441_v32 = vpack.c.bf16 %v2427_v2, %v2426_v13  ;;  %v803_v10 = vpack.c.bf16 %v547_v15, %v547_v15  ;;  %v804_v63 = vpack.c.bf16 %v548_v55, %v548_v55  ;;  %v4682_v15 = vunpack.c.h.bf16 %v3914_v35 }
 0x17d   :  { %v1384_v27 = vpack.c.b16 %v1142_v36, %v1141_v16  ;;  %v616_v35 = vpack.c.bf16 %v360_v53, %v360_v53  ;;  %v549_v53 = vmul.f32 %v4450_v38, %v4544_v59  ;;  %v3915_v38 = vld [vmem:[#allocation10 + $0x30] sm:$0xff]  }
 0x17e   :  { %3951 = vst [vmem:[#allocation11 + $0x118] sm:$0xff] %v3441_v32   ;;  %v1709_v0 = vpop.f32.mrf.mxu0  ;;  %v1331_v13 = vunpack.c.l.b16 %v803_v10  ;;  %v1332_v12 = vunpack.c.l.b16 %v804_v63  ;;  %v615_v63 = vpack.c.bf16 %v359_v6, %v359_v6 }
 0x17f   :  { %v2179_v24 = vpop.f32.mrf.mxu3 }
 0x180   :  { %v2021_v31 = vpop.f32.mrf.mxu2  ;;  %v2554_v16 = vadd.f32 %v4623_v28, %v2179_v24  ;;  %v1479_v10 = vpack.c.b16 %v1332_v12, %v1331_v13  ;;  %v486_v13 = vmul.f32 %v4452_v39, %v4540_v50 }
 0x181   :  { %1748 = vmatmul.bf16.gmra.mxu0 %v1384_v27  ;;  %v1864_v8 = vpop.f32.mrf.mxu1  ;;  %v2491_v2 = vadd.f32 %v4626_v25, %v2021_v31  ;;  %v2366_v27 = vadd.f32 %v4679_v21, %v1709_v0 }
 0x182   :  { %v2428_v6 = vadd.f32 %v4651_v45, %v1864_v8 }
 0x183   :  { %v3601_v32 = vpack.c.bf16 %v2491_v2, %v2490_v3  ;;  %v678_v3 = vpack.c.bf16 %v422_v60, %v422_v60  ;;  %v550_v2 = vmul.f32 %v4452_v39, %v4544_v59  ;;  %v742_v60 = vpack.c.bf16 %v486_v13, %v486_v13 }
 0x184   :  { %1903 = vmatmul.bf16.gmra.mxu1 %v1415_v34  ;;  %v677_v34 = vpack.c.bf16 %v421_v57, %v421_v57  ;;  %v741_v57 = vpack.c.bf16 %v485_v52, %v485_v52 }
 0x185   :  { %3983 = vst [vmem:[#allocation11 + $0x218] sm:$0xff] %v3601_v32   ;;  %2063 = vmatmul.bf16.gmra.mxu2 %v1447_v49  ;;  %v3148_v32 = vpack.i.b16 %v4302_v19, %v4302_v19 }
 0x186   :  { %v1711_v11 = vpop.f32.mrf.mxu0  ;;  %v1269_v39 = vunpack.c.l.b16 %v741_v57  ;;  %v423_v57 = vmul.f32 %v4470_v29, %v4528_v26 }
 0x187   :  { %v2181_v55 = vpop.f32.mrf.mxu3  ;;  %v2367_v24 = vadd.f32 %v4682_v15, %v1711_v11  ;;  %v1205_v11 = vunpack.c.l.b16 %v677_v34  ;;  %v362_v34 = vmul.f32 %v4350_v1, %v4508_v14 }
 0x188   :  { %v2555_v36 = vadd.f32 %v4626_v25, %v2181_v55  ;;  %v2024_v0 = vpop.f32.mrf.mxu2 }
 0x189   :  { %v3291_v61 = vpack.c.bf16 %v2367_v24, %v2366_v27  ;;  %v1866_v31 = vpop.f32.mrf.mxu1  ;;  %v806_v27 = vpack.c.bf16 %v550_v2, %v550_v2  ;;  %v4712_v2 = vunpack.c.h.bf16 %v3915_v38 }
 0x18a   :  { %v3761_v43 = vpack.c.bf16 %v2555_v36, %v2554_v16  ;;  %v2429_v12 = vadd.f32 %v4654_v33, %v1866_v31  ;;  %v1143_v16 = vunpack.c.l.b16 %v615_v63  ;;  %v1144_v36 = vunpack.c.l.b16 %v616_v35 }
 0x18b   :  { %3921 = vst [vmem:[#allocation11 + $0x28] sm:$0xff] %v3291_v61   ;;  %v221_v31 = vperm.slane %v3148_v32, 0  ;;  %v1270_v63 = vunpack.c.l.b16 %v742_v60  ;;  %v361_v35 = vmul.f32 %v4342_v58, %v4508_v14  ;;  %v1334_v13 = vunpack.c.l.b16 %v806_v27 }
 0x18c   :  { %4015 = vst [vmem:[#allocation11 + $0x318] sm:$0xff] %v3761_v43   ;;  %2223 = vmatmul.bf16.gmra.mxu3 %v1479_v10  ;;  %v3446_v49 = vpack.c.bf16 %v2429_v12, %v2428_v6  ;;  %v1206_v43 = vunpack.c.l.b16 %v678_v3  ;;  %v805_v10 = vpack.c.bf16 %v549_v53, %v549_v53  ;;  %v1385_v24 = vpack.c.b16 %v1144_v36, %v1143_v16 }
 0x18d   :  { %v2492_v3 = vadd.f32 %v4651_v45, %v2024_v0  ;;  %v4709_v12 = vunpack.c.l.bf16 %v3915_v38  ;;  %v244_v36 = vpack.i.b16 %v221_v31, %v221_v31  ;;  %v1448_v14 = vpack.c.b16 %v1270_v63, %v1269_v39 }
 0x18e   :  { %3952 = vst [vmem:[#allocation11 + $0x120] sm:$0xff] %v3446_v49   ;;  %v1714_v8 = vpop.f32.mrf.mxu0  ;;  %v1416_v6 = vpack.c.b16 %v1206_v43, %v1205_v11  ;;  %v1333_v52 = vunpack.c.l.b16 %v805_v10  ;;  %v617_v10 = vpack.c.bf16 %v361_v35, %v361_v35  ;;  %v424_v38 = vmul.f32 %v4472_v30, %v4528_v26 }
 0x18f   :  { %v2184_v55 = vpop.f32.mrf.mxu3  ;;  %v2368_v27 = vadd.f32 %v4709_v12, %v1714_v8  ;;  %v246_v31 = vperm.slane %v244_v36, 0  ;;  %v487_v63 = vmul.f32 %v4470_v29, %v4540_v50  ;;  %v488_v35 = vmul.f32 %v4472_v30, %v4540_v50 }
 0x190   :  { %v2026_v19 = vpop.f32.mrf.mxu2  ;;  %v2556_v32 = vadd.f32 %v4651_v45, %v2184_v55  ;;  %v1480_v43 = vpack.c.b16 %v1334_v13, %v1333_v52  ;;  %v551_v8 = vmul.f32 %v4470_v29, %v4544_v59  ;;  %v1145_v36 = vunpack.c.l.b16 %v617_v10 }
 0x191   :  { %1753 = vmatmul.bf16.gmra.mxu0 %v1385_v24  ;;  %v1869_v61 = vpop.f32.mrf.mxu1  ;;  %v2493_v53 = vadd.f32 %v4654_v33, %v2026_v19  ;;  %v618_v24 = vpack.c.bf16 %v362_v34, %v362_v34  ;;  %v679_v19 = vpack.c.bf16 %v423_v57, %v423_v57  ;;  %v3150_v57 = vpack.i.b16 %v4304_v20, %v4304_v20 }
 0x192   :  { %v2430_v52 = vadd.f32 %v4679_v21, %v1869_v61 }
 0x193   :  { %v3606_v60 = vpack.c.bf16 %v2493_v53, %v2492_v3  ;;  %v680_v3 = vpack.c.bf16 %v424_v38, %v424_v38  ;;  %v552_v53 = vmul.f32 %v4472_v30, %v4544_v59  ;;  %v807_v38 = vpack.c.bf16 %v551_v8, %v551_v8 }
 0x194   :  { %1908 = vmatmul.bf16.gmra.mxu1 %v1416_v6  ;;  %v225_v10 = vperm.slane %v3150_v57, 0  ;;  %v425_v57 = vmul.f32 %v4342_v58, %v4528_v26 }
 0x195   :  { %3984 = vst [vmem:[#allocation11 + $0x220] sm:$0xff] %v3606_v60   ;;  %2068 = vmatmul.bf16.gmra.mxu2 %v1448_v14  ;;  %v4734_v60 = vunpack.c.l.bf16 %v246_v31  ;;  %v743_v14 = vpack.c.bf16 %v487_v63, %v487_v63 }
 0x196   :  { %v1716_v11 = vpop.f32.mrf.mxu0 }
 0x197   :  { %v2186_v16 = vpop.f32.mrf.mxu3  ;;  %v2369_v55 = vadd.f32 %v4712_v2, %v1716_v11  ;;  %v744_v11 = vpack.c.bf16 %v488_v35, %v488_v35  ;;  %v363_v35 = vmul.f32 %v4313_v37, %v4734_v60 }
 0x198   :  { %v2557_v49 = vadd.f32 %v4654_v33, %v2186_v16  ;;  %v2029_v13 = vpop.f32.mrf.mxu2 }
 0x199   :  { %v3296_v6 = vpack.c.bf16 %v2369_v55, %v2368_v27  ;;  %v1871_v39 = vpop.f32.mrf.mxu1  ;;  %v808_v27 = vpack.c.bf16 %v552_v53, %v552_v53  ;;  %v2494_v8 = vadd.f32 %v4679_v21, %v2029_v13  ;;  %v364_v53 = vmul.f32 %v4317_v42, %v4734_v60 }
 0x19a   :  { %v3766_v0 = vpack.c.bf16 %v2557_v49, %v2556_v32  ;;  %v2431_v34 = vadd.f32 %v4682_v15, %v1871_v39  ;;  %v1146_v32 = vunpack.c.l.b16 %v618_v24  ;;  %v1271_v39 = vunpack.c.l.b16 %v743_v14 }
 0x19b   :  { %3922 = vst [vmem:[#allocation11 + $0x30] sm:$0xff] %v3296_v6   ;;  %v4737_v6 = vrot.slane %v4324_v46, 3  ;;  %v1336_v63 = vunpack.c.l.b16 %v808_v27 }
 0x19c   :  { %4016 = vst [vmem:[#allocation11 + $0x320] sm:$0xff] %v3766_v0   ;;  %2228 = vmatmul.bf16.gmra.mxu3 %v1480_v43  ;;  %v3451_v49 = vpack.c.bf16 %v2431_v34, %v2430_v52  ;;  %v1207_v0 = vunpack.c.l.b16 %v679_v19  ;;  %v1208_v43 = vunpack.c.l.b16 %v680_v3  ;;  %v1386_v55 = vpack.c.b16 %v1146_v32, %v1145_v36 }
 0x19d   :  { %v1272_v52 = vunpack.c.l.b16 %v744_v11  ;;  %v1335_v34 = vunpack.c.l.b16 %v807_v38  ;;  %v3152_v19 = vpack.i.b16 %v4329_v48, %v4329_v48  ;;  %v3154_v36 = vpack.i.b16 %v4737_v6, %v4737_v6 }
 0x19e   :  { %3953 = vst [vmem:[#allocation11 + $0x128] sm:$0xff] %v3451_v49   ;;  %v1719_v61 = vpop.f32.mrf.mxu0  ;;  %v1417_v31 = vpack.c.b16 %v1208_v43, %v1207_v0  ;;  %v619_v43 = vpack.c.bf16 %v363_v35, %v363_v35  ;;  %v426_v38 = vmul.f32 %v4350_v1, %v4528_v26  ;;  %v490_v26 = vmul.f32 %v4350_v1, %v4540_v50 }
 0x19f   :  { %v2189_v16 = vpop.f32.mrf.mxu3  ;;  %v1449_v14 = vpack.c.b16 %v1272_v52, %v1271_v39  ;;  %v1481_v0 = vpack.c.b16 %v1336_v63, %v1335_v34  ;;  %v2370_v27 = vadd.f32 %v4546_v40, %v1719_v61  ;;  %v681_v39 = vpack.c.bf16 %v425_v57, %v425_v57 }
 0x1a0   :  { %v2031_v20 = vpop.f32.mrf.mxu2  ;;  %v2558_v32 = vadd.f32 %v4679_v21, %v2189_v16  ;;  %v489_v34 = vmul.f32 %v4342_v58, %v4540_v50  ;;  %v553_v61 = vmul.f32 %v4342_v58, %v4544_v59 }
 0x1a1   :  { %1758 = vmatmul.bf16.gmra.mxu0 %v1386_v55  ;;  %v1874_v24 = vpop.f32.mrf.mxu1  ;;  %v2495_v46 = vadd.f32 %v4682_v15, %v2031_v20  ;;  %v620_v55 = vpack.c.bf16 %v364_v53, %v364_v53  ;;  %v260_v20 = vpack.i.b16 %v225_v10, %v225_v10 }
 0x1a2   :  { %v2432_v63 = vadd.f32 %v4709_v12, %v1874_v24  ;;  %v1209_v24 = vunpack.c.l.b16 %v681_v39 }
 0x1a3   :  { %v3611_v48 = vpack.c.bf16 %v2495_v46, %v2494_v8  ;;  %v554_v46 = vmul.f32 %v4350_v1, %v4544_v59 }
 0x1a4   :  { %1913 = vmatmul.bf16.gmra.mxu1 %v1417_v31  ;;  %v229_v31 = vperm.slane %v3152_v19, 0  ;;  %v682_v19 = vpack.c.bf16 %v426_v38, %v426_v38 }
 0x1a5   :  { %3985 = vst [vmem:[#allocation11 + $0x228] sm:$0xff] %v3611_v48   ;;  %2073 = vmatmul.bf16.gmra.mxu2 %v1449_v14  ;;  %v745_v14 = vpack.c.bf16 %v489_v34, %v489_v34 }
 0x1a6   :  { %v1721_v13 = vpop.f32.mrf.mxu0  ;;  %v276_v48 = vpack.i.b16 %v229_v31, %v229_v31 }
 0x1a7   :  { %v2191_v3 = vpop.f32.mrf.mxu3  ;;  %v2371_v16 = vadd.f32 %v4548_v62, %v1721_v13  ;;  %v746_v13 = vpack.c.bf16 %v490_v26, %v490_v26  ;;  %v365_v26 = vmul.f32 %v4356_v17, %v4734_v60 }
 0x1a8   :  { %v2559_v49 = vadd.f32 %v4682_v15, %v2191_v3  ;;  %v233_v3 = vperm.slane %v3154_v36, 0  ;;  %v2034_v35 = vpop.f32.mrf.mxu2  ;;  %v1147_v36 = vunpack.c.l.b16 %v619_v43  ;;  %v278_v59 = vperm.slane %v276_v48, 0 }
 0x1a9   :  { %v3301_v52 = vpack.c.bf16 %v2371_v16, %v2370_v27  ;;  %v1876_v8 = vpop.f32.mrf.mxu1  ;;  %v809_v27 = vpack.c.bf16 %v553_v61, %v553_v61  ;;  %v810_v16 = vpack.c.bf16 %v554_v46, %v554_v46  ;;  %v2496_v39 = vadd.f32 %v4709_v12, %v2034_v35 }
 0x1aa   :  { %v3771_v11 = vpack.c.bf16 %v2559_v49, %v2558_v32  ;;  %v2433_v10 = vadd.f32 %v4712_v2, %v1876_v8  ;;  %v1148_v32 = vunpack.c.l.b16 %v620_v55  ;;  %v262_v49 = vperm.slane %v260_v20, 0 }
 0x1ab   :  { %3923 = vst [vmem:[#allocation11 + $0x38] sm:$0xff] %v3301_v52   ;;  %v292_v50 = vpack.i.b16 %v233_v3, %v233_v3  ;;  %v1273_v55 = vunpack.c.l.b16 %v745_v14  ;;  %v1274_v20 = vunpack.c.l.b16 %v746_v13  ;;  %v1337_v3 = vunpack.c.l.b16 %v809_v27 }
 0x1ac   :  { %4017 = vst [vmem:[#allocation11 + $0x328] sm:$0xff] %v3771_v11   ;;  %2233 = vmatmul.bf16.gmra.mxu3 %v1481_v0  ;;  %v3456_v57 = vpack.c.bf16 %v2433_v10, %v2432_v63  ;;  %v1210_v0 = vunpack.c.l.b16 %v682_v19  ;;  %v1387_v38 = vpack.c.b16 %v1148_v32, %v1147_v36  ;;  %v4767_v8 = vunpack.c.l.bf16 %v262_v49 }
 0x1ad   :  { %v294_v52 = vperm.slane %v292_v50, 0  ;;  %v1338_v34 = vunpack.c.l.b16 %v810_v16  ;;  %v366_v19 = vmul.f32 %v4360_v23, %v4734_v60  ;;  %v4779_v49 = vunpack.c.l.bf16 %v278_v59 }
 0x1ae   :  { %3954 = vst [vmem:[#allocation11 + $0x130] sm:$0xff] %v3456_v57   ;;  %v1724_v11 = vpop.f32.mrf.mxu0  ;;  %v1418_v31 = vpack.c.b16 %v1210_v0, %v1209_v24  ;;  %v427_v32 = vmul.f32 %v4313_v37, %v4767_v8  ;;  %v1450_v48 = vpack.c.b16 %v1274_v20, %v1273_v55  ;;  %v428_v35 = vmul.f32 %v4317_v42, %v4767_v8 }
 0x1af   :  { %v2194_v53 = vpop.f32.mrf.mxu3  ;;  %v4783_v50 = vunpack.c.l.bf16 %v294_v52  ;;  %v1482_v24 = vpack.c.b16 %v1338_v34, %v1337_v3  ;;  %v621_v0 = vpack.c.bf16 %v365_v26, %v365_v26  ;;  %v622_v16 = vpack.c.bf16 %v366_v19, %v366_v19 }
 0x1b0   :  { %v2036_v63 = vpop.f32.mrf.mxu2  ;;  %v2560_v46 = vadd.f32 %v4709_v12, %v2194_v53  ;;  %v2372_v53 = vadd.f32 %v4530_v41, %v1724_v11  ;;  %v684_v20 = vpack.c.bf16 %v428_v35, %v428_v35  ;;  %v491_v52 = vmul.f32 %v4313_v37, %v4779_v49 }
 0x1b1   :  { %1763 = vmatmul.bf16.gmra.mxu0 %v1387_v38  ;;  %v1879_v43 = vpop.f32.mrf.mxu1  ;;  %v2497_v61 = vadd.f32 %v4712_v2, %v2036_v63  ;;  %v683_v38 = vpack.c.bf16 %v427_v32, %v427_v32  ;;  %v492_v63 = vmul.f32 %v4317_v42, %v4779_v49  ;;  %v555_v34 = vmul.f32 %v4313_v37, %v4783_v50 }
 0x1b2   :  { %v556_v26 = vmul.f32 %v4317_v42, %v4783_v50 }
 0x1b3   :  { %v3616_v57 = vpack.c.bf16 %v2497_v61, %v2496_v39  ;;  %v1149_v61 = vunpack.c.l.b16 %v621_v0  ;;  %v367_v0 = vmul.f32 %v4390_v18, %v4734_v60 }
 0x1b4   :  { %1918 = vmatmul.bf16.gmra.mxu1 %v1418_v31  ;;  %v2434_v31 = vadd.f32 %v4546_v40, %v1879_v43  ;;  %v1212_v43 = vunpack.c.l.b16 %v684_v20  ;;  %v812_v35 = vpack.c.bf16 %v556_v26, %v556_v26  ;;  %v368_v20 = vmul.f32 %v4392_v22, %v4734_v60 }
 0x1b5   :  { %3986 = vst [vmem:[#allocation11 + $0x230] sm:$0xff] %v3616_v57   ;;  %2078 = vmatmul.bf16.gmra.mxu2 %v1450_v48  ;;  %v1211_v57 = vunpack.c.l.b16 %v683_v38  ;;  %v811_v48 = vpack.c.bf16 %v555_v34, %v555_v34 }
 0x1b6   :  { %v1726_v14 = vpop.f32.mrf.mxu0  ;;  %v1340_v42 = vunpack.c.l.b16 %v812_v35 }
 0x1b7   :  { %v2196_v10 = vpop.f32.mrf.mxu3  ;;  %v2373_v27 = vadd.f32 %v4532_v44, %v1726_v14 }
 0x1b8   :  { %v2561_v36 = vadd.f32 %v4712_v2, %v2196_v10  ;;  %v2039_v11 = vpop.f32.mrf.mxu2  ;;  %v1150_v10 = vunpack.c.l.b16 %v622_v16 }
 0x1b9   :  { %v3306_v59 = vpack.c.bf16 %v2373_v27, %v2372_v53  ;;  %v1881_v55 = vpop.f32.mrf.mxu1  ;;  %v2498_v16 = vadd.f32 %v4546_v40, %v2039_v11 }
 0x1ba   :  { %v3776_v13 = vpack.c.bf16 %v2561_v36, %v2560_v46  ;;  %v2435_v3 = vadd.f32 %v4548_v62, %v1881_v55  ;;  %v747_v46 = vpack.c.bf16 %v491_v52, %v491_v52  ;;  %v748_v36 = vpack.c.bf16 %v492_v63, %v492_v63 }
 0x1bb   :  { %3924 = vst [vmem:[#allocation11 + $0x40] sm:$0xff] %v3306_v59   ;;  %v1388_v14 = vpack.c.b16 %v1150_v10, %v1149_v61  ;;  %v1419_v55 = vpack.c.b16 %v1212_v43, %v1211_v57  ;;  %v1339_v59 = vunpack.c.l.b16 %v811_v48  ;;  %v430_v61 = vmul.f32 %v4360_v23, %v4767_v8 }
 0x1bc   :  { %4018 = vst [vmem:[#allocation11 + $0x330] sm:$0xff] %v3776_v13   ;;  %2238 = vmatmul.bf16.gmra.mxu3 %v1482_v24  ;;  %v3461_v19 = vpack.c.bf16 %v2435_v3, %v2434_v31  ;;  %v1275_v24 = vunpack.c.l.b16 %v747_v46  ;;  %v1276_v53 = vunpack.c.l.b16 %v748_v36  ;;  %v429_v3 = vmul.f32 %v4356_v17, %v4767_v8 }
 0x1bd   :  { %v623_v46 = vpack.c.bf16 %v367_v0, %v367_v0  ;;  %v624_v57 = vpack.c.bf16 %v368_v20, %v368_v20 }
 0x1be   :  { %3955 = vst [vmem:[#allocation11 + $0x138] sm:$0xff] %v3461_v19   ;;  %v1729_v32 = vpop.f32.mrf.mxu0  ;;  %v1451_v26 = vpack.c.b16 %v1276_v53, %v1275_v24  ;;  %v1483_v19 = vpack.c.b16 %v1340_v42, %v1339_v59  ;;  %v685_v43 = vpack.c.bf16 %v429_v3, %v429_v3  ;;  %v493_v24 = vmul.f32 %v4356_v17, %v4779_v49 }
 0x1bf   :  { %v2199_v39 = vpop.f32.mrf.mxu3  ;;  %v2374_v36 = vadd.f32 %v4567_v7, %v1729_v32  ;;  %v494_v42 = vmul.f32 %v4360_v23, %v4779_v49  ;;  %v558_v59 = vmul.f32 %v4360_v23, %v4783_v50 }
 0x1c0   :  { %v2041_v27 = vpop.f32.mrf.mxu2  ;;  %v2562_v63 = vadd.f32 %v4546_v40, %v2199_v39  ;;  %v749_v20 = vpack.c.bf16 %v493_v24, %v493_v24  ;;  %v1213_v3 = vunpack.c.l.b16 %v685_v43 }
 0x1c1   :  { %1768 = vmatmul.bf16.gmra.mxu0 %v1388_v14  ;;  %v1884_v13 = vpop.f32.mrf.mxu1  ;;  %v2499_v52 = vadd.f32 %v4548_v62, %v2041_v27  ;;  %v686_v14 = vpack.c.bf16 %v430_v61, %v430_v61 }
 0x1c2   :  { %v2436_v53 = vadd.f32 %v4530_v41, %v1884_v13 }
 0x1c3   :  { %v3621_v34 = vpack.c.bf16 %v2499_v52, %v2498_v16  ;;  %v1151_v16 = vunpack.c.l.b16 %v623_v46  ;;  %v1152_v52 = vunpack.c.l.b16 %v624_v57  ;;  %v1214_v13 = vunpack.c.l.b16 %v686_v14 }
 0x1c4   :  { %1923 = vmatmul.bf16.gmra.mxu1 %v1419_v55  ;;  %v557_v55 = vmul.f32 %v4356_v17, %v4783_v50  ;;  %v369_v46 = vmul.f32 %v4410_v4, %v4734_v60  ;;  %v370_v14 = vmul.f32 %v4412_v5, %v4734_v60 }
 0x1c5   :  { %3987 = vst [vmem:[#allocation11 + $0x238] sm:$0xff] %v3621_v34   ;;  %2083 = vmatmul.bf16.gmra.mxu2 %v1451_v26  ;;  %v814_v26 = vpack.c.bf16 %v558_v59, %v558_v59  ;;  %v1389_v61 = vpack.c.b16 %v1152_v52, %v1151_v16  ;;  %v432_v16 = vmul.f32 %v4392_v22, %v4767_v8 }
 0x1c6   :  { %v1731_v11 = vpop.f32.mrf.mxu0  ;;  %v813_v34 = vpack.c.bf16 %v557_v55, %v557_v55 }
 0x1c7   :  { %v2201_v38 = vpop.f32.mrf.mxu3  ;;  %v2375_v39 = vadd.f32 %v4570_v9, %v1731_v11 }
 0x1c8   :  { %v2563_v31 = vadd.f32 %v4548_v62, %v2201_v38  ;;  %v2044_v32 = vpop.f32.mrf.mxu2 }
 0x1c9   :  { %v3311_v48 = vpack.c.bf16 %v2375_v39, %v2374_v36  ;;  %v1886_v35 = vpop.f32.mrf.mxu1  ;;  %v1420_v39 = vpack.c.b16 %v1214_v13, %v1213_v3  ;;  %v2500_v57 = vadd.f32 %v4530_v41, %v2044_v32  ;;  %v626_v3 = vpack.c.bf16 %v370_v14, %v370_v14 }
 0x1ca   :  { %v3781_v10 = vpack.c.bf16 %v2563_v31, %v2562_v63  ;;  %v2437_v27 = vadd.f32 %v4532_v44, %v1886_v35  ;;  %v750_v63 = vpack.c.bf16 %v494_v42, %v494_v42  ;;  %v1342_v35 = vunpack.c.l.b16 %v814_v26 }
 0x1cb   :  { %3925 = vst [vmem:[#allocation11 + $0x48] sm:$0xff] %v3311_v48   ;;  %v1341_v48 = vunpack.c.l.b16 %v813_v34 }
 0x1cc   :  { %4019 = vst [vmem:[#allocation11 + $0x338] sm:$0xff] %v3781_v10   ;;  %2243 = vmatmul.bf16.gmra.mxu3 %v1483_v19  ;;  %v3466_v38 = vpack.c.bf16 %v2437_v27, %v2436_v53  ;;  %v1277_v10 = vunpack.c.l.b16 %v749_v20  ;;  %v1278_v19 = vunpack.c.l.b16 %v750_v63  ;;  %v431_v27 = vmul.f32 %v4390_v18, %v4767_v8 }
 0x1cd   :  { %v625_v20 = vpack.c.bf16 %v369_v46, %v369_v46 }
 0x1ce   :  { %3956 = vst [vmem:[#allocation11 + $0x140] sm:$0xff] %v3466_v38   ;;  %v1734_v31 = vpop.f32.mrf.mxu0  ;;  %v1452_v59 = vpack.c.b16 %v1278_v19, %v1277_v10  ;;  %v1484_v38 = vpack.c.b16 %v1342_v35, %v1341_v48  ;;  %v687_v13 = vpack.c.bf16 %v431_v27, %v431_v27  ;;  %v495_v10 = vmul.f32 %v4390_v18, %v4779_v49 }
 0x1cf   :  { %v2204_v0 = vpop.f32.mrf.mxu3  ;;  %v2376_v63 = vadd.f32 %v4595_v47, %v1734_v31  ;;  %v496_v19 = vmul.f32 %v4392_v22, %v4779_v49  ;;  %v559_v48 = vmul.f32 %v4390_v18, %v4783_v50  ;;  %v560_v35 = vmul.f32 %v4392_v22, %v4783_v50 }
 0x1d0   :  { %v2046_v36 = vpop.f32.mrf.mxu2  ;;  %v2564_v42 = vadd.f32 %v4530_v41, %v2204_v0  ;;  %v751_v14 = vpack.c.bf16 %v495_v10, %v495_v10  ;;  %v1215_v27 = vunpack.c.l.b16 %v687_v13 }
 0x1d1   :  { %1773 = vmatmul.bf16.gmra.mxu0 %v1389_v61  ;;  %v1889_v11 = vpop.f32.mrf.mxu1  ;;  %v2501_v24 = vadd.f32 %v4532_v44, %v2046_v36  ;;  %v688_v61 = vpack.c.bf16 %v432_v16, %v432_v16 }
 0x1d2   :  { %v2438_v36 = vadd.f32 %v4567_v7, %v1889_v11 }
 0x1d3   :  { %v3626_v55 = vpack.c.bf16 %v2501_v24, %v2500_v57  ;;  %v1153_v57 = vunpack.c.l.b16 %v625_v20  ;;  %v1154_v24 = vunpack.c.l.b16 %v626_v3  ;;  %v1216_v11 = vunpack.c.l.b16 %v688_v61 }
 0x1d4   :  { %1928 = vmatmul.bf16.gmra.mxu1 %v1420_v39  ;;  %v371_v20 = vmul.f32 %v4430_v54, %v4734_v60  ;;  %v372_v61 = vmul.f32 %v4432_v56, %v4734_v60 }
 0x1d5   :  { %3988 = vst [vmem:[#allocation11 + $0x240] sm:$0xff] %v3626_v55   ;;  %2088 = vmatmul.bf16.gmra.mxu2 %v1452_v59  ;;  %v815_v55 = vpack.c.bf16 %v559_v48, %v559_v48  ;;  %v816_v59 = vpack.c.bf16 %v560_v35, %v560_v35  ;;  %v1390_v16 = vpack.c.b16 %v1154_v24, %v1153_v57 }
 0x1d6   :  { %v1736_v32 = vpop.f32.mrf.mxu0  ;;  %v433_v35 = vmul.f32 %v4410_v4, %v4767_v8  ;;  %v434_v57 = vmul.f32 %v4412_v5, %v4767_v8 }
 0x1d7   :  { %v2206_v43 = vpop.f32.mrf.mxu3  ;;  %v2377_v0 = vadd.f32 %v4598_v51, %v1736_v32 }
 0x1d8   :  { %v2565_v53 = vadd.f32 %v4532_v44, %v2206_v43  ;;  %v2049_v31 = vpop.f32.mrf.mxu2 }
 0x1d9   :  { %v3316_v34 = vpack.c.bf16 %v2377_v0, %v2376_v63  ;;  %v1891_v26 = vpop.f32.mrf.mxu1  ;;  %v1421_v0 = vpack.c.b16 %v1216_v11, %v1215_v27  ;;  %v2502_v3 = vadd.f32 %v4567_v7, %v2049_v31  ;;  %v628_v27 = vpack.c.bf16 %v372_v61, %v372_v61 }
 0x1da   :  { %v3786_v52 = vpack.c.bf16 %v2565_v53, %v2564_v42  ;;  %v2439_v39 = vadd.f32 %v4570_v9, %v1891_v26  ;;  %v752_v42 = vpack.c.bf16 %v496_v19, %v496_v19  ;;  %v1344_v26 = vunpack.c.l.b16 %v816_v59 }
 0x1db   :  { %3926 = vst [vmem:[#allocation11 + $0x50] sm:$0xff] %v3316_v34   ;;  %v1343_v34 = vunpack.c.l.b16 %v815_v55  ;;  %v497_v11 = vmul.f32 %v4410_v4, %v4779_v49 }
 0x1dc   :  { %4020 = vst [vmem:[#allocation11 + $0x340] sm:$0xff] %v3786_v52   ;;  %2248 = vmatmul.bf16.gmra.mxu3 %v1484_v38  ;;  %v3471_v43 = vpack.c.bf16 %v2439_v39, %v2438_v36  ;;  %v1279_v52 = vunpack.c.l.b16 %v751_v14  ;;  %v1280_v38 = vunpack.c.l.b16 %v752_v42  ;;  %v627_v14 = vpack.c.bf16 %v371_v20, %v371_v20 }
 0x1dd   :  { %v753_v61 = vpack.c.bf16 %v497_v11, %v497_v11 }
 0x1de   :  { %3957 = vst [vmem:[#allocation11 + $0x148] sm:$0xff] %v3471_v43   ;;  %v1739_v53 = vpop.f32.mrf.mxu0  ;;  %v1453_v48 = vpack.c.b16 %v1280_v38, %v1279_v52  ;;  %v1485_v43 = vpack.c.b16 %v1344_v26, %v1343_v34  ;;  %v690_v52 = vpack.c.bf16 %v434_v57, %v434_v57  ;;  %v498_v38 = vmul.f32 %v4412_v5, %v4779_v49 }
 0x1df   :  { %v2209_v46 = vpop.f32.mrf.mxu3  ;;  %v2378_v42 = vadd.f32 %v4623_v28, %v1739_v53  ;;  %v561_v34 = vmul.f32 %v4410_v4, %v4783_v50  ;;  %v562_v26 = vmul.f32 %v4412_v5, %v4783_v50 }
 0x1e0   :  { %v2051_v63 = vpop.f32.mrf.mxu2  ;;  %v2566_v19 = vadd.f32 %v4567_v7, %v2209_v46 }
 0x1e1   :  { %1778 = vmatmul.bf16.gmra.mxu0 %v1390_v16  ;;  %v1894_v32 = vpop.f32.mrf.mxu1  ;;  %v2503_v10 = vadd.f32 %v4570_v9, %v2051_v63  ;;  %v689_v16 = vpack.c.bf16 %v433_v35, %v433_v35  ;;  %v818_v35 = vpack.c.bf16 %v562_v26, %v562_v26  ;;  %v435_v26 = vmul.f32 %v4430_v54, %v4767_v8 }
 0x1e2   :  { %v2440_v63 = vadd.f32 %v4595_v47, %v1894_v32  ;;  %v1218_v32 = vunpack.c.l.b16 %v690_v52  ;;  %v5249_v52 = vld [vmem:[#allocation23_spill] sm:$0xff] }
 0x1e3   :  { %v3631_v39 = vpack.c.bf16 %v2503_v10, %v2502_v3  ;;  %v1155_v3 = vunpack.c.l.b16 %v627_v14  ;;  %v1156_v10 = vunpack.c.l.b16 %v628_v27  ;;  %v5248_v14 = vld [vmem:[#allocation22_spill] sm:$0xff] }
 0x1e4   :  { %1933 = vmatmul.bf16.gmra.mxu1 %v1421_v0  ;;  %v373_v27 = vmul.f32 %v5248_v14, %v4734_v60 }
 0x1e5   :  { %3989 = vst [vmem:[#allocation11 + $0x248] sm:$0xff] %v3631_v39   ;;  %2093 = vmatmul.bf16.gmra.mxu2 %v1453_v48  ;;  %v1217_v39 = vunpack.c.l.b16 %v689_v16  ;;  %v817_v48 = vpack.c.bf16 %v561_v34, %v561_v34  ;;  %v1391_v57 = vpack.c.b16 %v1156_v10, %v1155_v3 }
 0x1e6   :  { %v1741_v31 = vpop.f32.mrf.mxu0 }
 0x1e7   :  { %v2211_v13 = vpop.f32.mrf.mxu3  ;;  %v2379_v46 = vadd.f32 %v4626_v25, %v1741_v31 }
 0x1e8   :  { %v2567_v36 = vadd.f32 %v4570_v9, %v2211_v13  ;;  %v2054_v53 = vpop.f32.mrf.mxu2 }
 0x1e9   :  { %v3321_v55 = vpack.c.bf16 %v2379_v46, %v2378_v42  ;;  %v1896_v59 = vpop.f32.mrf.mxu1  ;;  %v1422_v46 = vpack.c.b16 %v1218_v32, %v1217_v39  ;;  %v2504_v11 = vadd.f32 %v4595_v47, %v2054_v53  ;;  %v629_v39 = vpack.c.bf16 %v373_v27, %v373_v27 }
 0x1ea   :  { %v3791_v24 = vpack.c.bf16 %v2567_v36, %v2566_v19  ;;  %v2441_v0 = vadd.f32 %v4598_v51, %v1896_v59  ;;  %v754_v19 = vpack.c.bf16 %v498_v38, %v498_v38  ;;  %v1346_v59 = vunpack.c.l.b16 %v818_v35 }
 0x1eb   :  { %3927 = vst [vmem:[#allocation11 + $0x58] sm:$0xff] %v3321_v55   ;;  %v1345_v55 = vunpack.c.l.b16 %v817_v48  ;;  %v691_v35 = vpack.c.bf16 %v435_v26, %v435_v26  ;;  %v563_v27 = vmul.f32 %v4430_v54, %v4783_v50 }
 0x1ec   :  { %4021 = vst [vmem:[#allocation11 + $0x348] sm:$0xff] %v3791_v24   ;;  %2253 = vmatmul.bf16.gmra.mxu3 %v1485_v43  ;;  %v3476_v13 = vpack.c.bf16 %v2441_v0, %v2440_v63  ;;  %v1281_v24 = vunpack.c.l.b16 %v753_v61  ;;  %v1282_v43 = vunpack.c.l.b16 %v754_v19  ;;  %v374_v63 = vmul.f32 %v5249_v52, %v4734_v60 }
 0x1ed   :  { %v1486_v19 = vpack.c.b16 %v1346_v59, %v1345_v55 }
 0x1ee   :  { %3958 = vst [vmem:[#allocation11 + $0x150] sm:$0xff] %v3476_v13   ;;  %v1744_v36 = vpop.f32.mrf.mxu0  ;;  %v1454_v10 = vpack.c.b16 %v1282_v43, %v1281_v24  ;;  %v436_v13 = vmul.f32 %v4432_v56, %v4767_v8  ;;  %v630_v48 = vpack.c.bf16 %v374_v63, %v374_v63  ;;  %v499_v43 = vmul.f32 %v4430_v54, %v4779_v49 }
 0x1ef   :  { %v2214_v20 = vpop.f32.mrf.mxu3  ;;  %v2380_v32 = vadd.f32 %v4651_v45, %v1744_v36 }
 0x1f0   :  { %v2056_v42 = vpop.f32.mrf.mxu2  ;;  %v2568_v0 = vadd.f32 %v4595_v47, %v2214_v20  ;;  %v692_v24 = vpack.c.bf16 %v436_v13, %v436_v13  ;;  %v1158_v63 = vunpack.c.l.b16 %v630_v48  ;;  %v819_v13 = vpack.c.bf16 %v563_v27, %v563_v27 }
 0x1f1   :  { %1783 = vmatmul.bf16.gmra.mxu0 %v1391_v57  ;;  %v1899_v31 = vpop.f32.mrf.mxu1  ;;  %v2505_v38 = vadd.f32 %v4598_v51, %v2056_v42 }
 0x1f2   :  { %v2442_v55 = vadd.f32 %v4623_v28, %v1899_v31  ;;  %v1220_v31 = vunpack.c.l.b16 %v692_v24  ;;  %v376_v24 = vmul.f32 %v4472_v30, %v4734_v60 }
 0x1f3   :  { %v3636_v3 = vpack.c.bf16 %v2505_v38, %v2504_v11  ;;  %v564_v11 = vmul.f32 %v4432_v56, %v4783_v50 }
 0x1f4   :  { %1938 = vmatmul.bf16.gmra.mxu1 %v1422_v46  ;;  %v500_v46 = vmul.f32 %v4432_v56, %v4779_v49 }
 0x1f5   :  { %3990 = vst [vmem:[#allocation11 + $0x250] sm:$0xff] %v3636_v3   ;;  %2098 = vmatmul.bf16.gmra.mxu2 %v1454_v10  ;;  %v1219_v10 = vunpack.c.l.b16 %v691_v35 }
 0x1f6   :  { %v1746_v53 = vpop.f32.mrf.mxu0  ;;  %v756_v26 = vpack.c.bf16 %v500_v46, %v500_v46 }
 0x1f7   :  { %v2216_v16 = vpop.f32.mrf.mxu3  ;;  %v2381_v20 = vadd.f32 %v4654_v33, %v1746_v53  ;;  %v820_v53 = vpack.c.bf16 %v564_v11, %v564_v11  ;;  %v1423_v56 = vpack.c.b16 %v1220_v31, %v1219_v10 }
 0x1f8   :  { %v2569_v34 = vadd.f32 %v4598_v51, %v2216_v16  ;;  %v2059_v36 = vpop.f32.mrf.mxu2  ;;  %v1157_v16 = vunpack.c.l.b16 %v629_v39  ;;  %v375_v39 = vmul.f32 %v4470_v29, %v4734_v60 }
 0x1f9   :  { %v3326_v57 = vpack.c.bf16 %v2381_v20, %v2380_v32  ;;  %v1901_v42 = vpop.f32.mrf.mxu1  ;;  %v1284_v20 = vunpack.c.l.b16 %v756_v26  ;;  %v1348_v54 = vunpack.c.l.b16 %v820_v53  ;;  %v2506_v48 = vadd.f32 %v4623_v28, %v2059_v36 }
 0x1fa   :  { %v3796_v61 = vpack.c.bf16 %v2569_v34, %v2568_v0  ;;  %v2443_v59 = vadd.f32 %v4626_v25, %v1901_v42  ;;  %v755_v34 = vpack.c.bf16 %v499_v43, %v499_v43 }
 0x1fb   :  { %3928 = vst [vmem:[#allocation11 + $0x60] sm:$0xff] %v3326_v57   ;;  %v1347_v57 = vunpack.c.l.b16 %v819_v13 }
 0x1fc   :  { %4022 = vst [vmem:[#allocation11 + $0x350] sm:$0xff] %v3796_v61   ;;  %2258 = vmatmul.bf16.gmra.mxu3 %v1486_v19  ;;  %v3481_v0 = vpack.c.bf16 %v2443_v59, %v2442_v55  ;;  %v1392_v61 = vpack.c.b16 %v1158_v63, %v1157_v16  ;;  %v1283_v32 = vunpack.c.l.b16 %v755_v34  ;;  %v437_v59 = vmul.f32 %v5248_v14, %v4767_v8 }
 0x1fd   :  { %v438_v16 = vmul.f32 %v5249_v52, %v4767_v8  ;;  %v631_v34 = vpack.c.bf16 %v375_v39, %v375_v39 }
 0x1fe   :  { %3959 = vst [vmem:[#allocation11 + $0x158] sm:$0xff] %v3481_v0   ;;  %v1749_v3 = vpop.f32.mrf.mxu0  ;;  %v1455_v11 = vpack.c.b16 %v1284_v20, %v1283_v32  ;;  %v1487_v0 = vpack.c.b16 %v1348_v54, %v1347_v57  ;;  %v693_v10 = vpack.c.bf16 %v437_v59, %v437_v59  ;;  %v502_v54 = vmul.f32 %v5249_v52, %v4779_v49 }
 0x1ff   :  { %v2219_v38 = vpop.f32.mrf.mxu3  ;;  %v2382_v26 = vadd.f32 %v4679_v21, %v1749_v3  ;;  %v694_v53 = vpack.c.bf16 %v438_v16, %v438_v16  ;;  %v566_v57 = vmul.f32 %v5249_v52, %v4783_v50 }
 0x200   :  { %v2061_v42 = vpop.f32.mrf.mxu2  ;;  %v2570_v46 = vadd.f32 %v4623_v28, %v2219_v38  ;;  %v632_v38 = vpack.c.bf16 %v376_v24, %v376_v24  ;;  %v1221_v59 = vunpack.c.l.b16 %v693_v10 }
 0x201   :  { %1788 = vmatmul.bf16.gmra.mxu0 %v1392_v61  ;;  %v1904_v19 = vpop.f32.mrf.mxu1  ;;  %v2507_v43 = vadd.f32 %v4626_v25, %v2061_v42  ;;  %v501_v61 = vmul.f32 %v5248_v14, %v4779_v49  ;;  %v565_v42 = vmul.f32 %v5248_v14, %v4783_v50 }
 0x202   :  { %v2444_v32 = vadd.f32 %v4651_v45, %v1904_v19  ;;  %v1222_v19 = vunpack.c.l.b16 %v694_v53  ;;  %v378_v53 = vmul.f32 %v4350_v1, %v4734_v60 }
 0x203   :  { %v3641_v27 = vpack.c.bf16 %v2507_v43, %v2506_v48  ;;  %v1159_v48 = vunpack.c.l.b16 %v631_v34  ;;  %v1160_v43 = vunpack.c.l.b16 %v632_v38  ;;  %v757_v24 = vpack.c.bf16 %v501_v61, %v501_v61 }
 0x204   :  { %1943 = vmatmul.bf16.gmra.mxu1 %v1423_v56  ;;  %v377_v34 = vmul.f32 %v4342_v58, %v4734_v60 }
 0x205   :  { %3991 = vst [vmem:[#allocation11 + $0x258] sm:$0xff] %v3641_v27   ;;  %2103 = vmatmul.bf16.gmra.mxu2 %v1455_v11  ;;  %v821_v27 = vpack.c.bf16 %v565_v42, %v565_v42  ;;  %v822_v11 = vpack.c.bf16 %v566_v57, %v566_v57  ;;  %v1393_v16 = vpack.c.b16 %v1160_v43, %v1159_v48 }
 0x206   :  { %v1751_v36 = vpop.f32.mrf.mxu0  ;;  %v440_v48 = vmul.f32 %v4472_v30, %v4767_v8 }
 0x207   :  { %v2221_v35 = vpop.f32.mrf.mxu3  ;;  %v2383_v56 = vadd.f32 %v4682_v15, %v1751_v36 }
 0x208   :  { %v2571_v55 = vadd.f32 %v4626_v25, %v2221_v35  ;;  %v2064_v3 = vpop.f32.mrf.mxu2 }
 0x209   :  { %v3331_v31 = vpack.c.bf16 %v2383_v56, %v2382_v26  ;;  %v1906_v13 = vpop.f32.mrf.mxu1  ;;  %v1424_v56 = vpack.c.b16 %v1222_v19, %v1221_v59  ;;  %v2508_v38 = vadd.f32 %v4651_v45, %v2064_v3 }
 0x20a   :  { %v3801_v63 = vpack.c.bf16 %v2571_v55, %v2570_v46  ;;  %v2445_v20 = vadd.f32 %v4654_v33, %v1906_v13  ;;  %v758_v46 = vpack.c.bf16 %v502_v54, %v502_v54  ;;  %v1350_v13 = vunpack.c.l.b16 %v822_v11 }
 0x20b   :  { %3929 = vst [vmem:[#allocation11 + $0x68] sm:$0xff] %v3331_v31   ;;  %v1349_v31 = vunpack.c.l.b16 %v821_v27  ;;  %v696_v11 = vpack.c.bf16 %v440_v48, %v440_v48  ;;  %v186_v48 = vunpack.i.h.s16 %v4737_v6 }
 0x20c   :  { %4023 = vst [vmem:[#allocation11 + $0x358] sm:$0xff] %v3801_v63   ;;  %2263 = vmatmul.bf16.gmra.mxu3 %v1487_v0  ;;  %v3486_v35 = vpack.c.bf16 %v2445_v20, %v2444_v32  ;;  %v1285_v63 = vunpack.c.l.b16 %v757_v24  ;;  %v1286_v0 = vunpack.c.l.b16 %v758_v46  ;;  %v439_v20 = vmul.f32 %v4470_v29, %v4767_v8 }
 0x20d   :  { %v633_v24 = vpack.c.bf16 %v377_v34, %v377_v34  ;;  %v218_v6 = vpack.i.b16 %v186_v48, %v186_v48 }
 0x20e   :  { %3960 = vst [vmem:[#allocation11 + $0x160] sm:$0xff] %v3486_v35   ;;  %v1754_v55 = vpop.f32.mrf.mxu0  ;;  %v1456_v57 = vpack.c.b16 %v1286_v0, %v1285_v63  ;;  %v1488_v35 = vpack.c.b16 %v1350_v13, %v1349_v31  ;;  %v695_v59 = vpack.c.bf16 %v439_v20, %v439_v20  ;;  %v504_v63 = vmul.f32 %v4472_v30, %v4779_v49 }
 0x20f   :  { %v2224_v39 = vpop.f32.mrf.mxu3  ;;  %v2384_v46 = vadd.f32 %v4709_v12, %v1754_v55  ;;  %v568_v31 = vmul.f32 %v4472_v30, %v4783_v50  ;;  %v1161_v34 = vunpack.c.l.b16 %v633_v24 }
 0x210   :  { %v2066_v26 = vpop.f32.mrf.mxu2  ;;  %v2572_v54 = vadd.f32 %v4651_v45, %v2224_v39  ;;  %v634_v39 = vpack.c.bf16 %v378_v53, %v378_v53  ;;  %v760_v53 = vpack.c.bf16 %v504_v63, %v504_v63  ;;  %v5251_v63 = vld [vmem:[#allocation16_spill] sm:$0xff] }
 0x211   :  { %1793 = vmatmul.bf16.gmra.mxu0 %v1393_v16  ;;  %v1909_v36 = vpop.f32.mrf.mxu1  ;;  %v2509_v61 = vadd.f32 %v4654_v33, %v2066_v26  ;;  %v503_v16 = vmul.f32 %v4470_v29, %v4779_v49 }
 0x212   :  { %v2446_v0 = vadd.f32 %v4679_v21, %v1909_v36  ;;  %v1224_v36 = vunpack.c.l.b16 %v696_v11 }
 0x213   :  { %v3646_v42 = vpack.c.bf16 %v2509_v61, %v2508_v38  ;;  %v1162_v38 = vunpack.c.l.b16 %v634_v39 }
 0x214   :  { %1948 = vmatmul.bf16.gmra.mxu1 %v1424_v56  ;;  %v567_v56 = vmul.f32 %v4470_v29, %v4783_v50 }
 0x215   :  { %3992 = vst [vmem:[#allocation11 + $0x260] sm:$0xff] %v3646_v42   ;;  %2108 = vmatmul.bf16.gmra.mxu2 %v1456_v57  ;;  %v824_v42 = vpack.c.bf16 %v568_v31, %v568_v31  ;;  %v1394_v57 = vpack.c.b16 %v1162_v38, %v1161_v34  ;;  %v441_v31 = vmul.f32 %v4342_v58, %v4767_v8 }
 0x216   :  { %v1756_v3 = vpop.f32.mrf.mxu0  ;;  %v823_v20 = vpack.c.bf16 %v567_v56, %v567_v56 }
 0x217   :  { %v2226_v10 = vpop.f32.mrf.mxu3  ;;  %v2385_v60 = vadd.f32 %v4712_v2, %v1756_v3  ;;  %v1352_v39 = vunpack.c.l.b16 %v824_v42  ;;  %v234_v42 = vperm.slane %v218_v6, 0 }
 0x218   :  { %v2573_v32 = vadd.f32 %v4654_v33, %v2226_v10  ;;  %v2069_v55 = vpop.f32.mrf.mxu2  ;;  %v759_v10 = vpack.c.bf16 %v503_v16, %v503_v16  ;;  %v1351_v24 = vunpack.c.l.b16 %v823_v20 }
 0x219   :  { %v3336_v19 = vpack.c.bf16 %v2385_v60, %v2384_v46  ;;  %v1911_v27 = vpop.f32.mrf.mxu1  ;;  %v2510_v16 = vadd.f32 %v4679_v21, %v2069_v55  ;;  %v442_v55 = vmul.f32 %v4350_v1, %v4767_v8  ;;  %v505_v8 = vmul.f32 %v4342_v58, %v4779_v49 }
 0x21a   :  { %v3806_v43 = vpack.c.bf16 %v2573_v32, %v2572_v54  ;;  %v2447_v26 = vadd.f32 %v4682_v15, %v1911_v27  ;;  %v1223_v32 = vunpack.c.l.b16 %v695_v59  ;;  %v296_v6 = vpack.i.b16 %v234_v42, %v234_v42 }
 0x21b   :  { %3930 = vst [vmem:[#allocation11 + $0x70] sm:$0xff] %v3336_v19   ;;  %v5250_v19 = vld [vmem:[#allocation17_spill] sm:$0xff] }
 0x21c   :  { %4024 = vst [vmem:[#allocation11 + $0x360] sm:$0xff] %v3806_v43   ;;  %2268 = vmatmul.bf16.gmra.mxu3 %v1488_v35  ;;  %v3491_v61 = vpack.c.bf16 %v2447_v26, %v2446_v0  ;;  %v1287_v43 = vunpack.c.l.b16 %v759_v10  ;;  %v1288_v35 = vunpack.c.l.b16 %v760_v53  ;;  %v1425_v60 = vpack.c.b16 %v1224_v36, %v1223_v32 }
 0x21d   :  { %v379_v27 = vmul.f32 %v4313_v37, %v5250_v19  ;;  %v380_v0 = vmul.f32 %v5251_v63, %v5250_v19  ;;  %v1489_v53 = vpack.c.b16 %v1352_v39, %v1351_v24  ;;  %v569_v39 = vmul.f32 %v4342_v58, %v4783_v50 }
 0x21e   :  { %3961 = vst [vmem:[#allocation11 + $0x168] sm:$0xff] %v3491_v61   ;;  %v1759_v54 = vpop.f32.mrf.mxu0  ;;  %v1457_v38 = vpack.c.b16 %v1288_v35, %v1287_v43  ;;  %v698_v35 = vpack.c.bf16 %v442_v55, %v442_v55  ;;  %v381_v42 = vmul.f32 %v4356_v17, %v5250_v19 }
 0x21f   :  { %v2229_v13 = vpop.f32.mrf.mxu3  ;;  %v635_v32 = vpack.c.bf16 %v379_v27, %v379_v27  ;;  %v2386_v36 = vadd.f32 %v4546_v40, %v1759_v54  ;;  %v636_v20 = vpack.c.bf16 %v380_v0, %v380_v0  ;;  %v570_v27 = vmul.f32 %v4350_v1, %v4783_v50 }
 0x220   :  { %v2071_v46 = vpop.f32.mrf.mxu2  ;;  %v2574_v26 = vadd.f32 %v4679_v21, %v2229_v13 }
 0x221   :  { %1798 = vmatmul.bf16.gmra.mxu0 %v1394_v57  ;;  %v1914_v3 = vpop.f32.mrf.mxu1  ;;  %v2511_v59 = vadd.f32 %v4682_v15, %v2071_v46  ;;  %v697_v57 = vpack.c.bf16 %v441_v31, %v441_v31  ;;  %v506_v46 = vmul.f32 %v4350_v1, %v4779_v49  ;;  %v1226_v31 = vunpack.c.l.b16 %v698_v35 }
 0x222   :  { %v2448_v54 = vadd.f32 %v4709_v12, %v1914_v3  ;;  %v382_v35 = vmul.f32 %v4360_v23, %v5250_v19 }
 0x223   :  { %v3651_v34 = vpack.c.bf16 %v2511_v59, %v2510_v16  ;;  %v1163_v59 = vunpack.c.l.b16 %v635_v32  ;;  %v1225_v3 = vunpack.c.l.b16 %v697_v57 }
 0x224   :  { %1953 = vmatmul.bf16.gmra.mxu1 %v1425_v60 }
 0x225   :  { %3993 = vst [vmem:[#allocation11 + $0x268] sm:$0xff] %v3651_v34   ;;  %2113 = vmatmul.bf16.gmra.mxu2 %v1457_v38  ;;  %v825_v34 = vpack.c.bf16 %v569_v39, %v569_v39  ;;  %v826_v38 = vpack.c.bf16 %v570_v27, %v570_v27 }
 0x226   :  { %v1761_v61 = vpop.f32.mrf.mxu0 }
 0x227   :  { %v2231_v11 = vpop.f32.mrf.mxu3  ;;  %v2387_v13 = vadd.f32 %v4548_v62, %v1761_v61  ;;  %v298_v61 = vperm.slane %v296_v6, 0  ;;  %v1353_v32 = vunpack.c.l.b16 %v825_v34  ;;  %v637_v6 = vpack.c.bf16 %v381_v42, %v381_v42 }
 0x228   :  { %v2575_v56 = vadd.f32 %v4682_v15, %v2231_v11  ;;  %v2074_v60 = vpop.f32.mrf.mxu2  ;;  %v1164_v11 = vunpack.c.l.b16 %v636_v20  ;;  %v1354_v20 = vunpack.c.l.b16 %v826_v38 }
 0x229   :  { %v3341_v48 = vpack.c.bf16 %v2387_v13, %v2386_v36  ;;  %v1916_v43 = vpop.f32.mrf.mxu1  ;;  %v1426_v13 = vpack.c.b16 %v1226_v31, %v1225_v3  ;;  %v4976_v39 = vunpack.c.l.bf16 %v298_v61  ;;  %v638_v3 = vpack.c.bf16 %v382_v35, %v382_v35 }
 0x22a   :  { %v3811_v10 = vpack.c.bf16 %v2575_v56, %v2574_v26  ;;  %v2449_v24 = vadd.f32 %v4712_v2, %v1916_v43  ;;  %v761_v26 = vpack.c.bf16 %v505_v8, %v505_v8  ;;  %v762_v56 = vpack.c.bf16 %v506_v46, %v506_v46 }
 0x22b   :  { %3931 = vst [vmem:[#allocation11 + $0x78] sm:$0xff] %v3341_v48   ;;  %v1395_v55 = vpack.c.b16 %v1164_v11, %v1163_v59  ;;  %v2512_v48 = vadd.f32 %v4709_v12, %v2074_v60 }
 0x22c   :  { %4025 = vst [vmem:[#allocation11 + $0x368] sm:$0xff] %v3811_v10   ;;  %2273 = vmatmul.bf16.gmra.mxu3 %v1489_v53  ;;  %v3496_v0 = vpack.c.bf16 %v2449_v24, %v2448_v54  ;;  %v1289_v53 = vunpack.c.l.b16 %v761_v26  ;;  %v1290_v50 = vunpack.c.l.b16 %v762_v56  ;;  %v5252_v54 = vld [vmem:[#allocation18_spill] sm:$0xff] }
 0x22d   :  { %v443_v24 = vmul.f32 %v4313_v37, %v5252_v54  ;;  %v444_v26 = vmul.f32 %v5251_v63, %v5252_v54 }
 0x22e   :  { %3962 = vst [vmem:[#allocation11 + $0x170] sm:$0xff] %v3496_v0   ;;  %v1764_v49 = vpop.f32.mrf.mxu0  ;;  %v1458_v59 = vpack.c.b16 %v1290_v50, %v1289_v53  ;;  %v1490_v0 = vpack.c.b16 %v1354_v20, %v1353_v32  ;;  %v571_v50 = vmul.f32 %v4313_v37, %v4976_v39  ;;  %v572_v20 = vmul.f32 %v5251_v63, %v4976_v39 }
 0x22f   :  { %v2234_v16 = vpop.f32.mrf.mxu3  ;;  %v2388_v56 = vadd.f32 %v4530_v41, %v1764_v49  ;;  %v699_v31 = vpack.c.bf16 %v443_v24, %v443_v24  ;;  %v700_v32 = vpack.c.bf16 %v444_v26, %v444_v26 }
 0x230   :  { %v2076_v36 = vpop.f32.mrf.mxu2  ;;  %v2576_v8 = vadd.f32 %v4709_v12, %v2234_v16 }
 0x231   :  { %1803 = vmatmul.bf16.gmra.mxu0 %v1395_v55  ;;  %v1919_v10 = vpop.f32.mrf.mxu1  ;;  %v2513_v57 = vadd.f32 %v4712_v2, %v2076_v36  ;;  %v5253_v55 = vld [vmem:[#allocation19_spill] sm:$0xff]  ;;  %v1227_v24 = vunpack.c.l.b16 %v699_v31 }
 0x232   :  { %v507_v61 = vmul.f32 %v4313_v37, %v5253_v55  ;;  %v508_v53 = vmul.f32 %v5251_v63, %v5253_v55  ;;  %v2450_v49 = vadd.f32 %v4546_v40, %v1919_v10  ;;  %v1228_v37 = vunpack.c.l.b16 %v700_v32 }
 0x233   :  { %v3656_v27 = vpack.c.bf16 %v2513_v57, %v2512_v48  ;;  %v1165_v48 = vunpack.c.l.b16 %v637_v6  ;;  %v1166_v57 = vunpack.c.l.b16 %v638_v3  ;;  %v828_v10 = vpack.c.bf16 %v572_v20, %v572_v20 }
 0x234   :  { %1958 = vmatmul.bf16.gmra.mxu1 %v1426_v13  ;;  %v763_v35 = vpack.c.bf16 %v507_v61, %v507_v61  ;;  %v1427_v63 = vpack.c.b16 %v1228_v37, %v1227_v24  ;;  %v383_v6 = vmul.f32 %v4390_v18, %v5250_v19  ;;  %v446_v32 = vmul.f32 %v4360_v23, %v5252_v54 }
 0x235   :  { %3994 = vst [vmem:[#allocation11 + $0x270] sm:$0xff] %v3656_v27   ;;  %2118 = vmatmul.bf16.gmra.mxu2 %v1458_v59  ;;  %v827_v27 = vpack.c.bf16 %v571_v50, %v571_v50  ;;  %v1396_v59 = vpack.c.b16 %v1166_v57, %v1165_v48 }
 0x236   :  { %v1766_v11 = vpop.f32.mrf.mxu0  ;;  %v639_v57 = vpack.c.bf16 %v383_v6, %v383_v6 }
 0x237   :  { %v2236_v43 = vpop.f32.mrf.mxu3  ;;  %v2389_v16 = vadd.f32 %v4532_v44, %v1766_v11 }
 0x238   :  { %v2577_v46 = vadd.f32 %v4712_v2, %v2236_v43  ;;  %v2079_v36 = vpop.f32.mrf.mxu2 }
 0x239   :  { %v3346_v34 = vpack.c.bf16 %v2389_v16, %v2388_v56  ;;  %v1921_v38 = vpop.f32.mrf.mxu1  ;;  %v1355_v56 = vunpack.c.l.b16 %v827_v27  ;;  %v1356_v16 = vunpack.c.l.b16 %v828_v10  ;;  %v2514_v3 = vadd.f32 %v4546_v40, %v2079_v36 }
 0x23a   :  { %v3816_v60 = vpack.c.bf16 %v2577_v46, %v2576_v8  ;;  %v2451_v13 = vadd.f32 %v4548_v62, %v1921_v38  ;;  %v764_v8 = vpack.c.bf16 %v508_v53, %v508_v53  ;;  %v384_v38 = vmul.f32 %v4392_v22, %v5250_v19 }
 0x23b   :  { %3932 = vst [vmem:[#allocation11 + $0x80] sm:$0xff] %v3346_v34   ;;  %v1491_v48 = vpack.c.b16 %v1356_v16, %v1355_v56  ;;  %v702_v10 = vpack.c.bf16 %v446_v32, %v446_v32  ;;  %v1167_v16 = vunpack.c.l.b16 %v639_v57  ;;  %v385_v57 = vmul.f32 %v4410_v4, %v5250_v19 }
 0x23c   :  { %4026 = vst [vmem:[#allocation11 + $0x370] sm:$0xff] %v3816_v60   ;;  %2278 = vmatmul.bf16.gmra.mxu3 %v1490_v0  ;;  %v3501_v43 = vpack.c.bf16 %v2451_v13, %v2450_v49  ;;  %v1291_v60 = vunpack.c.l.b16 %v763_v35  ;;  %v1292_v0 = vunpack.c.l.b16 %v764_v8  ;;  %v445_v13 = vmul.f32 %v4356_v17, %v5252_v54 }
 0x23d   :  { %v640_v35 = vpack.c.bf16 %v384_v38, %v384_v38  ;;  %v509_v8 = vmul.f32 %v4356_v17, %v5253_v55 }
 0x23e   :  { %3963 = vst [vmem:[#allocation11 + $0x178] sm:$0xff] %v3501_v43   ;;  %v1769_v46 = vpop.f32.mrf.mxu0  ;;  %v1459_v49 = vpack.c.b16 %v1292_v0, %v1291_v60  ;;  %v701_v27 = vpack.c.bf16 %v445_v13, %v445_v13 }
 0x23f   :  { %v2239_v42 = vpop.f32.mrf.mxu3  ;;  %v2390_v43 = vadd.f32 %v4567_v7, %v1769_v46  ;;  %v1168_v6 = vunpack.c.l.b16 %v640_v35 }
 0x240   :  { %v2081_v26 = vpop.f32.mrf.mxu2  ;;  %v2578_v61 = vadd.f32 %v4546_v40, %v2239_v42 }
 0x241   :  { %1808 = vmatmul.bf16.gmra.mxu0 %v1396_v59  ;;  %v1924_v11 = vpop.f32.mrf.mxu1  ;;  %v2515_v34 = vadd.f32 %v4548_v62, %v2081_v26  ;;  %v510_v59 = vmul.f32 %v4360_v23, %v5253_v55  ;;  %v573_v26 = vmul.f32 %v4356_v17, %v4976_v39 }
 0x242   :  { %v2452_v60 = vadd.f32 %v4530_v41, %v1924_v11  ;;  %v1230_v11 = vunpack.c.l.b16 %v702_v10 }
 0x243   :  { %v3661_v50 = vpack.c.bf16 %v2515_v34, %v2514_v3  ;;  %v765_v34 = vpack.c.bf16 %v509_v8, %v509_v8  ;;  %v386_v8 = vmul.f32 %v4412_v5, %v5250_v19 }
 0x244   :  { %1963 = vmatmul.bf16.gmra.mxu1 %v1427_v63  ;;  %v574_v63 = vmul.f32 %v4360_v23, %v4976_v39 }
 0x245   :  { %3995 = vst [vmem:[#allocation11 + $0x278] sm:$0xff] %v3661_v50   ;;  %2123 = vmatmul.bf16.gmra.mxu2 %v1459_v49  ;;  %v1397_v49 = vpack.c.b16 %v1168_v6, %v1167_v16  ;;  %v1293_v17 = vunpack.c.l.b16 %v765_v34  ;;  %v642_v6 = vpack.c.bf16 %v386_v8, %v386_v8 }
 0x246   :  { %v1771_v36 = vpop.f32.mrf.mxu0  ;;  %v830_v50 = vpack.c.bf16 %v574_v63, %v574_v63  ;;  %v641_v63 = vpack.c.bf16 %v385_v57, %v385_v57 }
 0x247   :  { %v2241_v31 = vpop.f32.mrf.mxu3  ;;  %v2391_v42 = vadd.f32 %v4570_v9, %v1771_v36 }
 0x248   :  { %v2579_v53 = vadd.f32 %v4548_v62, %v2241_v31  ;;  %v2084_v46 = vpop.f32.mrf.mxu2  ;;  %v766_v31 = vpack.c.bf16 %v510_v59, %v510_v59  ;;  %v447_v59 = vmul.f32 %v4390_v18, %v5252_v54 }
 0x249   :  { %v3351_v24 = vpack.c.bf16 %v2391_v42, %v2390_v43  ;;  %v1926_v37 = vpop.f32.mrf.mxu1  ;;  %v2516_v43 = vadd.f32 %v4530_v41, %v2084_v46 }
 0x24a   :  { %v3821_v20 = vpack.c.bf16 %v2579_v53, %v2578_v61  ;;  %v2453_v0 = vadd.f32 %v4532_v44, %v1926_v37  ;;  %v1229_v61 = vunpack.c.l.b16 %v701_v27  ;;  %v829_v53 = vpack.c.bf16 %v573_v26, %v573_v26 }
 0x24b   :  { %3933 = vst [vmem:[#allocation11 + $0x88] sm:$0xff] %v3351_v24   ;;  %v1294_v32 = vunpack.c.l.b16 %v766_v31 }
 0x24c   :  { %4027 = vst [vmem:[#allocation11 + $0x378] sm:$0xff] %v3821_v20   ;;  %2283 = vmatmul.bf16.gmra.mxu3 %v1491_v48  ;;  %v3506_v3 = vpack.c.bf16 %v2453_v0, %v2452_v60  ;;  %v1428_v23 = vpack.c.b16 %v1230_v11, %v1229_v61  ;;  %v1357_v20 = vunpack.c.l.b16 %v829_v53  ;;  %v1358_v48 = vunpack.c.l.b16 %v830_v50 }
 0x24d   :  { %v1460_v10 = vpack.c.b16 %v1294_v32, %v1293_v17  ;;  %v448_v60 = vmul.f32 %v4392_v22, %v5252_v54  ;;  %v703_v61 = vpack.c.bf16 %v447_v59, %v447_v59  ;;  %v512_v53 = vmul.f32 %v4392_v22, %v5253_v55 }
 0x24e   :  { %3964 = vst [vmem:[#allocation11 + $0x180] sm:$0xff] %v3506_v3   ;;  %v1774_v38 = vpop.f32.mrf.mxu0  ;;  %v1492_v26 = vpack.c.b16 %v1358_v48, %v1357_v20  ;;  %v511_v3 = vmul.f32 %v4390_v18, %v5253_v55  ;;  %v575_v17 = vmul.f32 %v4390_v18, %v4976_v39  ;;  %v576_v32 = vmul.f32 %v4392_v22, %v4976_v39 }
 0x24f   :  { %v2244_v56 = vpop.f32.mrf.mxu3  ;;  %v2392_v16 = vadd.f32 %v4595_v47, %v1774_v38  ;;  %v704_v11 = vpack.c.bf16 %v448_v60, %v448_v60  ;;  %v1170_v20 = vunpack.c.l.b16 %v642_v6  ;;  %v5255_v6 = vld [vmem:[#allocation21_spill] sm:$0xff] }
 0x250   :  { %v2086_v36 = vpop.f32.mrf.mxu2  ;;  %v2580_v24 = vadd.f32 %v4530_v41, %v2244_v56  ;;  %v767_v57 = vpack.c.bf16 %v511_v3, %v511_v3  ;;  %v831_v8 = vpack.c.bf16 %v575_v17, %v575_v17  ;;  %v388_v3 = vmul.f32 %v5255_v6, %v5250_v19 }
 0x251   :  { %1813 = vmatmul.bf16.gmra.mxu0 %v1397_v49  ;;  %v1929_v13 = vpop.f32.mrf.mxu1  ;;  %v2517_v42 = vadd.f32 %v4532_v44, %v2086_v36 }
 0x252   :  { %v2454_v50 = vadd.f32 %v4567_v7, %v1929_v13  ;;  %v1232_v13 = vunpack.c.l.b16 %v704_v11  ;;  %v1295_v18 = vunpack.c.l.b16 %v767_v57  ;;  %v1359_v60 = vunpack.c.l.b16 %v831_v8 }
 0x253   :  { %v3666_v27 = vpack.c.bf16 %v2517_v42, %v2516_v43  ;;  %v768_v43 = vpack.c.bf16 %v512_v53, %v512_v53  ;;  %v577_v8 = vmul.f32 %v4410_v4, %v4976_v39 }
 0x254   :  { %1968 = vmatmul.bf16.gmra.mxu1 %v1428_v23  ;;  %v1169_v23 = vunpack.c.l.b16 %v641_v63 }
 0x255   :  { %3996 = vst [vmem:[#allocation11 + $0x280] sm:$0xff] %v3666_v27   ;;  %2128 = vmatmul.bf16.gmra.mxu2 %v1460_v10  ;;  %v1296_v10 = vunpack.c.l.b16 %v768_v43 }
 0x256   :  { %v1776_v46 = vpop.f32.mrf.mxu0 }
 0x257   :  { %v2246_v35 = vpop.f32.mrf.mxu3  ;;  %v2393_v56 = vadd.f32 %v4598_v51, %v1776_v46  ;;  %v1461_v53 = vpack.c.b16 %v1296_v10, %v1295_v18  ;;  %v578_v10 = vmul.f32 %v4412_v5, %v4976_v39 }
 0x258   :  { %v2581_v37 = vadd.f32 %v4532_v44, %v2246_v35  ;;  %v2089_v38 = vpop.f32.mrf.mxu2  ;;  %v1231_v35 = vunpack.c.l.b16 %v703_v61  ;;  %v449_v61 = vmul.f32 %v4410_v4, %v5252_v54 }
 0x259   :  { %v3356_v34 = vpack.c.bf16 %v2393_v56, %v2392_v16  ;;  %v1931_v31 = vpop.f32.mrf.mxu1  ;;  %v2518_v63 = vadd.f32 %v4567_v7, %v2089_v38 }
 0x25a   :  { %v3826_v0 = vpack.c.bf16 %v2581_v37, %v2580_v24  ;;  %v2455_v49 = vadd.f32 %v4570_v9, %v1931_v31  ;;  %v832_v24 = vpack.c.bf16 %v576_v32, %v576_v32  ;;  %v1398_v37 = vpack.c.b16 %v1170_v20, %v1169_v23 }
 0x25b   :  { %3934 = vst [vmem:[#allocation11 + $0x90] sm:$0xff] %v3356_v34   ;;  %v1429_v22 = vpack.c.b16 %v1232_v13, %v1231_v35  ;;  %v450_v32 = vmul.f32 %v4412_v5, %v5252_v54  ;;  %v644_v20 = vpack.c.bf16 %v388_v3, %v388_v3  ;;  %v513_v35 = vmul.f32 %v4410_v4, %v5253_v55 }
 0x25c   :  { %4028 = vst [vmem:[#allocation11 + $0x380] sm:$0xff] %v3826_v0   ;;  %2288 = vmatmul.bf16.gmra.mxu3 %v1492_v26  ;;  %v3511_v48 = vpack.c.bf16 %v2455_v49, %v2454_v50  ;;  %v1360_v46 = vunpack.c.l.b16 %v832_v24  ;;  %v5254_v0 = vld [vmem:[#allocation20_spill] sm:$0xff]  ;;  %v514_v13 = vmul.f32 %v4412_v5, %v5253_v55  ;;  %v833_v3 = vpack.c.bf16 %v577_v8, %v577_v8 }
 0x25d   :  { %v387_v26 = vmul.f32 %v5254_v0, %v5250_v19  ;;  %v706_v18 = vpack.c.bf16 %v450_v32, %v450_v32 }
 0x25e   :  { %3965 = vst [vmem:[#allocation11 + $0x188] sm:$0xff] %v3511_v48   ;;  %v1779_v42 = vpop.f32.mrf.mxu0  ;;  %v1493_v17 = vpack.c.b16 %v1360_v46, %v1359_v60  ;;  %v705_v48 = vpack.c.bf16 %v449_v61, %v449_v61  ;;  %v1172_v60 = vunpack.c.l.b16 %v644_v20 }
 0x25f   :  { %v2249_v36 = vpop.f32.mrf.mxu3  ;;  %v643_v38 = vpack.c.bf16 %v387_v26, %v387_v26  ;;  %v2394_v23 = vadd.f32 %v4623_v28, %v1779_v42  ;;  %v769_v26 = vpack.c.bf16 %v513_v35, %v513_v35  ;;  %v1234_v4 = vunpack.c.l.b16 %v706_v18 }
 0x260   :  { %v2091_v59 = vpop.f32.mrf.mxu2  ;;  %v2582_v34 = vadd.f32 %v4567_v7, %v2249_v36 }
 0x261   :  { %1818 = vmatmul.bf16.gmra.mxu0 %v1398_v37  ;;  %v1934_v27 = vpop.f32.mrf.mxu1  ;;  %v2519_v16 = vadd.f32 %v4570_v9, %v2091_v59  ;;  %v1297_v61 = vunpack.c.l.b16 %v769_v26 }
 0x262   :  { %v2456_v42 = vadd.f32 %v4595_v47, %v1934_v27  ;;  %v834_v27 = vpack.c.bf16 %v578_v10, %v578_v10 }
 0x263   :  { %v3671_v11 = vpack.c.bf16 %v2519_v16, %v2518_v63  ;;  %v770_v63 = vpack.c.bf16 %v514_v13, %v514_v13  ;;  %v452_v13 = vmul.f32 %v5255_v6, %v5252_v54 }
 0x264   :  { %1973 = vmatmul.bf16.gmra.mxu1 %v1429_v22  ;;  %v1171_v22 = vunpack.c.l.b16 %v643_v38 }
 0x265   :  { %3997 = vst [vmem:[#allocation11 + $0x288] sm:$0xff] %v3671_v11   ;;  %2133 = vmatmul.bf16.gmra.mxu2 %v1461_v53  ;;  %v1298_v11 = vunpack.c.l.b16 %v770_v63  ;;  %v708_v26 = vpack.c.bf16 %v452_v13, %v452_v13  ;;  %v515_v63 = vmul.f32 %v5254_v0, %v5253_v55  ;;  %v391_v13 = vmul.f32 %v4470_v29, %v5250_v19 }
 0x266   :  { %v1781_v50 = vpop.f32.mrf.mxu0 }
 0x267   :  { %v2251_v56 = vpop.f32.mrf.mxu3  ;;  %v2395_v36 = vadd.f32 %v4626_v25, %v1781_v50  ;;  %v1361_v50 = vunpack.c.l.b16 %v833_v3  ;;  %v1462_v35 = vpack.c.b16 %v1298_v11, %v1297_v61 }
 0x268   :  { %v2583_v31 = vadd.f32 %v4570_v9, %v2251_v56  ;;  %v2094_v24 = vpop.f32.mrf.mxu2  ;;  %v1233_v56 = vunpack.c.l.b16 %v705_v48 }
 0x269   :  { %v3361_v57 = vpack.c.bf16 %v2395_v36, %v2394_v23  ;;  %v1936_v43 = vpop.f32.mrf.mxu1  ;;  %v2520_v38 = vadd.f32 %v4595_v47, %v2094_v24  ;;  %v390_v36 = vmul.f32 %v5249_v52, %v5250_v19 }
 0x26a   :  { %v3831_v49 = vpack.c.bf16 %v2583_v31, %v2582_v34  ;;  %v2457_v37 = vadd.f32 %v4598_v51, %v1936_v43  ;;  %v1399_v34 = vpack.c.b16 %v1172_v60, %v1171_v22  ;;  %v1430_v5 = vpack.c.b16 %v1234_v4, %v1233_v56 }
 0x26b   :  { %3935 = vst [vmem:[#allocation11 + $0x98] sm:$0xff] %v3361_v57   ;;  %v451_v57 = vmul.f32 %v5254_v0, %v5252_v54  ;;  %v516_v56 = vmul.f32 %v5255_v6, %v5253_v55 }
 0x26c   :  { %4029 = vst [vmem:[#allocation11 + $0x388] sm:$0xff] %v3831_v49   ;;  %2293 = vmatmul.bf16.gmra.mxu3 %v1493_v17  ;;  %v3516_v46 = vpack.c.bf16 %v2457_v37, %v2456_v42  ;;  %v1362_v49 = vunpack.c.l.b16 %v834_v27  ;;  %v389_v17 = vmul.f32 %v5248_v14, %v5250_v19  ;;  %v579_v27 = vmul.f32 %v5254_v0, %v4976_v39 }
 0x26d   :  { %v707_v22 = vpack.c.bf16 %v451_v57, %v451_v57 }
 0x26e   :  { %3966 = vst [vmem:[#allocation11 + $0x190] sm:$0xff] %v3516_v46   ;;  %v1784_v16 = vpop.f32.mrf.mxu0  ;;  %v1494_v24 = vpack.c.b16 %v1362_v49, %v1361_v50  ;;  %v645_v37 = vpack.c.bf16 %v389_v17, %v389_v17  ;;  %v771_v50 = vpack.c.bf16 %v515_v63, %v515_v63  ;;  %v772_v49 = vpack.c.bf16 %v516_v56, %v516_v56 }
 0x26f   :  { %v2254_v59 = vpop.f32.mrf.mxu3  ;;  %v2396_v18 = vadd.f32 %v4651_v45, %v1784_v16 }
 0x270   :  { %v2096_v53 = vpop.f32.mrf.mxu2  ;;  %v2584_v20 = vadd.f32 %v4595_v47, %v2254_v59  ;;  %v646_v59 = vpack.c.bf16 %v390_v36, %v390_v36  ;;  %v1173_v11 = vunpack.c.l.b16 %v645_v37  ;;  %v1299_v0 = vunpack.c.l.b16 %v771_v50 }
 0x271   :  { %1823 = vmatmul.bf16.gmra.mxu0 %v1399_v34  ;;  %v1939_v31 = vpop.f32.mrf.mxu1  ;;  %v2521_v32 = vadd.f32 %v4598_v51, %v2096_v53  ;;  %v580_v34 = vmul.f32 %v5255_v6, %v4976_v39  ;;  %v392_v37 = vmul.f32 %v4472_v30, %v5250_v19 }
 0x272   :  { %v2458_v4 = vadd.f32 %v4623_v28, %v1939_v31  ;;  %v1174_v53 = vunpack.c.l.b16 %v646_v59  ;;  %v1236_v31 = vunpack.c.l.b16 %v708_v26 }
 0x273   :  { %v3676_v43 = vpack.c.bf16 %v2521_v32, %v2520_v38  ;;  %v1235_v38 = vunpack.c.l.b16 %v707_v22  ;;  %v835_v32 = vpack.c.bf16 %v579_v27, %v579_v27  ;;  %v517_v27 = vmul.f32 %v5248_v14, %v5253_v55 }
 0x274   :  { %1978 = vmatmul.bf16.gmra.mxu1 %v1430_v5  ;;  %v1400_v36 = vpack.c.b16 %v1174_v53, %v1173_v11 }
 0x275   :  { %3998 = vst [vmem:[#allocation11 + $0x290] sm:$0xff] %v3676_v43   ;;  %2138 = vmatmul.bf16.gmra.mxu2 %v1462_v35  ;;  %v1431_v6 = vpack.c.b16 %v1236_v31, %v1235_v38  ;;  %v1363_v43 = vunpack.c.l.b16 %v835_v32  ;;  %v581_v38 = vmul.f32 %v5248_v14, %v4976_v39  ;;  %v582_v31 = vmul.f32 %v5249_v52, %v4976_v39 }
 0x276   :  { %v1786_v8 = vpop.f32.mrf.mxu0 }
 0x277   :  { %v2256_v23 = vpop.f32.mrf.mxu3  ;;  %v2397_v10 = vadd.f32 %v4654_v33, %v1786_v8 }
 0x278   :  { %v2585_v48 = vadd.f32 %v4598_v51, %v2256_v23  ;;  %v2099_v16 = vpop.f32.mrf.mxu2  ;;  %v836_v23 = vpack.c.bf16 %v580_v34, %v580_v34 }
 0x279   :  { %v3366_v60 = vpack.c.bf16 %v2397_v10, %v2396_v18  ;;  %v1941_v46 = vpop.f32.mrf.mxu1  ;;  %v2522_v8 = vadd.f32 %v4623_v28, %v2099_v16 }
 0x27a   :  { %v3836_v42 = vpack.c.bf16 %v2585_v48, %v2584_v20  ;;  %v2459_v3 = vadd.f32 %v4626_v25, %v1941_v46  ;;  %v1300_v48 = vunpack.c.l.b16 %v772_v49  ;;  %v1364_v35 = vunpack.c.l.b16 %v836_v23 }
 0x27b   :  { %3936 = vst [vmem:[#allocation11 + $0xa0] sm:$0xff] %v3366_v60   ;;  %v453_v60 = vmul.f32 %v5248_v14, %v5252_v54  ;;  %v454_v46 = vmul.f32 %v5249_v52, %v5252_v54 }
 0x27c   :  { %4030 = vst [vmem:[#allocation11 + $0x390] sm:$0xff] %v3836_v42   ;;  %2298 = vmatmul.bf16.gmra.mxu3 %v1494_v24  ;;  %v3521_v5 = vpack.c.bf16 %v2459_v3, %v2458_v4  ;;  %v1463_v22 = vpack.c.b16 %v1300_v48, %v1299_v0  ;;  %v1495_v56 = vpack.c.b16 %v1364_v35, %v1363_v43 }
 0x27d   :  { %v647_v4 = vpack.c.bf16 %v391_v13, %v391_v13  ;;  %v648_v3 = vpack.c.bf16 %v392_v37, %v392_v37  ;;  %v709_v11 = vpack.c.bf16 %v453_v60, %v453_v60  ;;  %v710_v53 = vpack.c.bf16 %v454_v46, %v454_v46 }
 0x27e   :  { %3967 = vst [vmem:[#allocation11 + $0x198] sm:$0xff] %v3521_v5   ;;  %v1789_v17 = vpop.f32.mrf.mxu0  ;;  %v518_v5 = vmul.f32 %v5249_v52, %v5253_v55  ;;  %v773_v48 = vpack.c.bf16 %v517_v27, %v517_v27  ;;  %v837_v35 = vpack.c.bf16 %v581_v38, %v581_v38  ;;  %v838_v13 = vpack.c.bf16 %v582_v31, %v582_v31 }
 0x27f   :  { %v2259_v61 = vpop.f32.mrf.mxu3  ;;  %v2398_v16 = vadd.f32 %v4679_v21, %v1789_v17  ;;  %v1175_v23 = vunpack.c.l.b16 %v647_v4  ;;  %v1237_v43 = vunpack.c.l.b16 %v709_v11  ;;  %v455_v4 = vmul.f32 %v4470_v29, %v5252_v54 }
 0x280   :  { %v2101_v57 = vpop.f32.mrf.mxu2  ;;  %v2586_v18 = vadd.f32 %v4623_v28, %v2259_v61  ;;  %v1301_v14 = vunpack.c.l.b16 %v773_v48  ;;  %v519_v11 = vmul.f32 %v4470_v29, %v5253_v55 }
 0x281   :  { %1828 = vmatmul.bf16.gmra.mxu0 %v1400_v36  ;;  %v1944_v20 = vpop.f32.mrf.mxu1  ;;  %v2523_v42 = vadd.f32 %v4626_v25, %v2101_v57  ;;  %v1176_v36 = vunpack.c.l.b16 %v648_v3  ;;  %v774_v57 = vpack.c.bf16 %v518_v5, %v518_v5 }
 0x282   :  { %v2460_v50 = vadd.f32 %v4651_v45, %v1944_v20  ;;  %v1238_v20 = vunpack.c.l.b16 %v710_v53  ;;  %v775_v48 = vpack.c.bf16 %v519_v11, %v519_v11  ;;  %v586_v11 = vmul.f32 %v4350_v1, %v4976_v39 }
 0x283   :  { %v3681_v59 = vpack.c.bf16 %v2523_v42, %v2522_v8  ;;  %v1401_v8 = vpack.c.b16 %v1176_v36, %v1175_v23  ;;  %v584_v23 = vmul.f32 %v4472_v30, %v4976_v39 }
 0x284   :  { %1983 = vmatmul.bf16.gmra.mxu1 %v1431_v6  ;;  %v1432_v52 = vpack.c.b16 %v1238_v20, %v1237_v43 }
 0x285   :  { %3999 = vst [vmem:[#allocation11 + $0x298] sm:$0xff] %v3681_v59   ;;  %2143 = vmatmul.bf16.gmra.mxu2 %v1463_v22 }
 0x286   :  { %v1791_v26 = vpop.f32.mrf.mxu0 }
 0x287   :  { %v2261_v24 = vpop.f32.mrf.mxu3  ;;  %v2399_v19 = vadd.f32 %v4682_v15, %v1791_v26 }
 0x288   :  { %v2587_v10 = vadd.f32 %v4626_v25, %v2261_v24  ;;  %v2104_v49 = vpop.f32.mrf.mxu2  ;;  %v1302_v24 = vunpack.c.l.b16 %v774_v57 }
 0x289   :  { %v3371_v34 = vpack.c.bf16 %v2399_v19, %v2398_v16  ;;  %v1946_v61 = vpop.f32.mrf.mxu1  ;;  %v2524_v59 = vadd.f32 %v4651_v45, %v2104_v49  ;;  %v456_v16 = vmul.f32 %v4472_v30, %v5252_v54  ;;  %v520_v54 = vmul.f32 %v4472_v30, %v5253_v55 }
 0x28a   :  { %v3841_v63 = vpack.c.bf16 %v2587_v10, %v2586_v18  ;;  %v2461_v17 = vadd.f32 %v4654_v33, %v1946_v61  ;;  %v1365_v18 = vunpack.c.l.b16 %v837_v35  ;;  %v1366_v10 = vunpack.c.l.b16 %v838_v13 }
 0x28b   :  { %3937 = vst [vmem:[#allocation11 + $0xa8] sm:$0xff] %v3371_v34   ;;  %v712_v49 = vpack.c.bf16 %v456_v16, %v456_v16  ;;  %v776_v57 = vpack.c.bf16 %v520_v54, %v520_v54  ;;  %v840_v35 = vpack.c.bf16 %v584_v23, %v584_v23  ;;  %v842_v54 = vpack.c.bf16 %v586_v11, %v586_v11 }
 0x28c   :  { %4031 = vst [vmem:[#allocation11 + $0x398] sm:$0xff] %v3841_v63   ;;  %2303 = vmatmul.bf16.gmra.mxu3 %v1495_v56  ;;  %v3526_v0 = vpack.c.bf16 %v2461_v17, %v2460_v50  ;;  %v1464_v56 = vpack.c.b16 %v1302_v24, %v1301_v14  ;;  %v1496_v27 = vpack.c.b16 %v1366_v10, %v1365_v18 }
 0x28d   :  { %v711_v50 = vpack.c.bf16 %v455_v4, %v455_v4  ;;  %v1240_v55 = vunpack.c.l.b16 %v712_v49 }
 0x28e   :  { %3968 = vst [vmem:[#allocation11 + $0x1a0] sm:$0xff] %v3526_v0   ;;  %v1794_v6 = vpop.f32.mrf.mxu0 }
 0x28f   :  { %v2264_v32 = vpop.f32.mrf.mxu3  ;;  %v2400_v34 = vadd.f32 %v4709_v12, %v1794_v6  ;;  %v1239_v43 = vunpack.c.l.b16 %v711_v50 }
 0x290   :  { %v2106_v37 = vpop.f32.mrf.mxu2  ;;  %v2588_v46 = vadd.f32 %v4651_v45, %v2264_v32  ;;  %v583_v32 = vmul.f32 %v4470_v29, %v4976_v39 }
 0x291   :  { %1833 = vmatmul.bf16.gmra.mxu0 %v1401_v8  ;;  %v1949_v42 = vpop.f32.mrf.mxu1  ;;  %v2525_v22 = vadd.f32 %v4654_v33, %v2106_v37  ;;  %v1303_v8 = vunpack.c.l.b16 %v775_v48  ;;  %v1433_v24 = vpack.c.b16 %v1240_v55, %v1239_v43  ;;  %v1368_v37 = vunpack.c.l.b16 %v840_v35 }
 0x292   :  { %v2462_v17 = vadd.f32 %v4679_v21, %v1949_v42  ;;  %v839_v20 = vpack.c.bf16 %v583_v32, %v583_v32  ;;  %v1304_v42 = vunpack.c.l.b16 %v776_v57  ;;  %v1370_v32 = vunpack.c.l.b16 %v842_v54 }
 0x293   :  { %v3686_v63 = vpack.c.bf16 %v2525_v22, %v2524_v59 }
 0x294   :  { %1988 = vmatmul.bf16.gmra.mxu1 %v1432_v52  ;;  %v1367_v29 = vunpack.c.l.b16 %v839_v20 }
 0x295   :  { %4000 = vst [vmem:[#allocation11 + $0x2a0] sm:$0xff] %v3686_v63   ;;  %2148 = vmatmul.bf16.gmra.mxu2 %v1464_v56 }
 0x296   :  { %v1796_v19 = vpop.f32.mrf.mxu0  ;;  %v1497_v63 = vpack.c.b16 %v1368_v37, %v1367_v29 }
 0x297   :  { %v2266_v60 = vpop.f32.mrf.mxu3  ;;  %v2401_v61 = vadd.f32 %v4712_v2, %v1796_v19 }
 0x298   :  { %v2589_v26 = vadd.f32 %v4654_v33, %v2266_v60  ;;  %v2109_v38 = vpop.f32.mrf.mxu2  ;;  %v1465_v60 = vpack.c.b16 %v1304_v42, %v1303_v8 }
 0x299   :  { %v3376_v53 = vpack.c.bf16 %v2401_v61, %v2400_v34  ;;  %v1951_v5 = vpop.f32.mrf.mxu1  ;;  %v2526_v30 = vadd.f32 %v4679_v21, %v2109_v38  ;;  %v585_v61 = vmul.f32 %v4342_v58, %v4976_v39 }
 0x29a   :  { %v3846_v3 = vpack.c.bf16 %v2589_v26, %v2588_v46  ;;  %v2463_v31 = vadd.f32 %v4682_v15, %v1951_v5 }
 0x29b   :  { %3938 = vst [vmem:[#allocation11 + $0xb0] sm:$0xff] %v3376_v53   ;;  %v841_v49 = vpack.c.bf16 %v585_v61, %v585_v61 }
 0x29c   :  { %4032 = vst [vmem:[#allocation11 + $0x3a0] sm:$0xff] %v3846_v3   ;;  %2308 = vmatmul.bf16.gmra.mxu3 %v1496_v27  ;;  %v3531_v0 = vpack.c.bf16 %v2463_v31, %v2462_v17 }
 0x29d   :  { %v1369_v31 = vunpack.c.l.b16 %v841_v49 }
 0x29e   :  { %3969 = vst [vmem:[#allocation11 + $0x1a8] sm:$0xff] %v3531_v0   ;;  %v1799_v6 = vpop.f32.mrf.mxu0 }
 0x29f   :  { %v2269_v36 = vpop.f32.mrf.mxu3  ;;  %v2402_v56 = vadd.f32 %v4546_v40, %v1799_v6  ;;  %v1498_v6 = vpack.c.b16 %v1370_v32, %v1369_v31 }
 0x2a0   :  { %v2111_v14 = vpop.f32.mrf.mxu2  ;;  %v2590_v10 = vadd.f32 %v4679_v21, %v2269_v36 }
 0x2a1   :  { %v1954_v13 = vpop.f32.mrf.mxu1  ;;  %v2527_v52 = vadd.f32 %v4682_v15, %v2111_v14 }
 0x2a2   :  { %v2464_v3 = vadd.f32 %v4709_v12, %v1954_v13 }
 0x2a3   :  { %v3691_v22 = vpack.c.bf16 %v2527_v52, %v2526_v30 }
 0x2a4   :  { %1993 = vmatmul.bf16.gmra.mxu1 %v1433_v24 }
 0x2a5   :  { %4001 = vst [vmem:[#allocation11 + $0x2a8] sm:$0xff] %v3691_v22   ;;  %2153 = vmatmul.bf16.gmra.mxu2 %v1465_v60 }
 0x2a6   :  { %v1801_v46 = vpop.f32.mrf.mxu0 }
 0x2a7   :  { %v2271_v18 = vpop.f32.mrf.mxu3  ;;  %v2403_v4 = vadd.f32 %v4548_v62, %v1801_v46 }
 0x2a8   :  { %v2591_v59 = vadd.f32 %v4682_v15, %v2271_v18  ;;  %v2114_v27 = vpop.f32.mrf.mxu2 }
 0x2a9   :  { %v3381_v16 = vpack.c.bf16 %v2403_v4, %v2402_v56  ;;  %v1956_v19 = vpop.f32.mrf.mxu1  ;;  %v2528_v23 = vadd.f32 %v4709_v12, %v2114_v27 }
 0x2aa   :  { %v3851_v26 = vpack.c.bf16 %v2591_v59, %v2590_v10  ;;  %v2465_v34 = vadd.f32 %v4712_v2, %v1956_v19 }
 0x2ab   :  { %3939 = vst [vmem:[#allocation11 + $0xb8] sm:$0xff] %v3381_v16  }
 0x2ac   :  { %4033 = vst [vmem:[#allocation11 + $0x3a8] sm:$0xff] %v3851_v26   ;;  %2313 = vmatmul.bf16.gmra.mxu3 %v1497_v63  ;;  %v3536_v5 = vpack.c.bf16 %v2465_v34, %v2464_v3 }
 0x2ae   :  { %3970 = vst [vmem:[#allocation11 + $0x1b0] sm:$0xff] %v3536_v5   ;;  %v1804_v50 = vpop.f32.mrf.mxu0 }
 0x2af   :  { %v2274_v53 = vpop.f32.mrf.mxu3  ;;  %v2404_v43 = vadd.f32 %v4530_v41, %v1804_v50 }
 0x2b0   :  { %v2116_v38 = vpop.f32.mrf.mxu2  ;;  %v2592_v58 = vadd.f32 %v4709_v12, %v2274_v53 }
 0x2b1   :  { %v1959_v17 = vpop.f32.mrf.mxu1  ;;  %v2529_v36 = vadd.f32 %v4712_v2, %v2116_v38 }
 0x2b2   :  { %v2466_v13 = vadd.f32 %v4546_v40, %v1959_v17 }
 0x2b3   :  { %v3696_v39 = vpack.c.bf16 %v2529_v36, %v2528_v23 }
 0x2b5   :  { %4002 = vst [vmem:[#allocation11 + $0x2b0] sm:$0xff] %v3696_v39  }
 0x2b6   :  { %v1806_v48 = vpop.f32.mrf.mxu0 }
 0x2b7   :  { %v2276_v0 = vpop.f32.mrf.mxu3  ;;  %v2405_v55 = vadd.f32 %v4532_v44, %v1806_v48 }
 0x2b8   :  { %v2593_v1 = vadd.f32 %v4712_v2, %v2276_v0  ;;  %v2119_v8 = vpop.f32.mrf.mxu2 }
 0x2b9   :  { %v3386_v20 = vpack.c.bf16 %v2405_v55, %v2404_v43  ;;  %v1961_v35 = vpop.f32.mrf.mxu1  ;;  %v2530_v52 = vadd.f32 %v4546_v40, %v2119_v8 }
 0x2ba   :  { %v3856_v57 = vpack.c.bf16 %v2593_v1, %v2592_v58  ;;  %v2467_v42 = vadd.f32 %v4548_v62, %v1961_v35 }
 0x2bb   :  { %3940 = vst [vmem:[#allocation11 + $0xc0] sm:$0xff] %v3386_v20  }
 0x2bc   :  { %4034 = vst [vmem:[#allocation11 + $0x3b0] sm:$0xff] %v3856_v57   ;;  %2318 = vmatmul.bf16.gmra.mxu3 %v1498_v6  ;;  %v3541_v24 = vpack.c.bf16 %v2467_v42, %v2466_v13 }
 0x2be   :  { %3971 = vst [vmem:[#allocation11 + $0x1b8] sm:$0xff] %v3541_v24   ;;  %v1809_v29 = vpop.f32.mrf.mxu0 }
 0x2bf   :  { %v2279_v14 = vpop.f32.mrf.mxu3  ;;  %v2406_v63 = vadd.f32 %v4567_v7, %v1809_v29 }
 0x2c0   :  { %v2121_v30 = vpop.f32.mrf.mxu2  ;;  %v2594_v59 = vadd.f32 %v4546_v40, %v2279_v14 }
 0x2c1   :  { %v1964_v37 = vpop.f32.mrf.mxu1  ;;  %v2531_v18 = vadd.f32 %v4548_v62, %v2121_v30 }
 0x2c2   :  { %v2468_v19 = vadd.f32 %v4530_v41, %v1964_v37 }
 0x2c3   :  { %v3701_v60 = vpack.c.bf16 %v2531_v18, %v2530_v52 }
 0x2c5   :  { %4003 = vst [vmem:[#allocation11 + $0x2b8] sm:$0xff] %v3701_v60  }
 0x2c6   :  { %v1811_v46 = vpop.f32.mrf.mxu0 }
 0x2c7   :  { %v2281_v10 = vpop.f32.mrf.mxu3  ;;  %v2407_v56 = vadd.f32 %v4570_v9, %v1811_v46 }
 0x2c8   :  { %v2595_v22 = vadd.f32 %v4548_v62, %v2281_v10  ;;  %v2124_v3 = vpop.f32.mrf.mxu2 }
 0x2c9   :  { %v3391_v4 = vpack.c.bf16 %v2407_v56, %v2406_v63  ;;  %v1966_v16 = vpop.f32.mrf.mxu1  ;;  %v2532_v50 = vadd.f32 %v4530_v41, %v2124_v3 }
 0x2ca   :  { %v3861_v26 = vpack.c.bf16 %v2595_v22, %v2594_v59  ;;  %v2469_v27 = vadd.f32 %v4532_v44, %v1966_v16 }
 0x2cb   :  { %3941 = vst [vmem:[#allocation11 + $0xc8] sm:$0xff] %v3391_v4  }
 0x2cc   :  { %4035 = vst [vmem:[#allocation11 + $0x3b8] sm:$0xff] %v3861_v26   ;;  %v3546_v61 = vpack.c.bf16 %v2469_v27, %v2468_v19 }
 0x2ce   :  { %3972 = vst [vmem:[#allocation11 + $0x1c0] sm:$0xff] %v3546_v61   ;;  %v1814_v11 = vpop.f32.mrf.mxu0 }
 0x2cf   :  { %v2284_v34 = vpop.f32.mrf.mxu3  ;;  %v2408_v36 = vadd.f32 %v4595_v47, %v1814_v11 }
 0x2d0   :  { %v2126_v5 = vpop.f32.mrf.mxu2  ;;  %v2596_v17 = vadd.f32 %v4530_v41, %v2284_v34 }
 0x2d1   :  { %v1969_v53 = vpop.f32.mrf.mxu1  ;;  %v2533_v49 = vadd.f32 %v4532_v44, %v2126_v5 }
 0x2d2   :  { %v2470_v39 = vadd.f32 %v4567_v7, %v1969_v53 }
 0x2d3   :  { %v3706_v31 = vpack.c.bf16 %v2533_v49, %v2532_v50 }
 0x2d5   :  { %4004 = vst [vmem:[#allocation11 + $0x2c0] sm:$0xff] %v3706_v31  }
 0x2d6   :  { %v1816_v32 = vpop.f32.mrf.mxu0 }
 0x2d7   :  { %v2286_v54 = vpop.f32.mrf.mxu3  ;;  %v2409_v0 = vadd.f32 %v4598_v51, %v1816_v32 }
 0x2d8   :  { %v2597_v38 = vadd.f32 %v4532_v44, %v2286_v54  ;;  %v2129_v48 = vpop.f32.mrf.mxu2 }
 0x2d9   :  { %v3396_v58 = vpack.c.bf16 %v2409_v0, %v2408_v36  ;;  %v1971_v1 = vpop.f32.mrf.mxu1  ;;  %v2534_v20 = vadd.f32 %v4567_v7, %v2129_v48 }
 0x2da   :  { %v3866_v23 = vpack.c.bf16 %v2597_v38, %v2596_v17  ;;  %v2471_v57 = vadd.f32 %v4570_v9, %v1971_v1 }
 0x2db   :  { %3942 = vst [vmem:[#allocation11 + $0xd0] sm:$0xff] %v3396_v58  }
 0x2dc   :  { %4036 = vst [vmem:[#allocation11 + $0x3c0] sm:$0xff] %v3866_v23   ;;  %v3551_v6 = vpack.c.bf16 %v2471_v57, %v2470_v39 }
 0x2de   :  { %3973 = vst [vmem:[#allocation11 + $0x1c8] sm:$0xff] %v3551_v6   ;;  %v1819_v44 = vpop.f32.mrf.mxu0 }
 0x2df   :  { %v2289_v41 = vpop.f32.mrf.mxu3  ;;  %v2410_v37 = vadd.f32 %v4623_v28, %v1819_v44 }
 0x2e0   :  { %v2131_v55 = vpop.f32.mrf.mxu2  ;;  %v2598_v8 = vadd.f32 %v4567_v7, %v2289_v41 }
 0x2e1   :  { %v1974_v43 = vpop.f32.mrf.mxu1  ;;  %v2535_v35 = vadd.f32 %v4570_v9, %v2131_v55 }
 0x2e2   :  { %v2472_v10 = vadd.f32 %v4595_v47, %v1974_v43 }
 0x2e3   :  { %v3711_v14 = vpack.c.bf16 %v2535_v35, %v2534_v20 }
 0x2e5   :  { %4005 = vst [vmem:[#allocation11 + $0x2c8] sm:$0xff] %v3711_v14  }
 0x2e6   :  { %v1821_v24 = vpop.f32.mrf.mxu0 }
 0x2e7   :  { %v2291_v13 = vpop.f32.mrf.mxu3  ;;  %v2411_v30 = vadd.f32 %v4626_v25, %v1821_v24 }
 0x2e8   :  { %v2599_v42 = vadd.f32 %v4570_v9, %v2291_v13  ;;  %v2134_v59 = vpop.f32.mrf.mxu2 }
 0x2e9   :  { %v3401_v52 = vpack.c.bf16 %v2411_v30, %v2410_v37  ;;  %v1976_v18 = vpop.f32.mrf.mxu1  ;;  %v2536_v63 = vadd.f32 %v4595_v47, %v2134_v59 }
 0x2ea   :  { %v3871_v29 = vpack.c.bf16 %v2599_v42, %v2598_v8  ;;  %v2473_v22 = vadd.f32 %v4598_v51, %v1976_v18 }
 0x2eb   :  { %3943 = vst [vmem:[#allocation11 + $0xd8] sm:$0xff] %v3401_v52  }
 0x2ec   :  { %4037 = vst [vmem:[#allocation11 + $0x3c8] sm:$0xff] %v3871_v29   ;;  %v3556_v60 = vpack.c.bf16 %v2473_v22, %v2472_v10 }
 0x2ee   :  { %3974 = vst [vmem:[#allocation11 + $0x1d0] sm:$0xff] %v3556_v60   ;;  %v1824_v9 = vpop.f32.mrf.mxu0 }
 0x2ef   :  { %v2294_v7 = vpop.f32.mrf.mxu3  ;;  %v2412_v61 = vadd.f32 %v4651_v45, %v1824_v9 }
 0x2f0   :  { %v2136_v26 = vpop.f32.mrf.mxu2  ;;  %v2600_v16 = vadd.f32 %v4595_v47, %v2294_v7 }
 0x2f1   :  { %v1979_v46 = vpop.f32.mrf.mxu1  ;;  %v2537_v56 = vadd.f32 %v4598_v51, %v2136_v26 }
 0x2f2   :  { %v2474_v50 = vadd.f32 %v4623_v28, %v1979_v46 }
 0x2f3   :  { %v3716_v3 = vpack.c.bf16 %v2537_v56, %v2536_v63 }
 0x2f5   :  { %4006 = vst [vmem:[#allocation11 + $0x2d0] sm:$0xff] %v3716_v3  }
 0x2f6   :  { %v1826_v27 = vpop.f32.mrf.mxu0 }
 0x2f7   :  { %v2296_v4 = vpop.f32.mrf.mxu3  ;;  %v2413_v11 = vadd.f32 %v4654_v33, %v1826_v27 }
 0x2f8   :  { %v2601_v19 = vadd.f32 %v4598_v51, %v2296_v4  ;;  %v2139_v49 = vpop.f32.mrf.mxu2 }
 0x2f9   :  { %v3406_v53 = vpack.c.bf16 %v2413_v11, %v2412_v61  ;;  %v1981_v5 = vpop.f32.mrf.mxu1  ;;  %v2538_v32 = vadd.f32 %v4623_v28, %v2139_v49 }
 0x2fa   :  { %v3876_v34 = vpack.c.bf16 %v2601_v19, %v2600_v16  ;;  %v2475_v54 = vadd.f32 %v4626_v25, %v1981_v5 }
 0x2fb   :  { %3944 = vst [vmem:[#allocation11 + $0xe0] sm:$0xff] %v3406_v53  }
 0x2fc   :  { %4038 = vst [vmem:[#allocation11 + $0x3d0] sm:$0xff] %v3876_v34   ;;  %v3561_v17 = vpack.c.bf16 %v2475_v54, %v2474_v50 }
 0x2fe   :  { %3975 = vst [vmem:[#allocation11 + $0x1d8] sm:$0xff] %v3561_v17   ;;  %v1829_v51 = vpop.f32.mrf.mxu0 }
 0x2ff   :  { %v2299_v47 = vpop.f32.mrf.mxu3  ;;  %v2414_v57 = vadd.f32 %v4679_v21, %v1829_v51 }
 0x300   :  { %v2141_v31 = vpop.f32.mrf.mxu2  ;;  %v2602_v0 = vadd.f32 %v4623_v28, %v2299_v47 }
 0x301   :  { %v1984_v38 = vpop.f32.mrf.mxu1  ;;  %v2539_v23 = vadd.f32 %v4626_v25, %v2141_v31 }
 0x302   :  { %v2476_v43 = vadd.f32 %v4651_v45, %v1984_v38 }
 0x303   :  { %v3721_v1 = vpack.c.bf16 %v2539_v23, %v2538_v32 }
 0x305   :  { %4007 = vst [vmem:[#allocation11 + $0x2d8] sm:$0xff] %v3721_v1  }
 0x306   :  { %v1831_v39 = vpop.f32.mrf.mxu0 }
 0x307   :  { %v2301_v36 = vpop.f32.mrf.mxu3  ;;  %v2415_v41 = vadd.f32 %v4682_v15, %v1831_v39 }
 0x308   :  { %v2603_v58 = vadd.f32 %v4626_v25, %v2301_v36  ;;  %v2144_v55 = vpop.f32.mrf.mxu2 }
 0x309   :  { %v3411_v6 = vpack.c.bf16 %v2415_v41, %v2414_v57  ;;  %v1986_v44 = vpop.f32.mrf.mxu1  ;;  %v2540_v42 = vadd.f32 %v4651_v45, %v2144_v55 }
 0x30a   :  { %v3881_v48 = vpack.c.bf16 %v2603_v58, %v2602_v0  ;;  %v2477_v20 = vadd.f32 %v4654_v33, %v1986_v44 }
 0x30b   :  { %3945 = vst [vmem:[#allocation11 + $0xe8] sm:$0xff] %v3411_v6  }
 0x30c   :  { %4039 = vst [vmem:[#allocation11 + $0x3d8] sm:$0xff] %v3881_v48   ;;  %v3566_v35 = vpack.c.bf16 %v2477_v20, %v2476_v43 }
 0x30e   :  { %3976 = vst [vmem:[#allocation11 + $0x1e0] sm:$0xff] %v3566_v35   ;;  %v1834_v25 = vpop.f32.mrf.mxu0 }
 0x30f   :  { %v2304_v28 = vpop.f32.mrf.mxu3  ;;  %v2416_v10 = vadd.f32 %v4709_v12, %v1834_v25 }
 0x310   :  { %v2146_v8 = vpop.f32.mrf.mxu2  ;;  %v2604_v29 = vadd.f32 %v4651_v45, %v2304_v28 }
 0x311   :  { %v1989_v13 = vpop.f32.mrf.mxu1  ;;  %v2541_v14 = vadd.f32 %v4654_v33, %v2146_v8 }
 0x312   :  { %v2478_v60 = vadd.f32 %v4679_v21, %v1989_v13 }
 0x313   :  { %v3726_v30 = vpack.c.bf16 %v2541_v14, %v2540_v42 }
 0x315   :  { %4008 = vst [vmem:[#allocation11 + $0x2e0] sm:$0xff] %v3726_v30  }
 0x316   :  { %v1836_v52 = vpop.f32.mrf.mxu0 }
 0x317   :  { %v2306_v24 = vpop.f32.mrf.mxu3  ;;  %v2417_v59 = vadd.f32 %v4712_v2, %v1836_v52 }
 0x318   :  { %v2605_v37 = vadd.f32 %v4654_v33, %v2306_v24  ;;  %v2149_v9 = vpop.f32.mrf.mxu2 }
 0x319   :  { %v3416_v22 = vpack.c.bf16 %v2417_v59, %v2416_v10  ;;  %v1991_v7 = vpop.f32.mrf.mxu1  ;;  %v2542_v56 = vadd.f32 %v4679_v21, %v2149_v9 }
 0x31a   :  { %v3886_v18 = vpack.c.bf16 %v2605_v37, %v2604_v29  ;;  %v2479_v46 = vadd.f32 %v4682_v15, %v1991_v7 }
 0x31b   :  { %3946 = vst [vmem:[#allocation11 + $0xf0] sm:$0xff] %v3416_v22  }
 0x31c   :  { %4040 = vst [vmem:[#allocation11 + $0x3e0] sm:$0xff] %v3886_v18   ;;  %v3571_v26 = vpack.c.bf16 %v2479_v46, %v2478_v60 }
 0x31e   :  { %3977 = vst [vmem:[#allocation11 + $0x1e8] sm:$0xff] %v3571_v26  }
 0x31f   :  { %v2309_v45 = vpop.f32.mrf.mxu3 }
 0x320   :  { %v2151_v63 = vpop.f32.mrf.mxu2  ;;  %v2606_v19 = vadd.f32 %v4679_v21, %v2309_v45 }
 0x321   :  { %v1994_v33 = vpop.f32.mrf.mxu1  ;;  %v2543_v4 = vadd.f32 %v4682_v15, %v2151_v63 }
 0x322   :  { %v2480_v11 = vadd.f32 %v4709_v12, %v1994_v33 }
 0x323   :  { %v3731_v27 = vpack.c.bf16 %v2543_v4, %v2542_v56 }
 0x325   :  { %4009 = vst [vmem:[#allocation11 + $0x2e8] sm:$0xff] %v3731_v27  }
 0x327   :  { %v2311_v16 = vpop.f32.mrf.mxu3 }
 0x328   :  { %v2607_v3 = vadd.f32 %v4682_v15, %v2311_v16  ;;  %v2154_v53 = vpop.f32.mrf.mxu2 }
 0x329   :  { %v1996_v61 = vpop.f32.mrf.mxu1  ;;  %v2544_v47 = vadd.f32 %v4709_v12, %v2154_v53 }
 0x32a   :  { %v3891_v34 = vpack.c.bf16 %v2607_v3, %v2606_v19  ;;  %v2481_v5 = vadd.f32 %v4712_v2, %v1996_v61 }
 0x32c   :  { %4041 = vst [vmem:[#allocation11 + $0x3e8] sm:$0xff] %v3891_v34   ;;  %v3576_v49 = vpack.c.bf16 %v2481_v5, %v2480_v11 }
 0x32e   :  { %3978 = vst [vmem:[#allocation11 + $0x1f0] sm:$0xff] %v3576_v49  }
 0x32f   :  { %v2314_v50 = vpop.f32.mrf.mxu3 }
 0x330   :  { %v2156_v54 = vpop.f32.mrf.mxu2  ;;  %v2608_v15 = vadd.f32 %v4709_v12, %v2314_v50 }
 0x331   :  { %v2545_v21 = vadd.f32 %v4712_v2, %v2156_v54 }
 0x333   :  { %v3736_v38 = vpack.c.bf16 %v2545_v21, %v2544_v47 }
 0x335   :  { %4010 = vst [vmem:[#allocation11 + $0x2f0] sm:$0xff] %v3736_v38  }
 0x337   :  { %v2316_v17 = vpop.f32.mrf.mxu3 }
 0x338   :  { %v2609_v51 = vadd.f32 %v4712_v2, %v2316_v17 }
 0x33a   :  { %v3896_v31 = vpack.c.bf16 %v2609_v51, %v2608_v15 }
 0x33c   :  { %4042 = vst [vmem:[#allocation11 + $0x3f0] sm:$0xff] %v3896_v31  }
 0x33f   :  { %v2319_v32 = vpop.f32.mrf.mxu3 }
 0x340   :  { %v2610_v36 = vadd.f32 %v4546_v40, %v2319_v32 }
 0x347   :  { %v2321_v23 = vpop.f32.mrf.mxu3 }
 0x348   :  { %v2611_v0 = vadd.f32 %v4548_v62, %v2321_v23 }
 0x34a   :  { %v3901_v58 = vpack.c.bf16 %v2611_v0, %v2610_v36 }
 0x34c   :  { %4043 = vst [vmem:[#allocation11 + $0x3f8] sm:$0xff] %v3901_v58  }
 0x34d   :  { %3136 = dma.vmem_to_hbm [thread:$0]  %s3129_s18, 16384, %s3131_s21, [#allocation4], %s4234_s1, %s4234_s1, %s4235_s8  }
 0x34e   :  { %4228 = dma.done.wait [#allocation4], 16384  }
 0x34f   :  { %4229 = vsyncadd [#allocation4], 4294950912 }
 0x350   :  { %3141 = vsyncpa [#allocation3], 1 }
 0x351   :  { %3142 = vsyncpa [#allocation6], 1 }
 0x352   :  { %3143 = vsyncpa [#allocation9], 1 }
 0x353   :  { %3144 = vsyncpa [#allocation4], 1 }

</bundles_post_ra>
